<compile_context>
chip_gen: v6e
topology: v6e:2x2x1
jax: 0.10.0
libtpu: 0.0.40
codegen_flags: <defaults>
</compile_context>

<pallas_src>
import jax
import jax.numpy as jnp
from jax.experimental import pallas as pl
from jax.experimental.pallas import tpu as pltpu


def output_layer_kernel(x_ref, w1_ref, bias_ref, w2_ref, b2_ref, o_ref):
    # x_ref   : (1, H+3, W+2, Cin_p)   bf16 padded NHWC image (same block for all row bands)
    # w1_ref  : (3, 3, Cin_p, Cmid_p)  bf16 3x3 weights, BN scale pre-folded
    # bias_ref: (1, Cmid_p)            f32 folded BN bias
    # w2_ref  : (Cmid_p, Cout_p)       bf16 1x1 weights
    # b2_ref  : (1, Cout_p)            f32 1x1 bias
    # o_ref   : (1, TH*(W+2), Cout_p)  f32 output band, flattened over (rows, W+2)
    wp2 = x_ref.shape[2]                 # W + 2
    cin_p = x_ref.shape[3]
    l_out = o_ref.shape[1]               # TH * (W + 2)
    th = l_out // wp2                    # output rows in this band
    l_ext = l_out + wp2                  # (TH + 1) * (W + 2)

    row0 = pl.program_id(1) * th         # first output row of this band

    acc = None
    for dy in range(3):
        # One contiguous (TH+1)-row slab per dy, flattened over (rows, W+2); the dx
        # taps become static sublane slices instead of 9 strided patch gathers.
        slab = x_ref[0, pl.ds(row0 + dy, th + 1), :, :].reshape(l_ext, cin_p)
        for dx in range(3):
            contrib = jnp.dot(slab[dx:dx + l_out, :], w1_ref[dy, dx],
                              preferred_element_type=jnp.float32)
            acc = contrib if acc is None else acc + contrib

    # Folded-BN bias + LeakyReLU(0.1), in f32.
    h = acc + bias_ref[...]
    h = jnp.where(h > 0, h, 0.1 * h)

    # 1x1 conv (bf16 MXU path, f32 accumulate) + bias.
    out = jnp.dot(h.astype(w2_ref.dtype), w2_ref[...],
                  preferred_element_type=jnp.float32) + b2_ref[...]
    o_ref[...] = out.reshape(o_ref.shape).astype(o_ref.dtype)


def _round_up(n, m):
    return ((n + m - 1) // m) * m


def _choose_row_tile(H, W, Cmid_p, Cout_p, vmem_budget_bytes=6 << 20):
    """Largest divisor of H giving >= 2 sublane-aligned row bands with decent MXU M
    under a per-step f32 working-set budget; falls back to the full height."""
    best = H  # always legal: block then spans the full flattened axis
    for th in range(1, H):
        if H % th:
            continue
        flat_rows = th * (W + 2)
        if flat_rows % 8 or flat_rows < 128:
            continue
        work_bytes = flat_rows * (Cmid_p + 2 * Cout_p) * 4
        if work_bytes <= vmem_budget_bytes:
            best = th
    return best


def output_layer_forward(x_nchw, params, numClasses, anchorPerScale):
    """x_nchw: (B, Cin, H, W) float32 -> (B, anchorPerScale, H, W, numClasses + 5)."""
    B, Cin, H, W = x_nchw.shape
    w1 = params["w1"]                        # (Cmid, Cin, 3, 3) OIHW
    gamma, beta = params["gamma"], params["beta"]
    rmean, rvar = params["running_mean"], params["running_var"]
    w2, b2 = params["w2"], params["b2"]      # (Cout, Cmid, 1, 1), (Cout,)
    Cmid, Cout = w1.shape[0], w2.shape[0]
    C5 = numClasses + 5
    eps = 1e-5

    LANE = 128
    Cin_p = _round_up(Cin, LANE)
    Cmid_p = _round_up(Cmid, LANE)
    Cout_p = _round_up(Cout, LANE)

    # Fold eval-mode BatchNorm into the 3x3 weights + a single bias.
    scale = gamma / jnp.sqrt(rvar + eps)                 # (Cmid,)
    bias = beta - rmean * scale                          # (Cmid,)
    w1_hwio = jnp.transpose(w1, (2, 3, 1, 0)) * scale    # (3, 3, Cin, Cmid)
    w2_mat = jnp.transpose(w2[:, :, 0, 0], (1, 0))       # (Cmid, Cout)

    # NCHW -> NHWC; conv padding (top 1, bottom 2: the extra zero row only feeds
    # flattened positions that are sliced off); zero-pad channels to lane multiples.
    x_nhwc = jnp.transpose(x_nchw, (0, 2, 3, 1))
    x_pad = jnp.pad(x_nhwc, ((0, 0), (1, 2), (1, 1), (0, Cin_p - Cin)))
    w1_p = jnp.pad(w1_hwio, ((0, 0), (0, 0), (0, Cin_p - Cin), (0, Cmid_p - Cmid)))
    bias_p = jnp.pad(bias, (0, Cmid_p - Cmid)).reshape(1, Cmid_p)
    w2_p = jnp.pad(w2_mat, ((0, Cmid_p - Cmid), (0, Cout_p - Cout)))
    b2_p = jnp.pad(b2, (0, Cout_p - Cout)).reshape(1, Cout_p)

    # bf16 matmul operands (MXU peak path, halves DMA bytes); biases stay f32.
    x_pad = x_pad.astype(jnp.bfloat16)
    w1_p = w1_p.astype(jnp.bfloat16)
    w2_p = w2_p.astype(jnp.bfloat16)

    TH = _choose_row_tile(H, W, Cmid_p, Cout_p)
    nT = H // TH
    L = TH * (W + 2)

    y = pl.pallas_call(
        output_layer_kernel,
        out_shape=jax.ShapeDtypeStruct((B, H * (W + 2), Cout_p), jnp.float32),
        grid_spec=pltpu.PrefetchScalarGridSpec(
            num_scalar_prefetch=0,
            grid=(B, nT),
            in_specs=[
                # Whole padded image per batch element; index map ignores the row-band
                # axis so the block is fetched once and revisited across bands.
                pl.BlockSpec((1, H + 3, W + 2, Cin_p), lambda b, t: (b, 0, 0, 0)),
                # Constant weight / bias blocks.  (If VMEM is tight on v7x at
                # Cmid=1024, pipeline_mode=pl.Buffered(1) here reclaims their
                # second pipeline buffer.)
                pl.BlockSpec((3, 3, Cin_p, Cmid_p), lambda b, t: (0, 0, 0, 0)),
                pl.BlockSpec((1, Cmid_p), lambda b, t: (0, 0)),
                pl.BlockSpec((Cmid_p, Cout_p), lambda b, t: (0, 0)),
                pl.BlockSpec((1, Cout_p), lambda b, t: (0, 0)),
            ],
            out_specs=pl.BlockSpec((1, L, Cout_p), lambda b, t: (b, t, 0)),
        ),
        compiler_params=pltpu.CompilerParams(
            dimension_semantics=("parallel", "parallel"),
            vmem_limit_bytes=48 * 1024 * 1024,
        ),
    )(x_pad, w1_p, bias_p, w2_p, b2_p)

    # Drop the 2 invalid flattened columns per row and the channel padding, then
    # reproduce PyTorch's reshape/permute (cheap XLA layout glue, kept out of the kernel).
    y = y.reshape(B, H, W + 2, Cout_p)[:, :, :W, :Cout]
    out = y.reshape(B, H, W, anchorPerScale, C5)
    return jnp.transpose(out, (0, 3, 1, 2, 4))


def output_layer_reference(x_nchw, params, numClasses, anchorPerScale):
    """Pure-XLA reference mirroring the kernel's bf16-operand / f32-accumulate numerics."""
    eps = 1e-5
    B, Cin, H, W = x_nchw.shape
    w1, w2, b2 = params["w1"], params["w2"], params["b2"]
    scale = params["gamma"] / jnp.sqrt(params["running_var"] + eps)
    bias = params["beta"] - params["running_mean"] * scale
    x_nhwc = jnp.transpose(x_nchw, (0, 2, 3, 1)).astype(jnp.bfloat16)
    w1_hwio = (jnp.transpose(w1, (2, 3, 1, 0)) * scale).astype(jnp.bfloat16)
    h = jax.lax.conv_general_dilated(
        x_nhwc, w1_hwio, window_strides=(1, 1), padding=((1, 1), (1, 1)),
        dimension_numbers=("NHWC", "HWIO", "NHWC"),
        preferred_element_type=jnp.float32)
    h = h + bias
    h = jnp.where(h > 0, h, 0.1 * h)
    w2_mat = jnp.transpose(w2[:, :, 0, 0], (1, 0)).astype(jnp.bfloat16)
    y = jnp.einsum("bhwc,cd->bhwd", h.astype(jnp.bfloat16), w2_mat,
                   preferred_element_type=jnp.float32) + b2
    out = y.reshape(B, H, W, anchorPerScale, numClasses + 5)
    return jnp.transpose(out, (0, 3, 1, 2, 4))


def init_params(key, in_channels, mid_channels, numClasses, anchorPerScale):
    Cout = anchorPerScale * (numClasses + 5)
    keys = jax.random.split(key, 6)
    return {
        "w1": 0.1 * jax.random.normal(keys[0], (mid_channels, in_channels, 3, 3), jnp.float32),
        "gamma": 1.0 + 0.1 * jax.random.normal(keys[1], (mid_channels,), jnp.float32),
        "beta": 0.1 * jax.random.normal(keys[2], (mid_channels,), jnp.float32),
        "running_mean": 0.1 * jax.random.normal(keys[3], (mid_channels,), jnp.float32),
        "running_var": jnp.abs(1.0 + 0.1 * jax.random.normal(keys[4], (mid_channels,), jnp.float32)),
        "w2": 0.1 * jax.random.normal(keys[5], (Cout, mid_channels, 1, 1), jnp.float32),
        "b2": 0.01 * jnp.arange(Cout, dtype=jnp.float32),
    }


if __name__ == "__main__":
    # Small deterministic configuration consistent with the module (H=16 so the
    # multi-row-band grid path is exercised: TH=8, nT=2).
    B, in_channels, H, W = 2, 8, 16, 16
    mid_channels = 16
    numClasses = 3
    anchorPerScale = 3

    key = jax.random.PRNGKey(0)
    kx, kp = jax.random.split(key)
    x = jax.random.normal(kx, (B, in_channels, H, W), jnp.float32)
    params = init_params(kp, in_channels, mid_channels, numClasses, anchorPerScale)

    out = jax.block_until_ready(output_layer_forward(x, params, numClasses, anchorPerScale))

    expected_shape = (B, anchorPerScale, H, W, numClasses + 5)
    assert out.shape == expected_shape, (out.shape, expected_shape)

    ref = jax.block_until_ready(output_layer_reference(x, params, numClasses, anchorPerScale))
    max_err = float(jnp.max(jnp.abs(out - ref)))
    assert jnp.allclose(out, ref, atol=2e-2, rtol=2e-2), max_err

    print("KERNEL_OK")
</pallas_src>

<mosaic_0001>
module attributes {stable_mosaic.version = 11 : i64} {
  func.func @output_layer_kernel(%arg0: i32, %arg1: i32, %arg2: memref<1x19x18x128xbf16, #tpu.memory_space<vmem>>, %arg3: memref<3x3x128x128xbf16, #tpu.memory_space<vmem>>, %arg4: memref<1x128xf32, #tpu.memory_space<vmem>>, %arg5: memref<128x128xbf16, #tpu.memory_space<vmem>>, %arg6: memref<1x128xf32, #tpu.memory_space<vmem>>, %arg7: memref<1x144x128xf32, #tpu.memory_space<vmem>>) attributes {dimension_semantics = [#tpu.dimension_semantics<parallel>, #tpu.dimension_semantics<parallel>], iteration_bounds = array<i64: 2, 2>, scalar_prefetch = 0 : i64, scratch_operands = 0 : i64, tpu.core_type = #tpu.core_type<tc>, window_params = [{transform_indices = @transform_0, window_bounds = array<i64: 1, 19, 18, 128>}, {pipeline_mode = #tpu.pipeline_mode<synchronous>, transform_indices = @transform_1, window_bounds = array<i64: 3, 3, 128, 128>}, {pipeline_mode = #tpu.pipeline_mode<synchronous>, transform_indices = @transform_2, window_bounds = array<i64: 1, 128>}, {pipeline_mode = #tpu.pipeline_mode<synchronous>, transform_indices = @transform_3, window_bounds = array<i64: 128, 128>}, {pipeline_mode = #tpu.pipeline_mode<synchronous>, transform_indices = @transform_4, window_bounds = array<i64: 1, 128>}, {transform_indices = @transform_5, window_bounds = array<i64: 1, 144, 128>}]} {
    %c8_i32 = arith.constant 8 : i32
    %0 = arith.muli %arg1, %c8_i32 : i32
    %c0_i32 = arith.constant 0 : i32
    %1 = arith.addi %0, %c0_i32 : i32
    %c0 = arith.constant 0 : index
    %2 = arith.index_cast %1 : i32 to index
    %c0_0 = arith.constant 0 : index
    %c0_1 = arith.constant 0 : index
    %3 = vector.load %arg2[%c0, %2, %c0_0, %c0_1] : memref<1x19x18x128xbf16, #tpu.memory_space<vmem>>, vector<1x9x18x128xbf16>
    %4 = vector.shape_cast %3 : vector<1x9x18x128xbf16> to vector<9x18x128xbf16>
    %5 = vector.shape_cast %4 : vector<9x18x128xbf16> to vector<162x128xbf16>
    %6 = vector.extract_strided_slice %5 {offsets = [0, 0], sizes = [144, 128], strides = [1, 1]} : vector<162x128xbf16> to vector<144x128xbf16>
    %c0_2 = arith.constant 0 : index
    %c0_3 = arith.constant 0 : index
    %c0_4 = arith.constant 0 : index
    %c0_5 = arith.constant 0 : index
    %7 = vector.load %arg3[%c0_2, %c0_3, %c0_4, %c0_5] : memref<3x3x128x128xbf16, #tpu.memory_space<vmem>>, vector<1x1x128x128xbf16>
    %8 = vector.shape_cast %7 : vector<1x1x128x128xbf16> to vector<128x128xbf16>
    %cst = arith.constant dense<0.000000e+00> : vector<144x128xf32>
    %9 = tpu.matmul %6, %8, %cst {dimension_numbers = #tpu.dot_dimension_numbers<[1], [0], [0], [1], [0, 0, 1, 1], [], []>} : vector<144x128xbf16>, vector<128x128xbf16>, vector<144x128xf32> -> vector<144x128xf32>
    %10 = vector.extract_strided_slice %5 {offsets = [1, 0], sizes = [144, 128], strides = [1, 1]} : vector<162x128xbf16> to vector<144x128xbf16>
    %c0_6 = arith.constant 0 : index
    %c1 = arith.constant 1 : index
    %c0_7 = arith.constant 0 : index
    %c0_8 = arith.constant 0 : index
    %11 = vector.load %arg3[%c0_6, %c1, %c0_7, %c0_8] : memref<3x3x128x128xbf16, #tpu.memory_space<vmem>>, vector<1x1x128x128xbf16>
    %12 = vector.shape_cast %11 : vector<1x1x128x128xbf16> to vector<128x128xbf16>
    %cst_9 = arith.constant dense<0.000000e+00> : vector<144x128xf32>
    %13 = tpu.matmul %10, %12, %cst_9 {dimension_numbers = #tpu.dot_dimension_numbers<[1], [0], [0], [1], [0, 0, 1, 1], [], []>} : vector<144x128xbf16>, vector<128x128xbf16>, vector<144x128xf32> -> vector<144x128xf32>
    %14 = arith.addf %9, %13 : vector<144x128xf32>
    %15 = vector.extract_strided_slice %5 {offsets = [2, 0], sizes = [144, 128], strides = [1, 1]} : vector<162x128xbf16> to vector<144x128xbf16>
    %c0_10 = arith.constant 0 : index
    %c2 = arith.constant 2 : index
    %c0_11 = arith.constant 0 : index
    %c0_12 = arith.constant 0 : index
    %16 = vector.load %arg3[%c0_10, %c2, %c0_11, %c0_12] : memref<3x3x128x128xbf16, #tpu.memory_space<vmem>>, vector<1x1x128x128xbf16>
    %17 = vector.shape_cast %16 : vector<1x1x128x128xbf16> to vector<128x128xbf16>
    %cst_13 = arith.constant dense<0.000000e+00> : vector<144x128xf32>
    %18 = tpu.matmul %15, %17, %cst_13 {dimension_numbers = #tpu.dot_dimension_numbers<[1], [0], [0], [1], [0, 0, 1, 1], [], []>} : vector<144x128xbf16>, vector<128x128xbf16>, vector<144x128xf32> -> vector<144x128xf32>
    %19 = arith.addf %14, %18 : vector<144x128xf32>
    %c1_i32 = arith.constant 1 : i32
    %20 = arith.addi %0, %c1_i32 : i32
    %c0_14 = arith.constant 0 : index
    %21 = arith.index_cast %20 : i32 to index
    %c0_15 = arith.constant 0 : index
    %c0_16 = arith.constant 0 : index
    %22 = vector.load %arg2[%c0_14, %21, %c0_15, %c0_16] : memref<1x19x18x128xbf16, #tpu.memory_space<vmem>>, vector<1x9x18x128xbf16>
    %23 = vector.shape_cast %22 : vector<1x9x18x128xbf16> to vector<9x18x128xbf16>
    %24 = vector.shape_cast %23 : vector<9x18x128xbf16> to vector<162x128xbf16>
    %25 = vector.extract_strided_slice %24 {offsets = [0, 0], sizes = [144, 128], strides = [1, 1]} : vector<162x128xbf16> to vector<144x128xbf16>
    %c1_17 = arith.constant 1 : index
    %c0_18 = arith.constant 0 : index
    %c0_19 = arith.constant 0 : index
    %c0_20 = arith.constant 0 : index
    %26 = vector.load %arg3[%c1_17, %c0_18, %c0_19, %c0_20] : memref<3x3x128x128xbf16, #tpu.memory_space<vmem>>, vector<1x1x128x128xbf16>
    %27 = vector.shape_cast %26 : vector<1x1x128x128xbf16> to vector<128x128xbf16>
    %cst_21 = arith.constant dense<0.000000e+00> : vector<144x128xf32>
    %28 = tpu.matmul %25, %27, %cst_21 {dimension_numbers = #tpu.dot_dimension_numbers<[1], [0], [0], [1], [0, 0, 1, 1], [], []>} : vector<144x128xbf16>, vector<128x128xbf16>, vector<144x128xf32> -> vector<144x128xf32>
    %29 = arith.addf %19, %28 : vector<144x128xf32>
    %30 = vector.extract_strided_slice %24 {offsets = [1, 0], sizes = [144, 128], strides = [1, 1]} : vector<162x128xbf16> to vector<144x128xbf16>
    %c1_22 = arith.constant 1 : index
    %c1_23 = arith.constant 1 : index
    %c0_24 = arith.constant 0 : index
    %c0_25 = arith.constant 0 : index
    %31 = vector.load %arg3[%c1_22, %c1_23, %c0_24, %c0_25] : memref<3x3x128x128xbf16, #tpu.memory_space<vmem>>, vector<1x1x128x128xbf16>
    %32 = vector.shape_cast %31 : vector<1x1x128x128xbf16> to vector<128x128xbf16>
    %cst_26 = arith.constant dense<0.000000e+00> : vector<144x128xf32>
    %33 = tpu.matmul %30, %32, %cst_26 {dimension_numbers = #tpu.dot_dimension_numbers<[1], [0], [0], [1], [0, 0, 1, 1], [], []>} : vector<144x128xbf16>, vector<128x128xbf16>, vector<144x128xf32> -> vector<144x128xf32>
    %34 = arith.addf %29, %33 : vector<144x128xf32>
    %35 = vector.extract_strided_slice %24 {offsets = [2, 0], sizes = [144, 128], strides = [1, 1]} : vector<162x128xbf16> to vector<144x128xbf16>
    %c1_27 = arith.constant 1 : index
    %c2_28 = arith.constant 2 : index
    %c0_29 = arith.constant 0 : index
    %c0_30 = arith.constant 0 : index
    %36 = vector.load %arg3[%c1_27, %c2_28, %c0_29, %c0_30] : memref<3x3x128x128xbf16, #tpu.memory_space<vmem>>, vector<1x1x128x128xbf16>
    %37 = vector.shape_cast %36 : vector<1x1x128x128xbf16> to vector<128x128xbf16>
    %cst_31 = arith.constant dense<0.000000e+00> : vector<144x128xf32>
    %38 = tpu.matmul %35, %37, %cst_31 {dimension_numbers = #tpu.dot_dimension_numbers<[1], [0], [0], [1], [0, 0, 1, 1], [], []>} : vector<144x128xbf16>, vector<128x128xbf16>, vector<144x128xf32> -> vector<144x128xf32>
    %39 = arith.addf %34, %38 : vector<144x128xf32>
    %c2_i32 = arith.constant 2 : i32
    %40 = arith.addi %0, %c2_i32 : i32
    %c0_32 = arith.constant 0 : index
    %41 = arith.index_cast %40 : i32 to index
    %c0_33 = arith.constant 0 : index
    %c0_34 = arith.constant 0 : index
    %42 = vector.load %arg2[%c0_32, %41, %c0_33, %c0_34] : memref<1x19x18x128xbf16, #tpu.memory_space<vmem>>, vector<1x9x18x128xbf16>
    %43 = vector.shape_cast %42 : vector<1x9x18x128xbf16> to vector<9x18x128xbf16>
    %44 = vector.shape_cast %43 : vector<9x18x128xbf16> to vector<162x128xbf16>
    %45 = vector.extract_strided_slice %44 {offsets = [0, 0], sizes = [144, 128], strides = [1, 1]} : vector<162x128xbf16> to vector<144x128xbf16>
    %c2_35 = arith.constant 2 : index
    %c0_36 = arith.constant 0 : index
    %c0_37 = arith.constant 0 : index
    %c0_38 = arith.constant 0 : index
    %46 = vector.load %arg3[%c2_35, %c0_36, %c0_37, %c0_38] : memref<3x3x128x128xbf16, #tpu.memory_space<vmem>>, vector<1x1x128x128xbf16>
    %47 = vector.shape_cast %46 : vector<1x1x128x128xbf16> to vector<128x128xbf16>
    %cst_39 = arith.constant dense<0.000000e+00> : vector<144x128xf32>
    %48 = tpu.matmul %45, %47, %cst_39 {dimension_numbers = #tpu.dot_dimension_numbers<[1], [0], [0], [1], [0, 0, 1, 1], [], []>} : vector<144x128xbf16>, vector<128x128xbf16>, vector<144x128xf32> -> vector<144x128xf32>
    %49 = arith.addf %39, %48 : vector<144x128xf32>
    %50 = vector.extract_strided_slice %44 {offsets = [1, 0], sizes = [144, 128], strides = [1, 1]} : vector<162x128xbf16> to vector<144x128xbf16>
    %c2_40 = arith.constant 2 : index
    %c1_41 = arith.constant 1 : index
    %c0_42 = arith.constant 0 : index
    %c0_43 = arith.constant 0 : index
    %51 = vector.load %arg3[%c2_40, %c1_41, %c0_42, %c0_43] : memref<3x3x128x128xbf16, #tpu.memory_space<vmem>>, vector<1x1x128x128xbf16>
    %52 = vector.shape_cast %51 : vector<1x1x128x128xbf16> to vector<128x128xbf16>
    %cst_44 = arith.constant dense<0.000000e+00> : vector<144x128xf32>
    %53 = tpu.matmul %50, %52, %cst_44 {dimension_numbers = #tpu.dot_dimension_numbers<[1], [0], [0], [1], [0, 0, 1, 1], [], []>} : vector<144x128xbf16>, vector<128x128xbf16>, vector<144x128xf32> -> vector<144x128xf32>
    %54 = arith.addf %49, %53 : vector<144x128xf32>
    %55 = vector.extract_strided_slice %44 {offsets = [2, 0], sizes = [144, 128], strides = [1, 1]} : vector<162x128xbf16> to vector<144x128xbf16>
    %c2_45 = arith.constant 2 : index
    %c2_46 = arith.constant 2 : index
    %c0_47 = arith.constant 0 : index
    %c0_48 = arith.constant 0 : index
    %56 = vector.load %arg3[%c2_45, %c2_46, %c0_47, %c0_48] : memref<3x3x128x128xbf16, #tpu.memory_space<vmem>>, vector<1x1x128x128xbf16>
    %57 = vector.shape_cast %56 : vector<1x1x128x128xbf16> to vector<128x128xbf16>
    %cst_49 = arith.constant dense<0.000000e+00> : vector<144x128xf32>
    %58 = tpu.matmul %55, %57, %cst_49 {dimension_numbers = #tpu.dot_dimension_numbers<[1], [0], [0], [1], [0, 0, 1, 1], [], []>} : vector<144x128xbf16>, vector<128x128xbf16>, vector<144x128xf32> -> vector<144x128xf32>
    %59 = arith.addf %54, %58 : vector<144x128xf32>
    %c0_50 = arith.constant 0 : index
    %c0_51 = arith.constant 0 : index
    %60 = vector.load %arg4[%c0_50, %c0_51] : memref<1x128xf32, #tpu.memory_space<vmem>>, vector<1x128xf32>
    %61 = vector.broadcast %60 : vector<1x128xf32> to vector<144x128xf32>
    %62 = arith.addf %59, %61 : vector<144x128xf32>
    %cst_52 = arith.constant 0.000000e+00 : f32
    %63 = vector.broadcast %cst_52 : f32 to vector<144x128xf32>
    %64 = arith.cmpf ogt, %62, %63 : vector<144x128xf32>
    %cst_53 = arith.constant 1.000000e-01 : f32
    %65 = vector.broadcast %cst_53 : f32 to vector<144x128xf32>
    %66 = arith.mulf %65, %62 : vector<144x128xf32>
    %67 = arith.select %64, %62, %66 : vector<144x128xi1>, vector<144x128xf32>
    %68 = arith.truncf %67 : vector<144x128xf32> to vector<144x128xbf16>
    %c0_54 = arith.constant 0 : index
    %c0_55 = arith.constant 0 : index
    %69 = vector.load %arg5[%c0_54, %c0_55] : memref<128x128xbf16, #tpu.memory_space<vmem>>, vector<128x128xbf16>
    %cst_56 = arith.constant dense<0.000000e+00> : vector<144x128xf32>
    %70 = tpu.matmul %68, %69, %cst_56 {dimension_numbers = #tpu.dot_dimension_numbers<[1], [0], [0], [1], [0, 0, 1, 1], [], []>} : vector<144x128xbf16>, vector<128x128xbf16>, vector<144x128xf32> -> vector<144x128xf32>
    %c0_57 = arith.constant 0 : index
    %c0_58 = arith.constant 0 : index
    %71 = vector.load %arg6[%c0_57, %c0_58] : memref<1x128xf32, #tpu.memory_space<vmem>>, vector<1x128xf32>
    %72 = vector.broadcast %71 : vector<1x128xf32> to vector<144x128xf32>
    %73 = arith.addf %70, %72 : vector<144x128xf32>
    %74 = vector.shape_cast %73 : vector<144x128xf32> to vector<1x144x128xf32>
    %c0_59 = arith.constant 0 : index
    %c0_60 = arith.constant 0 : index
    %c0_61 = arith.constant 0 : index
    %75 = vector.load %arg7[%c0_59, %c0_60, %c0_61] : memref<1x144x128xf32, #tpu.memory_space<vmem>>, vector<1x144x128xf32>
    tpu.vector_store %arg7[%c0_59, %c0_60, %c0_61], %74 {strides = array<i32>} : memref<1x144x128xf32, #tpu.memory_space<vmem>>, vector<1x144x128xf32>,
    return
  }
  func.func @transform_0(%arg0: i32, %arg1: i32) -> (i32, i32, i32, i32) {
    %c0_i32 = arith.constant 0 : i32
    %c0_i32_0 = arith.constant 0 : i32
    %c0_i32_1 = arith.constant 0 : i32
    %c0_i32_2 = arith.constant 0 : i32
    return %arg0, %c0_i32, %c0_i32_0, %c0_i32_1 : i32, i32, i32, i32
  }
  func.func @transform_1(%arg0: i32, %arg1: i32) -> (i32, i32, i32, i32) {
    %c0_i32 = arith.constant 0 : i32
    %c0_i32_0 = arith.constant 0 : i32
    %c0_i32_1 = arith.constant 0 : i32
    %c0_i32_2 = arith.constant 0 : i32
    %c0_i32_3 = arith.constant 0 : i32
    return %c0_i32, %c0_i32_0, %c0_i32_1, %c0_i32_2 : i32, i32, i32, i32
  }
  func.func @transform_2(%arg0: i32, %arg1: i32) -> (i32, i32) {
    %c0_i32 = arith.constant 0 : i32
    %c0_i32_0 = arith.constant 0 : i32
    %c0_i32_1 = arith.constant 0 : i32
    return %c0_i32, %c0_i32_0 : i32, i32
  }
  func.func @transform_3(%arg0: i32, %arg1: i32) -> (i32, i32) {
    %c0_i32 = arith.constant 0 : i32
    %c0_i32_0 = arith.constant 0 : i32
    %c0_i32_1 = arith.constant 0 : i32
    return %c0_i32, %c0_i32_0 : i32, i32
  }
  func.func @transform_4(%arg0: i32, %arg1: i32) -> (i32, i32) {
    %c0_i32 = arith.constant 0 : i32
    %c0_i32_0 = arith.constant 0 : i32
    %c0_i32_1 = arith.constant 0 : i32
    return %c0_i32, %c0_i32_0 : i32, i32
  }
  func.func @transform_5(%arg0: i32, %arg1: i32) -> (i32, i32, i32) {
    %c0_i32 = arith.constant 0 : i32
    %c0_i32_0 = arith.constant 0 : i32
    return %arg0, %arg1, %c0_i32 : i32, i32, i32
  }
}

</mosaic_0001>

<bundles_post_ra>
// kernel: tpu_custom_call.1
= control target key start
LH: loop header
LB: loop body
LE: loop exit
PB: predicated region body
PF: predicated region fallthrough
CT: control target
= control target key end

     0   :  { %10 = vsyncpa [#allocation3], 0  ;;  %s10652_s0 = inlined_call_operand.vmem [shape: bf16[2,19,18,128], index: 0, kind: input, shape index: {}]   ;;  %s10653_s1 = inlined_call_operand.vmem [shape: bf16[3,3,128,128], index: 1, kind: input, shape index: {}]   ;;  %s10654_s2 = inlined_call_operand.vmem [shape: f32[1,128], index: 2, kind: input, shape index: {}]   ;;  %s10655_s3 = inlined_call_operand.vmem [shape: bf16[128,128], index: 3, kind: input, shape index: {}]   ;;  %s10656_s4 = inlined_call_operand.vmem [shape: f32[1,128], index: 4, kind: input, shape index: {}]   ;;  %s10657_s5 = inlined_call_operand.hbm [shape: f32[2,288,128], index: 5, kind: output, shape index: {}]  }
   0x1   :  { %12 = vsyncpa [#allocation3 + $0x1], 0  ;;  %s8347_s18 = smov 0   ;;  %s8349_s19 = smov 0  }
   0x2   :  { %s8351_s20 = smov 0   ;;  %s8353_s21 = smov 0  }
   0x3   :  { %s8355_s22 = smov 0   ;;  %s8357_s23 = smov 0  }
   0x4   :  { %s8359_s24 = smov 0   ;;  %s8361_s25 = smov 0  }
   0x5 LB: > { %s6968_s26 = sadd.s32 4294967295, %s8309_s25   ;;  %s6969_s27 = sadd.s32 4294967294, %s8309_s25   ;;  %s8309_s25 = sphi %s8361_s25, %s18_s25   ;;  %s8305_s24 = sphi %s8359_s24, %s10839_s24   ;;  %s8301_s23 = sphi %s8357_s23, %s10838_s23   ;;  %s8297_s22 = sphi %s8355_s22, %s10837_s22   ;;  %s8293_s21 = sphi %s8353_s21, %s10836_s21   ;;  %s8289_s20 = sphi %s8351_s20, %s10835_s20   ;;  %s8285_s19 = sphi %s8349_s19, %s10834_s19   ;;  %s8281_s18 = sphi %s8347_s18, %s10833_s18  }
   0x6   : > { %s27_s28 = sadd.s32 1, %s8301_s23  ;;  %s30_s29 = sadd.s32 1, %s8305_s24 }
   0x7   : > { %p28_p0 = scmp.ge.s32.totalorder %s27_s28, 2  ;;  %p159_p1 = scmp.ne.s32.totalorder %s8289_s20, %s8285_s19 }
   0x8   : > { %p160_p2 = scmp.eq.s32.totalorder %s6968_s26, 3  ;;  %p165_p5 = scmp.ne.s32.totalorder %s8285_s19, %s8281_s18 }
   0x9   : > { %s10841_s28 = smov (%p28_p0, %s27_s28), 0  ;;  %s10843_s29 = smov (!%p28_p0, %s30_s29), %s8305_s24 }
   0xa   : > { %s145_s30 = ssub.s32 %s8301_s23, %s10841_s28  ;;  %p8398_p3 = por %p160_p2, %p159_p1 }
   0xb   : > { %p32_p4 = scmp.ge.s32.totalorder %s10843_s29, 2  ;;  %p166_p6 = scmp.eq.s32.totalorder %s6969_s27, 3 }
   0xc   : > { %p6972_p7 = scmp.ge.s32.totalorder %s8309_s25, 1  ;;  %p204_p9 = scmp.lt.s32.totalorder %s8309_s25, 5 }
   0xd   : > { %s10845_s29 = smov (%p32_p4, %s10843_s29), 0  ;;  %p8407_p8 = por %p166_p6, %p165_p5 }
   0xe   : > { %s144_s8 = ssub.s32 %s8305_s24, %s10845_s29  ;;  %s149_s9 = sadd.s32 1, %s8289_s20 }
   0xf   : > { %s146_s10 = sor.u32 %s145_s30, %s144_s8  ;;  %p205_p10 = pnand %p6972_p7, %p204_p9 }
  0x10   : > { %p147_p11 = scmp.eq.s32.totalorder %s146_s10, 0 }
  0x11   : > { %208 = sbr.rel (%p205_p10) target bundleno = 834 (0x342), region = 40 }
  0x12   : > { %s8416_s11 = scalar_select %p147_p11, %s8289_s20, %s149_s9  }
  0x16   : > { %v8137_v0 = vld [vmem:[%s10653_s1 + $0x78] sm:$0xff]   ;;  %v10664_v1 = vmov 0.0   ;;  %v8139_v3 = vld [vmem:[%s10653_s1 + $0x70] sm:$0xff]   ;;  %vm8312_vm0 = vmmov 0   ;;  %p232_p12 = scmp.lt.s32.totalorder %s8297_s22, 1  ;;  %v8141_v5 = vld [vmem:[%s10653_s1 + $0x68] sm:$0xff]   ;;  %v304_v9 = vlaneseq }
  0x17   : > { %7538 = vmatprep.subr.bf16.mxu0 %v10664_v1  ;;  %7590 = vmatprep.subr.bf16.mxu1 %v10664_v1  ;;  %v8138_v2 = vld [vmem:[%s10653_s1 + $0x38] sm:$0xff]   ;;  %v8140_v4 = vld [vmem:[%s10653_s1 + $0x30] sm:$0xff]   ;;  %v8142_v6 = vld [vmem:[%s10653_s1 + $0x28] sm:$0xff]   ;;  %s7367_s14 = smul.u32 96, %s8293_s21  ;;  %v8313_v14 = vmov 1966171168  }
  0x18   : > { %7539 = vmatpush3.bf16.msra.mxu0 %v8137_v0  ;;  %7554 = vmatprep.mubr.msk.bf16.mxu0 %vm8312_vm0, %v10664_v1  ;;  %s233_s30 = scalar_select %p232_p12, %s8297_s22, 1  ;;  %v8143_v7 = vld [vmem:[%s10653_s1 + $0x60] sm:$0xff]   ;;  %v8145_v10 = vld [vmem:[%s10653_s1 + $0x58] sm:$0xff]   ;;  %v302_v15 = vunpack.c.l.s4 %v8313_v14  ;;  %v305_v16 = vshrl.u32 %v304_v9, 7  ;;  %v8147_v17 = vld [vmem:[%s10653_s1 + $0x50] sm:$0xff]  }
  0x19   : > { %7591 = vmatpush3.bf16.msra.mxu1 %v8138_v2  ;;  %7540 = vmatprep.subr.bf16.mxu0 %v10664_v1  ;;  %v8144_v8 = vld [vmem:[%s10653_s1 + $0x20] sm:$0xff]   ;;  %v8146_v11 = vld [vmem:[%s10653_s1 + $0x18] sm:$0xff]   ;;  %v8148_v18 = vld [vmem:[%s10653_s1 + $0x10] sm:$0xff]   ;;  %vm1291_vm1 = vsmask.f32 7424  ;;  %s229_s12 = sand.u32 1, %s8285_s19  }
  0x1a   : > { %7592 = vmatprep.subr.bf16.mxu1 %v10664_v1  ;;  %7606 = vmatprep.mubr.msk.bf16.mxu1 %vm8312_vm0, %v10664_v1  ;;  %s8059_s10 = smul.u32 228, %s233_s30  ;;  %v303_v21 = vunpack.c.0.s8 %v302_v15  ;;  %v8149_v28 = vld [vmem:[%s10653_s1 + $0x48] sm:$0xff]   ;;  %v8151_v41 = vld [vmem:[%s10653_s1 + $0x40] sm:$0xff]   ;;  %s10601_s8 = scalar_lea.sflag [#allocation3], %s229_s12 }
  0x1b   : > { %v8150_v29 = vld [vmem:[%s10653_s1 + $0x8] sm:$0xff]   ;;  %v8152_v42 = vld [vmem:[%s10653_s1] sm:$0xff]   ;;  %s8058_s13 = smul.u32 144, %s229_s12 }
  0x1c   : > { %7541 = vmatpush3.bf16.msra.mxu0 %v8139_v3  ;;  %s236_s27 = scalar_lea.vmem %s10652_s0, %s8059_s10  ;;  %v8483_v26 = vsub.s32 %v303_v21, %v305_v16  ;;  %s8060_s16 = smul.u32 36, %s8297_s22 }
  0x1d   : > { %7593 = vmatpush3.bf16.msra.mxu1 %v8140_v4  ;;  %7542 = vmatprep.subr.bf16.mxu0 %v10664_v1  ;;  %s8460_s9 = scalar_lea.vmem %s236_s27, %s7367_s14  ;;  %s10552_s15 = scalar_lea.vmem [#allocation2], %s8058_s13 }
  0x1e   : > { %7594 = vmatprep.subr.bf16.mxu1 %v10664_v1  ;;  %v6977_v12 = vld.sshfl [vmem:[%s8460_s9] sm:$0x33 pattern:$0x75316420]  ;;  %s6874_s14 = smul.u32 18, %s8293_s21  ;;  %s6882_s27 = sshll.u32 %s10552_s15, 4  ;;  %s10595_s27 = int_to_ptr.vmem [resolvable:$true] %s6882_s27 }
  0x1f   : > { %v6978_v13 = vld.sshfl [vmem:[%s8460_s9 + $0x4] sm:$0x33 pattern:$0x75316420]  ;;  %v300_v20 = vcombine.high %v6977_v12, %v6977_v12  ;;  %v8493_v30 = vrot.slane %v6977_v12, %v8483_v26  ;;  %s8217_s13 = scalar_lea.vmem %s10595_s27, 2304 }
  0x20   : > { %7543 = vmatpush3.bf16.msra.mxu0 %v8141_v5  ;;  %v6980_v19 = vld.sshfl [vmem:[%s8460_s9 + $0xc] sm:$0x33 pattern:$0x75316420]  ;;  %v324_v23 = vcombine.high %v6978_v13, %v6978_v13  ;;  %v8499_v32 = vrot.slane %v6978_v13, %v8483_v26  ;;  %s6879_s17 = sadd.s32 %s8060_s16, %s6874_s14  ;;  %p8218_p13 = scmp.ne.s32.totalorder %s10595_s27, %s8217_s13 }
  0x21   : > { %7595 = vmatpush3.bf16.msra.mxu1 %v8142_v6  ;;  %7544 = vmatprep.subr.bf16.mxu0 %v10664_v1  ;;  %v6981_v22 = vld.sshfl [vmem:[%s8460_s9 + $0x10] sm:$0x33 pattern:$0x75316420]  ;;  %v362_v24 = vcombine.high %v6980_v19, %v6980_v19  ;;  %v8496_v31 = vrot.slane %v300_v20, %v8483_v26  ;;  %v8509_v35 = vrot.slane %v6980_v19, %v8483_v26  ;;  %v8158_v20 = vld [vmem:[%s10653_s1 + $0xf8] sm:$0xff]   ;;  %s7364_s26 = sshll.u32 %s6879_s17, 7 }
  0x22   : > { %7596 = vmatprep.subr.bf16.mxu1 %v10664_v1  ;;  %v6979_v25 = vld.sshfl [vmem:[%s8460_s9 + $0x8] sm:$0x1 pattern:$0x75316420]  ;;  %v386_v27 = vcombine.high %v6981_v22, %v6981_v22  ;;  %v8503_v33 = vrot.slane %v324_v23, %v8483_v26  ;;  %v8515_v37 = vrot.slane %v6981_v22, %v8483_v26  ;;  %s10593_s30 = scalar_lea.hbm %s10657_s5, %s7364_s26  ;;  %p8219_p0 = pnand %p8218_p13, %p8398_p3 }
  0x23   : > { %v8506_v34 = vrot.slane %v6979_v25, %v8483_v26  ;;  %v8512_v36 = vrot.slane %v362_v24, %v8483_v26  ;;  %v836_v39 = vcombine.low %v8493_v30, %v8496_v31  ;;  %v7018_v40 = vcombine.high %v8493_v30, %v8496_v31  ;;  %v6982_v50 = vld.sshfl [vmem:[%s8460_s9 + $0x14] sm:$0x1 pattern:$0x75316420] }
  0x24   : > { %7545 = vmatpush3.bf16.msra.mxu0 %v8143_v7  ;;  %v8518_v38 = vrot.slane %v386_v27, %v8483_v26  ;;  %v377_v43 = vcombine.high %v8509_v35, %v8509_v35  ;;  %v838_v45 = vcombine.low %v8499_v32, %v8503_v33  ;;  %v7019_v46 = vcombine.high %v8499_v32, %v8503_v33  ;;  %v6983_v58 = vld.sshfl [vmem:[%s8460_s9 + $0x18] sm:$0x33 pattern:$0x75316420]  ;;  %p8220_p1 = pneg %p8219_p0 }
  0x25   : > { %7597 = vmatpush3.bf16.msra.mxu1 %v8144_v8  ;;  %7546 = vmatprep.subr.bf16.mxu0 %v10664_v1  ;;  %v378_v44 = vcombine.high %v8512_v36, %v8512_v36  ;;  %v401_v47 = vcombine.high %v8515_v37, %v8515_v37  ;;  %v846_v48 = vrot.slane %v836_v39, %v8483_v26  ;;  %v6984_v63 = vld.sshfl [vmem:[%s8460_s9 + $0x1c] sm:$0x33 pattern:$0x75316420] }
  0x26   : > { %7598 = vmatprep.subr.bf16.mxu1 %v10664_v1  ;;  %v853_v49 = vrot.slane %v7018_v40, %v8483_v26  ;;  %v860_v51 = vrot.slane %v838_v45, %v8483_v26  ;;  %v867_v52 = vrot.slane %v7019_v46, %v8483_v26  ;;  %v885_v53 = vcombine.low %v8506_v34, %v8509_v35  ;;  %v6985_v5 = vld.sshfl [vmem:[%s8460_s9 + $0x20] sm:$0x1 pattern:$0x75316420] }
  0x27   : > { %v886_v54 = vcombine.low %v8512_v36, %v377_v43  ;;  %v887_v56 = vcombine.low %v378_v44, %v8515_v37  ;;  %v888_v57 = vcombine.low %v8518_v38, %v401_v47  ;;  %v402_v59 = vcombine.high %v8518_v38, %v8518_v38  ;;  %v6987_v15 = vld.sshfl [vmem:[%s8460_s9 + $0x28] sm:$0x33 pattern:$0x75316420]  ;;  %v8160_v47 = vld [vmem:[%s10653_s1 + $0xf0] sm:$0xff]  }
  0x28   : > { %7547 = vmatpush3.bf16.msra.mxu0 %v8145_v10  ;;  %v868_v55 = vcombine.low %v846_v48, %v853_v49  ;;  %v869_v60 = vcombine.low %v860_v51, %v867_v52  ;;  %v895_v61 = vrot.slane %v885_v53, %v8483_v26  ;;  %v8561_v0 = vrot.slane %v6982_v50, %v8483_v26  ;;  %v6986_v10 = vld.sshfl [vmem:[%s8460_s9 + $0x24] sm:$0x33 pattern:$0x75316420] }
  0x29   : > { %7599 = vmatpush3.bf16.msra.mxu1 %v8146_v11  ;;  %7548 = vmatprep.subr.bf16.mxu0 %v10664_v1  ;;  %v8557_v62 = vrot.slane %v886_v54, %v8483_v26  ;;  %v8565_v3 = vrot.slane %v887_v56, %v8483_v26  ;;  %v8568_v4 = vrot.slane %v888_v57, %v8483_v26  ;;  %v8153_v57 = vld [vmem:[%s10653_s1 + $0xb8] sm:$0xff]  }
  0x2a   : > { %7600 = vmatprep.subr.bf16.mxu1 %v10664_v1  ;;  %v876_v2 = vrot.slane %v868_v55, %v8483_v26  ;;  %v883_v6 = vrot.slane %v869_v60, %v8483_v26  ;;  %v424_v8 = vcombine.high %v6983_v58, %v6983_v58  ;;  %v8575_v9 = vrot.slane %v6983_v58, %v8483_v26 }
  0x2b   : > { %10721 = vst [vmem:[#allocation5_spill] sm:$0xff] %v8557_v62  ;;  %10722 = vst [vmem:[#allocation6_spill] sm:$0xff] %v8565_v3  ;;  %v917_v7 = vcombine.low %v895_v61, %v8557_v62  ;;  %v918_v11 = vcombine.low %v8565_v3, %v8568_v4  ;;  %v448_v12 = vcombine.high %v6984_v63, %v6984_v63 }
  0x2c   : > { %7549 = vmatpush3.bf16.msra.mxu0 %v8147_v17  ;;  %10723 = vst [vmem:[#allocation7_spill] sm:$0xff] %v8568_v4  ;;  %v8582_v13 = vrot.slane %v6984_v63, %v8483_v26  ;;  %v934_v14 = vcombine.low %v402_v59, %v8561_v0  ;;  %v884_v16 = vcombine.low %v876_v2, %v883_v6  ;;  %v8168_v4 = vld [vmem:[%s10653_s1 + $0xc0] sm:$0xff]  }
  0x2d   : > { %7601 = vmatpush3.bf16.msra.mxu1 %v8148_v18  ;;  %7550 = vmatprep.subr.bf16.mxu0 %v10664_v1  ;;  %v925_v17 = vrot.slane %v917_v7, %v8483_v26  ;;  %v8588_v18 = vrot.slane %v424_v8, %v8483_v26  ;;  %v8591_v19 = vrot.slane %v6985_v5, %v8483_v26  ;;  %v6988_v5 = vld.sshfl [vmem:[%s8460_s9 + $0x2c] sm:$0x1 pattern:$0x75316420] }
  0x2e   : > { %7602 = vmatprep.subr.bf16.mxu1 %v10664_v1  ;;  %v932_v21 = vrot.slane %v918_v11, %v8483_v26  ;;  %v8598_v22 = vrot.slane %v448_v12, %v8483_v26  ;;  %v8601_v23 = vrot.slane %v934_v14, %v8483_v26  ;;  %v486_v24 = vcombine.high %v6986_v10, %v6986_v10  ;;  %v8154_v11 = vld [vmem:[%s10653_s1 + $0xb0] sm:$0xff]  }
  0x2f   : > { %v1293_v25 = vshrl.u32 %v884_v16, 16  ;;  %v1295_v27 = vshll.u32 %v884_v16, 16  ;;  %v8624_v46 = vrot.slane %v6987_v15, %v8483_v26  ;;  %v510_v6 = vcombine.high %v6987_v15, %v6987_v15  ;;  %v6989_v14 = vld.sshfl [vmem:[%s8460_s9 + $0x30] sm:$0x33 pattern:$0x75316420] }
  0x30   : > { %7551 = vmatpush3.bf16.msra.mxu0 %v8149_v28  ;;  %10724 = vst [vmem:[#allocation8_spill] sm:$0xff] %v8601_v23  ;;  %v935_v28 = vcombine.low %v8575_v9, %v8588_v18  ;;  %v933_v39 = vcombine.low %v925_v17, %v932_v21  ;;  %v937_v40 = vcombine.low %v8582_v13, %v8598_v22  ;;  %v8161_v15 = vld [vmem:[%s10653_s1 + $0xe8] sm:$0xff]   ;;  %v6990_v21 = vld.sshfl [vmem:[%s8460_s9 + $0x34] sm:$0x33 pattern:$0x75316420] }
  0x31   : > { %7603 = vmatpush3.bf16.msra.mxu1 %v8150_v29  ;;  %7552 = vmatprep.subr.bf16.mxu0 %v10664_v1  ;;  %v7020_v29 = vcombine.high %v8575_v9, %v8588_v18  ;;  %v1297_v43 = vrot.slane %v1295_v27, 1  ;;  %v7021_v55 = vcombine.high %v8582_v13, %v8598_v22  ;;  %v525_v27 = vcombine.high %v8624_v46, %v8624_v46 }
  0x32   : > { %7604 = vmatprep.subr.bf16.mxu1 %v10664_v1  ;;  %v8618_v44 = vrot.slane %v935_v28, %v8483_v26  ;;  %v1300_v48 = vshll.u32 %v933_v39, 16  ;;  %v8630_v49 = vrot.slane %v937_v40, %v8483_v26  ;;  %v1304_v50 = vshrl.u32 %v933_v39, 16  ;;  %v6991_v28 = vld.sshfl [vmem:[%s8460_s9 + $0x38] sm:$0x1 pattern:$0x75316420] }
  0x33   : > { %v8621_v45 = vrot.slane %v7020_v29, %v8483_v26  ;;  %v1298_v52 = vor.u32 %v1297_v43, %v1293_v25  ;;  %v8652_v2 = vrot.slane %v7021_v55, %v8483_v26  ;;  %v8693_v40 = vrot.slane %v6988_v5, %v8483_v26 }
  0x34   : > { %7553 = vmatpush3.bf16.msra.mxu0 %v8151_v41  ;;  %v8612_v41 = vrot.slane %v6986_v10, %v8483_v26  ;;  %10725 = vst [vmem:[#allocation9_spill] sm:$0xff] %v8618_v44  ;;  %10727 = vst [vmem:[#allocation11_spill] sm:$0xff] %v8630_v49  ;;  %v966_v53 = vcombine.low %v8601_v23, %v8618_v44  ;;  %v1302_v56 = vrot.slane %v1300_v48, 1 }
  0x35   : > { %7605 = vmatpush3.bf16.msra.mxu1 %v8152_v42  ;;  %7642 = vmatprep.subr.bf16.mxu0 %v10664_v1  ;;  %v8615_v42 = vrot.slane %v486_v24, %v8483_v26  ;;  %10726 = vst [vmem:[#allocation10_spill] sm:$0xff] %v8621_v45  ;;  %v967_v58 = vcombine.low %v8621_v45, %v8630_v49  ;;  %10728 = vst [vmem:[#allocation12_spill] sm:$0xff] %v8652_v2 }
  0x36   : > { %7694 = vmatprep.subr.bf16.mxu1 %v10664_v1  ;;  %v501_v51 = vcombine.high %v8612_v41, %v8612_v41  ;;  %v984_v59 = vcombine.low %v8591_v19, %v8612_v41  ;;  %v974_v61 = vrot.slane %v966_v53, %v8483_v26  ;;  %v1303_v7 = vsel %vm1291_vm1, %v1298_v52, %v1302_v56 }
  0x37   : > { %v502_v54 = vcombine.high %v8615_v42, %v8615_v42  ;;  %v981_v8 = vrot.slane %v967_v58, %v8483_v26  ;;  %v1306_v10 = vor.u32 %v1304_v50, %v1302_v56  ;;  %7555 = vmatmul.mubr.bf16.vlgmr.msra.gmra.mxu0 %v1303_v7  ;;  %v548_v50 = vcombine.high %v6989_v14, %v6989_v14  ;;  %v6992_v56 = vld.sshfl [vmem:[%s8460_s9 + $0x3c] sm:$0x33 pattern:$0x75316420]  ;;  %v8155_v58 = vld [vmem:[%s10653_s1 + $0xa8] sm:$0xff]  }
  0x38   : > { %7607 = vmatmul.mubr.bf16.vlgmr.msra.gmra.mxu1 %v884_v16  ;;  %v985_v60 = vcombine.low %v8615_v42, %v501_v51  ;;  %v8661_v12 = vrot.slane %v984_v59, %v8483_v26  ;;  %7643 = vmatpush3.bf16.msra.mxu0 %v8153_v57  ;;  %v8163_v51 = vld [vmem:[%s10653_s1 + $0xe0] sm:$0xff]   ;;  %v8701_v53 = vrot.slane %v6989_v14, %v8483_v26 }
  0x39   : > { %7610 = vmatprep.mubr.msk.bf16.mxu1 %vm8312_vm0, %v10664_v1  ;;  %7695 = vmatpush3.bf16.msra.mxu1 %v8158_v20  ;;  %v986_v63 = vcombine.low %v502_v54, %v8624_v46  ;;  %v8675_v20 = vrot.slane %v510_v6, %v8483_v26  ;;  %v982_v24 = vcombine.low %v974_v61, %v981_v8  ;;  %v6993_v8 = vld.sshfl [vmem:[%s8460_s9 + $0x40] sm:$0x33 pattern:$0x75316420] }
  0x3a   : > { %7696 = vmatprep.subr.bf16.mxu1 %v10664_v1  ;;  %10729 = vst [vmem:[#allocation13_spill] sm:$0xff] %v8661_v12  ;;  %v8669_v16 = vrot.slane %v985_v60, %v8483_v26  ;;  %7558 = vmatprep.mubr.msk.bf16.mxu0 %vm8312_vm0, %v10664_v1  ;;  %v1015_v25 = vcombine.low %v8652_v2, %v8661_v12  ;;  %v10740_v12 = vmov 0.0  }
  0x3b   : > { %v8672_v17 = vrot.slane %v986_v63, %v8483_v26  ;;  %7644 = vmatprep.subr.bf16.mxu0 %v10664_v1  ;;  %v1308_v43 = vshll.u32 %v982_v24, 16  ;;  %v1312_v48 = vshrl.u32 %v982_v24, 16  ;;  %v1032_v54 = vcombine.low %v8675_v20, %v525_v27 }
  0x3c   : > { %10730 = vst [vmem:[#allocation14_spill] sm:$0xff] %v8669_v16  ;;  %7645 = vmatpush3.bf16.msra.mxu0 %v8154_v11  ;;  %v8711_v59 = vrot.slane %v548_v50, %v8483_v26  ;;  %v572_v60 = vcombine.high %v6990_v21, %v6990_v21  ;;  %v8714_v61 = vrot.slane %v6990_v21, %v8483_v26 }
  0x3d   : > { %7697 = vmatpush3.bf16.msra.mxu1 %v8160_v47  ;;  %10731 = vst [vmem:[#allocation15_spill] sm:$0xff] %v8672_v17  ;;  %v1016_v29 = vcombine.low %v8669_v16, %v8672_v17  ;;  %v1023_v47 = vrot.slane %v1015_v25, %v8483_v26  ;;  %v1310_v57 = vrot.slane %v1308_v43, 1  ;;  %7646 = vmatprep.subr.bf16.mxu0 %v10664_v1  ;;  %v6998_v16 = vld.sshfl [vmem:[%s8460_s9 + $0x54] sm:$0x33 pattern:$0x75316420] }
  0x3e   : > { %7698 = vmatprep.subr.bf16.mxu1 %v10664_v1  ;;  %v8718_v5 = vrot.slane %v1032_v54, %v8483_v26  ;;  %v8724_v7 = vrot.slane %v6991_v28, %v8483_v26  ;;  %v7022_v21 = vcombine.high %v8701_v53, %v8711_v59  ;;  %v6994_v54 = vld.sshfl [vmem:[%s8460_s9 + $0x44] sm:$0x1 pattern:$0x75316420]  ;;  %v734_v45 = vcombine.high %v6998_v16, %v6998_v16 }
  0x3f   : > { %v1030_v52 = vrot.slane %v1016_v29, %v8483_v26  ;;  %v1311_v11 = vsel %vm1291_vm1, %v1306_v10, %v1310_v57  ;;  %v1314_v14 = vor.u32 %v1312_v48, %v1310_v57  ;;  %v8156_v10 = vld [vmem:[%s10653_s1 + $0xa0] sm:$0xff]   ;;  %v8738_v29 = vrot.slane %v572_v60, %v8483_v26 }
  0x40   : > { %7611 = vmatmul.mubr.bf16.gmra.mxu1 %v933_v39  ;;  %v526_v39 = vcombine.high %v8675_v20, %v8675_v20  ;;  %10732 = vst [vmem:[#allocation16_spill] sm:$0xff] %v8718_v5  ;;  %7559 = vmatmul.mubr.bf16.gmra.mxu0 %v1311_v11  ;;  %v8749_v43 = vrot.slane %v7022_v21, %v8483_v26 }
  0x41   : > { %7614 = vmatprep.mubr.msk.bf16.mxu1 %vm8312_vm0, %v10664_v1  ;;  %7699 = vmatpush3.bf16.msra.mxu1 %v8161_v15  ;;  %v1031_v63 = vcombine.low %v1023_v47, %v1030_v52  ;;  %v1034_v15 = vcombine.low %v8701_v53, %v8711_v59  ;;  %v610_v47 = vcombine.high %v6992_v56, %v6992_v56 }
  0x42   : > { %v1033_v55 = vcombine.low %v526_v39, %v8693_v40  ;;  %7700 = vmatprep.subr.bf16.mxu1 %v10664_v1  ;;  %v8164_v39 = vld [vmem:[%s10653_s1 + $0xd8] sm:$0xff]   ;;  %7562 = vmatprep.mubr.msk.bf16.mxu0 %vm8312_vm0, %v10664_v1  ;;  %10735 = vst [vmem:[#allocation19_spill] sm:$0xff] %v8749_v43  ;;  %v1081_v52 = vcombine.low %v8714_v61, %v8738_v29 }
  0x43   : > { %v1316_v25 = vshll.u32 %v1031_v63, 16  ;;  %v1320_v28 = vshrl.u32 %v1031_v63, 16  ;;  %7647 = vmatpush3.bf16.msra.mxu0 %v8155_v58  ;;  %v8765_v58 = vrot.slane %v610_v47, %v8483_v26  ;;  %v7023_v60 = vcombine.high %v8714_v61, %v8738_v29 }
  0x44   : > { %v8721_v6 = vrot.slane %v1033_v55, %v8483_v26  ;;  %7648 = vmatprep.subr.bf16.mxu0 %v10664_v1  ;;  %v6995_v55 = vld.sshfl [vmem:[%s8460_s9 + $0x48] sm:$0x33 pattern:$0x75316420]  ;;  %v634_v11 = vcombine.high %v6993_v8, %v6993_v8  ;;  %v8777_v47 = vrot.slane %v1081_v52, %v8483_v26  ;;  %v8921_v23 = vrot.slane %v734_v45, %v8483_v26 }
  0x45   : > { %7701 = vmatpush3.bf16.msra.mxu1 %v8163_v51  ;;  %v1318_v48 = vrot.slane %v1316_v25, 1  ;;  %v8756_v51 = vrot.slane %v6992_v56, %v8483_v26 }
  0x46   : > { %10733 = vst [vmem:[#allocation17_spill] sm:$0xff] %v8721_v6  ;;  %v1064_v27 = vcombine.low %v8718_v5, %v8721_v6  ;;  %7702 = vmatprep.subr.bf16.mxu1 %v10664_v1  ;;  %10736 = vst [vmem:[#allocation20_spill] sm:$0xff] %v8777_v47  ;;  %v8796_v52 = vrot.slane %v634_v11, %v8483_v26  ;;  %v672_v6 = vcombine.high %v6995_v55, %v6995_v55 }
  0x47   : > { %v1319_v56 = vsel %vm1291_vm1, %v1314_v14, %v1318_v48  ;;  %v625_v21 = vcombine.high %v8756_v51, %v8756_v51  ;;  %v1083_v25 = vcombine.low %v8724_v7, %v8756_v51  ;;  %7649 = vmatpush3.bf16.msra.mxu0 %v8156_v10  ;;  %v626_v14 = vcombine.high %v8765_v58, %v8765_v58  ;;  %v8157_v10 = vld [vmem:[%s10653_s1 + $0x98] sm:$0xff]  }
  0x48   : > { %7615 = vmatmul.mubr.bf16.gmra.mxu1 %v982_v24  ;;  %v8746_v24 = vrot.slane %v1034_v15, %v8483_v26  ;;  %v1072_v50 = vrot.slane %v1064_v27, %v8483_v26  ;;  %v1322_v15 = vor.u32 %v1320_v28, %v1318_v48  ;;  %7650 = vmatprep.subr.bf16.mxu0 %v10664_v1 }
  0x49   : > { %7618 = vmatprep.mubr.msk.bf16.mxu1 %vm8312_vm0, %v10664_v1  ;;  %7703 = vmatpush3.bf16.msra.mxu1 %v8164_v39  ;;  %v1084_v28 = vcombine.low %v8765_v58, %v625_v21  ;;  %v8786_v48 = vrot.slane %v1083_v25, %v8483_v26  ;;  %v8793_v39 = vrot.slane %v6993_v8, %v8483_v26 }
  0x4a   : > { %10734 = vst [vmem:[#allocation18_spill] sm:$0xff] %v8746_v24  ;;  %v1065_v57 = vcombine.low %v8746_v24, %v8749_v43  ;;  %v8780_v43 = vrot.slane %v7023_v60, %v8483_v26  ;;  %v8802_v25 = vrot.slane %v6994_v54, %v8483_v26  ;;  %7704 = vmatprep.subr.bf16.mxu1 %v10664_v1  ;;  %v8165_v24 = vld [vmem:[%s10653_s1 + $0xd0] sm:$0xff]  }
  0x4b   : > { %10738 = vst [vmem:[#allocation22_spill] sm:$0xff] %v8786_v48  ;;  %7563 = vmatmul.mubr.bf16.gmra.mxu0 %v1319_v56  ;;  %v8809_v8 = vrot.slane %v1084_v28, %v8483_v26  ;;  %v650_v54 = vcombine.high %v8796_v52, %v8796_v52  ;;  %v8159_v28 = vld [vmem:[%s10653_s1 + $0x90] sm:$0xff]   ;;  %v1130_v17 = vcombine.low %v626_v14, %v8793_v39 }
  0x4c   : > { %v1079_v27 = vrot.slane %v1065_v57, %v8483_v26  ;;  %10737 = vst [vmem:[#allocation21_spill] sm:$0xff] %v8780_v43  ;;  %v6996_v57 = vld.sshfl [vmem:[%s8460_s9 + $0x4c] sm:$0x33 pattern:$0x75316420]  ;;  %v1113_v21 = vcombine.low %v8777_v47, %v8780_v43  ;;  %7566 = vmatprep.mubr.msk.bf16.mxu0 %vm8312_vm0, %v10664_v1  ;;  %7651 = vmatpush3.bf16.msra.mxu0 %v8157_v10 }
  0x4d   : > { %10739 = vst [vmem:[#allocation23_spill] sm:$0xff] %v8809_v8  ;;  %v1114_v43 = vcombine.low %v8786_v48, %v8809_v8  ;;  %v8829_v47 = vrot.slane %v672_v6, %v8483_v26  ;;  %7652 = vmatprep.subr.bf16.mxu0 %v10740_v12  ;;  %v696_v49 = vcombine.high %v6996_v57, %v6996_v57 }
  0x4e   : > { %v1080_v60 = vcombine.low %v1072_v50, %v1079_v27  ;;  %v649_v50 = vcombine.high %v8793_v39, %v8793_v39  ;;  %v8821_v27 = vrot.slane %v6995_v55, %v8483_v26  ;;  %v1132_v55 = vcombine.low %v650_v54, %v8802_v25  ;;  %7705 = vmatpush3.bf16.msra.mxu1 %v8165_v24 }
  0x4f   : > { %v8838_v2 = vrot.slane %v6996_v57, %v8483_v26  ;;  %v1128_v6 = vrot.slane %v1114_v43, %v8483_v26  ;;  %v8844_v10 = vrot.slane %v1130_v17, %v8483_v26  ;;  %7706 = vmatprep.subr.bf16.mxu1 %v10740_v12  ;;  %v8855_v24 = vrot.slane %v696_v49, %v8483_v26  ;;  %v8162_v43 = vld [vmem:[%s10653_s1 + $0x88] sm:$0xff]  }
  0x50   : > { %7619 = vmatmul.mubr.bf16.gmra.mxu1 %v1031_v63  ;;  %v1324_v11 = vshll.u32 %v1080_v60, 16  ;;  %v1121_v63 = vrot.slane %v1113_v21, %v8483_v26  ;;  %v1328_v56 = vshrl.u32 %v1080_v60, 16  ;;  %v6997_v21 = vld.sshfl [vmem:[%s8460_s9 + $0x50] sm:$0x1 pattern:$0x75316420]  ;;  %v1133_v14 = vcombine.low %v8821_v27, %v8829_v47  ;;  %7653 = vmatpush3.bf16.msra.mxu0 %v8159_v28 }
  0x51   : > { %7622 = vmatprep.mubr.msk.bf16.mxu1 %vm8312_vm0, %v10664_v1  ;;  %v1131_v1 = vcombine.low %v8796_v52, %v649_v50  ;;  %10741 = vst [vmem:[#allocation24_spill] sm:$0xff] %v8844_v10  ;;  %v8852_v57 = vrot.slane %v1132_v55, %v8483_v26  ;;  %v8167_v49 = vld [vmem:[%s10653_s1 + $0xc8] sm:$0xff]   ;;  %v1180_v55 = vcombine.low %v8838_v2, %v8855_v24 }
  0x52   : > { %v1326_v5 = vrot.slane %v1324_v11, 1  ;;  %v1129_v17 = vcombine.low %v1121_v63, %v1128_v6  ;;  %v8861_v8 = vrot.slane %v1133_v14, %v8483_v26  ;;  %v7024_v63 = vcombine.high %v8821_v27, %v8829_v47  ;;  %7654 = vmatprep.subr.bf16.mxu0 %v10740_v12  ;;  %7707 = vmatpush3.bf16.msra.mxu1 %v8167_v49 }
  0x53   : > { %v8847_v50 = vrot.slane %v1131_v1, %v8483_v26  ;;  %10743 = vst [vmem:[#allocation26_spill] sm:$0xff] %v8852_v57  ;;  %v7025_v28 = vcombine.high %v8838_v2, %v8855_v24  ;;  %7708 = vmatprep.subr.bf16.mxu1 %v10740_v12 }
  0x54   : > { %v1327_v54 = vsel %vm1291_vm1, %v1322_v15, %v1326_v5  ;;  %v1330_v11 = vor.u32 %v1328_v56, %v1326_v5  ;;  %10744 = vst [vmem:[#allocation27_spill] sm:$0xff] %v8861_v8  ;;  %v8866_v5 = vrot.slane %v6997_v21, %v8483_v26  ;;  %v6999_v15 = vld.sshfl [vmem:[%s8460_s9 + $0x58] sm:$0x33 pattern:$0x75316420]  ;;  %v8873_v56 = vrot.slane %v6998_v16, %v8483_v26 }
  0x55   : > { %10742 = vst [vmem:[#allocation25_spill] sm:$0xff] %v8847_v50  ;;  %v1162_v1 = vcombine.low %v8844_v10, %v8847_v50  ;;  %7567 = vmatmul.mubr.bf16.gmra.mxu0 %v1327_v54  ;;  %v1332_v21 = vshll.u32 %v1129_v17, 16  ;;  %v1163_v6 = vcombine.low %v8852_v57, %v8861_v8  ;;  %v1336_v50 = vshrl.u32 %v1129_v17, 16  ;;  %v8166_v10 = vld [vmem:[%s10653_s1 + $0x80] sm:$0xff]  }
  0x56   : > { %7570 = vmatprep.mubr.msk.bf16.mxu0 %vm8312_vm0, %v10740_v12  ;;  %v1182_v54 = vcombine.low %v8866_v5, %v8873_v56  ;;  %v7000_v57 = vld.sshfl [vmem:[%s8460_s9 + $0x5c] sm:$0x1 pattern:$0x75316420]  ;;  %v8903_v44 = vrot.slane %v7025_v28, %v8483_v26  ;;  %7655 = vmatpush3.bf16.msra.mxu0 %v8162_v43 }
  0x57   : > { %v1170_v14 = vrot.slane %v1162_v1, %v8483_v26  ;;  %v8898_v1 = vrot.slane %v1180_v55, %v8483_v26  ;;  %v1334_v8 = vrot.slane %v1332_v21, 1  ;;  %v1177_v48 = vrot.slane %v1163_v6, %v8483_v26  ;;  %7656 = vmatprep.subr.bf16.mxu0 %v10740_v12  ;;  %v8917_v28 = vld.sshfl [vmem:[%s8460_s9 + $0x60] sm:$0x33 pattern:$0x75316420]  ;;  %7709 = vmatpush3.bf16.msra.mxu1 %v8168_v4 }
  0x58   : > { %7623 = vmatmul.mubr.bf16.gmra.mxu1 %v1080_v60  ;;  %v8895_v60 = vrot.slane %v7024_v63, %v8483_v26  ;;  %10747 = vst [vmem:[#allocation30_spill] sm:$0xff] %v8903_v44  ;;  %v8909_v63 = vrot.slane %v1182_v54, %v8483_v26  ;;  %v749_v21 = vcombine.high %v8873_v56, %v8873_v56  ;;  %10749 = vst [vmem:[#allocation32_spill] sm:$0xff] %v8917_v28 }
  0x59   : > { %7626 = vmatprep.mubr.msk.bf16.mxu1 %vm8312_vm0, %v10740_v12  ;;  %10746 = vst [vmem:[#allocation29_spill] sm:$0xff] %v8898_v1  ;;  %v758_v6 = vcombine.high %v6999_v15, %v6999_v15  ;;  %v1335_v16 = vsel %vm1291_vm1, %v1330_v11, %v1334_v8  ;;  %v1178_v43 = vcombine.low %v1170_v14, %v1177_v48 }
  0x5a   : > { %10745 = vst [vmem:[#allocation28_spill] sm:$0xff] %v8895_v60  ;;  %10748 = vst [vmem:[#allocation31_spill] sm:$0xff] %v8909_v63  ;;  %v1211_v55 = vcombine.low %v8895_v60, %v8898_v1  ;;  %v1338_v49 = vor.u32 %v1336_v50, %v1334_v8  ;;  %v1212_v54 = vcombine.low %v8903_v44, %v8909_v63  ;;  %7657 = vmatpush3.bf16.msra.mxu0 %v8166_v10 }
  0x5b   : > { %v8928_v60 = vrot.slane %v6999_v15, %v8483_v26  ;;  %v8931_v62 = vrot.slane %v758_v6, %v8483_v26  ;;  %v1340_v3 = vshll.u32 %v1178_v43, 16  ;;  %v1344_v11 = vshrl.u32 %v1178_v43, 16  ;;  %7746 = vmatprep.subr.bf16.mxu0 %v10740_v12  ;;  %7798 = vmatprep.subr.bf16.mxu1 %v10740_v12 }
  0x5c   : > { %v1219_v1 = vrot.slane %v1211_v55, %v8483_v26  ;;  %v750_v48 = vcombine.high %v8921_v23, %v8921_v23  ;;  %v8936_v45 = vrot.slane %v7000_v57, %v8483_v26  ;;  %v1226_v8 = vrot.slane %v1212_v54, %v8483_v26 }
  0x5d   : > { %v773_v50 = vcombine.high %v8928_v60, %v8928_v60  ;;  %v774_v15 = vcombine.high %v8931_v62, %v8931_v62  ;;  %v1228_v14 = vcombine.low %v8921_v23, %v749_v21  ;;  %7571 = vmatmul.mubr.bf16.gmra.mxu0 %v1335_v16  ;;  %v1342_v55 = vrot.slane %v1340_v3, 1 }
  0x5e   : > { %10750 = vst [vmem:[#allocation33_spill] sm:$0xff] %v8936_v45  ;;  %v1229_v57 = vcombine.low %v750_v48, %v8928_v60  ;;  %v8948_v4 = vrot.slane %v8917_v28, %v8483_v26  ;;  %v315_v10 = vcombine.high %v8493_v30, %v8493_v30  ;;  %7574 = vmatprep.mubr.msk.bf16.mxu0 %vm8312_vm0, %v10740_v12 }
  0x5f   : > { %v1227_v21 = vcombine.low %v1219_v1, %v1226_v8  ;;  %v1230_v6 = vcombine.low %v8931_v62, %v773_v50  ;;  %v1231_v3 = vcombine.low %v774_v15, %v8936_v45  ;;  %v1346_v16 = vor.u32 %v1344_v11, %v1342_v55 }
  0x60   : > { %7627 = vmatmul.mubr.bf16.gmra.mxu1 %v1129_v17  ;;  %v1343_v17 = vsel %vm1291_vm1, %v1338_v49, %v1342_v55  ;;  %v8960_v54 = vrot.slane %v1228_v14, %v8483_v26  ;;  %v8963_v48 = vrot.slane %v1229_v57, %v8483_v26  ;;  %v1283_v11 = vrot.slane %v8948_v4, %v8483_v26 }
  0x61   : > { %7630 = vmatprep.mubr.msk.bf16.mxu1 %vm8312_vm0, %v10740_v12  ;;  %v1348_v30 = vshll.u32 %v1227_v21, 16  ;;  %v8967_v63 = vrot.slane %v1230_v6, %v8483_v26  ;;  %v8970_v1 = vrot.slane %v1231_v3, %v8483_v26  ;;  %v1352_v8 = vshrl.u32 %v1227_v21, 16 }
  0x62   : > { %10751 = vst [vmem:[#allocation34_spill] sm:$0xff] %v8960_v54  ;;  %10752 = vst [vmem:[#allocation35_spill] sm:$0xff] %v8963_v48  ;;  %v1260_v49 = vcombine.low %v8960_v54, %v8963_v48  ;;  %v316_v50 = vcombine.high %v8496_v31, %v8496_v31  ;;  %v339_v15 = vcombine.high %v8499_v32, %v8499_v32 }
  0x63   : > { %10753 = vst [vmem:[#allocation36_spill] sm:$0xff] %v8967_v63  ;;  %10754 = vst [vmem:[#allocation37_spill] sm:$0xff] %v8970_v1  ;;  %v1350_v14 = vrot.slane %v1348_v30, 1  ;;  %v1261_v55 = vcombine.low %v8967_v63, %v8970_v1  ;;  %v340_v57 = vcombine.high %v8503_v33, %v8503_v33  ;;  %v1709_v6 = vcombine.low %v8496_v31, %v315_v10 }
  0x64   : > { %v1268_v3 = vrot.slane %v1260_v49, %v8483_v26  ;;  %v1290_v48 = vrot.slane %v1283_v11, %v8483_v26  ;;  %v1710_v54 = vcombine.low %v316_v50, %v8499_v32  ;;  %v1711_v44 = vcombine.low %v8503_v33, %v339_v15 }
  0x65   : > { %v1351_v28 = vsel %vm1291_vm1, %v1346_v16, %v1350_v14  ;;  %v1275_v30 = vrot.slane %v1261_v55, %v8483_v26  ;;  %v1354_v45 = vor.u32 %v1352_v8, %v1350_v14  ;;  %v1712_v1 = vcombine.low %v340_v57, %v8506_v34  ;;  %7575 = vmatmul.mubr.bf16.gmra.mxu0 %v1343_v17 }
  0x66   : > { %v1364_v63 = vshll.u32 %v1290_v48, 16  ;;  %v1719_v31 = vrot.slane %v1709_v6, %v8483_v26  ;;  %v1726_v10 = vrot.slane %v1710_v54, %v8483_v26  ;;  %v1733_v49 = vrot.slane %v1711_v44, %v8483_v26  ;;  %7578 = vmatprep.mubr.msk.bf16.mxu0 %vm8312_vm0, %v10740_v12 }
  0x67   : > { %v1276_v32 = vcombine.low %v1268_v3, %v1275_v30  ;;  %v1740_v33 = vrot.slane %v1712_v1, %v8483_v26  ;;  %v2911_v34 = vcombine.low %v8509_v35, %v8512_v36  ;;  %v7142_v16 = vcombine.high %v8509_v35, %v8512_v36 }
  0x68   : > { %7631 = vmatmul.mubr.bf16.gmra.mxu1 %v1178_v43  ;;  %v1366_v43 = vrot.slane %v1364_v63, 1  ;;  %v1741_v17 = vcombine.low %v1719_v31, %v1726_v10  ;;  %v2913_v44 = vcombine.low %v8515_v37, %v8518_v38  ;;  %v7143_v11 = vcombine.high %v8515_v37, %v8518_v38 }
  0x69   : > { %7634 = vmatprep.mubr.msk.bf16.mxu1 %vm8312_vm0, %v10740_v12  ;;  %v1356_v54 = vshll.u32 %v1276_v32, 16  ;;  %v1360_v48 = vshrl.u32 %v1276_v32, 16  ;;  %v1742_v8 = vcombine.low %v1733_v49, %v1740_v33  ;;  %v2921_v1 = vrot.slane %v2911_v34, %v8483_v26 }
  0x6a   : > { %v1749_v50 = vrot.slane %v1741_v17, %v8483_v26  ;;  %v2928_v15 = vrot.slane %v7142_v16, %v8483_v26  ;;  %v2935_v63 = vrot.slane %v2913_v44, %v8483_v26  ;;  %v2942_v36 = vrot.slane %v7143_v11, %v8483_v26 }
  0x6b   : > { %v1358_v14 = vrot.slane %v1356_v54, 1  ;;  %v1756_v35 = vrot.slane %v1742_v8, %v8483_v26  ;;  %v2468_v31 = vcombine.high %v8575_v9, %v8575_v9  ;;  %v2469_v10 = vcombine.high %v8588_v18, %v8588_v18 }
  0x6c   : > { %v2943_v55 = vcombine.low %v2921_v1, %v2928_v15  ;;  %v2944_v3 = vcombine.low %v2935_v63, %v2942_v36  ;;  %v2593_v36 = vcombine.high %v8711_v59, %v8711_v59 }
  0x6d   : > { %v1362_v57 = vor.u32 %v1360_v48, %v1358_v14  ;;  %v9014_v6 = vcombine.low %v1749_v50, %v1756_v35  ;;  %7579 = vmatmul.mubr.bf16.gmra.mxu0 %v1351_v28  ;;  %v1359_v37 = vsel %vm1291_vm1, %v1354_v45, %v1358_v14  ;;  %v2960_v45 = vcombine.low %v8561_v0, %v8575_v9 }
  0x6e   : > { %7582 = vmatprep.mubr.msk.bf16.mxu0 %vm8312_vm0, %v10740_v12  ;;  %v2951_v38 = vrot.slane %v2943_v55, %v8483_v26  ;;  %v2958_v28 = vrot.slane %v2944_v3, %v8483_v26  ;;  %v2961_v49 = vcombine.low %v8588_v18, %v2468_v31  ;;  %v2962_v33 = vcombine.low %v2469_v10, %v8582_v13  ;;  %v8176_v55 = vld [vmem:[%s10653_s1 + $0x170] sm:$0xff]   ;;  %v8169_v31 = vld [vmem:[%s10653_s1 + $0x138] sm:$0xff]  }
  0x6f   : > { %v1367_v30 = vsel %vm1291_vm1, %v1362_v57, %v1366_v43  ;;  %v2970_v43 = vrot.slane %v2960_v45, %v8483_v26  ;;  %v3010_v18 = vcombine.low %v8612_v41, %v8615_v42  ;;  %v7144_v48 = vcombine.high %v8612_v41, %v8615_v42  ;;  %v8174_v41 = vld [vmem:[%s10653_s1 + $0x178] sm:$0xff]   ;;  %v8170_v45 = vld [vmem:[%s10653_s1 + $0x130] sm:$0xff]  }
  0x70   : > { %7635 = vmatmul.mubr.bf16.gmra.mxu1 %v1227_v21  ;;  %v2492_v21 = vcombine.high %v8582_v13, %v8582_v13  ;;  %v2977_v17 = vrot.slane %v2961_v49, %v8483_v26  ;;  %v2984_v16 = vrot.slane %v2962_v33, %v8483_v26  ;;  %v9043_v9 = vcombine.low %v2951_v38, %v2958_v28 }
  0x71   : > { %7638 = vmatprep.mubr.msk.bf16.mxu1 %vm8312_vm0, %v10740_v12  ;;  %v2493_v13 = vcombine.high %v8598_v22, %v8598_v22  ;;  %v3033_v1 = vrot.slane %v7144_v48, %v8483_v26  ;;  %v3026_v63 = vrot.slane %v3010_v18, %v8483_v26  ;;  %v2592_v35 = vcombine.high %v8701_v53, %v8701_v53 }
  0x72   : > { %v2963_v34 = vcombine.low %v8598_v22, %v2492_v21  ;;  %v2992_v54 = vcombine.low %v2970_v43, %v2977_v17  ;;  %v7145_v57 = vcombine.high %v8624_v46, %v8675_v20  ;;  %v3059_v3 = vcombine.low %v8693_v40, %v8701_v53 }
  0x73   : > { %v3009_v8 = vcombine.low %v2493_v13, %v8591_v19  ;;  %v3060_v38 = vcombine.low %v8711_v59, %v2592_v35  ;;  %v8177_v59 = vld [vmem:[%s10653_s1 + $0x168] sm:$0xff]   ;;  %v3566_v49 = vshll.u32 %v9043_v9, 16  ;;  %v2617_v17 = vcombine.high %v8738_v29, %v8738_v29 }
  0x74   : > { %v2991_v44 = vrot.slane %v2963_v34, %v8483_v26  ;;  %v3000_v11 = vrot.slane %v2992_v54, %v8483_v26  ;;  %v3068_v10 = vrot.slane %v7145_v57, %v8483_v26  ;;  %v3075_v28 = vrot.slane %v3059_v3, %v8483_v26  ;;  %v8179_v54 = vld [vmem:[%s10653_s1 + $0x160] sm:$0xff]   ;;  %v8171_v13 = vld [vmem:[%s10653_s1 + $0x128] sm:$0xff]  }
  0x75   : > { %7583 = vmatmul.mubr.bf16.gmra.mxu0 %v1359_v37  ;;  %v3019_v22 = vrot.slane %v3009_v8, %v8483_v26  ;;  %v2616_v34 = vcombine.high %v8714_v61, %v8714_v61  ;;  %v3108_v18 = vcombine.low %v2617_v17, %v8724_v7  ;;  %v8180_v7 = vld [vmem:[%s10653_s1 + $0x158] sm:$0xff]   ;;  %v8178_v17 = vld [vmem:[%s10653_s1 + $0x108] sm:$0xff]  }
  0x76   : > { %7586 = vmatprep.mubr.msk.bf16.mxu0 %vm8312_vm0, %v10740_v12  ;;  %v2993_v0 = vcombine.low %v2984_v16, %v2991_v44  ;;  %v3090_v53 = vcombine.low %v3068_v10, %v3075_v28  ;;  %v3109_v16 = vcombine.low %v8756_v51, %v8765_v58  ;;  %v7146_v44 = vcombine.high %v8756_v51, %v8765_v58 }
  0x77   : > { %v3041_v14 = vcombine.low %v3019_v22, %v3026_v63  ;;  %v2716_v63 = vcombine.high %v8821_v27, %v8821_v27 }
  0x78   : > { %7639 = vmatmul.mubr.bf16.gmra.mxu1 %v1276_v32  ;;  %v3012_v32 = vcombine.low %v8624_v46, %v8675_v20  ;;  %v3007_v50 = vrot.slane %v2993_v0, %v8483_v26  ;;  %v3082_v20 = vrot.slane %v3060_v38, %v8483_v26  ;;  %v3131_v51 = vrot.slane %v3109_v16, %v8483_v26  ;;  %v8183_v16 = vld [vmem:[%s10653_s1 + $0x148] sm:$0xff]  }
  0x79   : > { %7710 = vmatprep.mubr.msk.bf16.mxu1 %vm8312_vm0, %v10740_v12  ;;  %v3049_v46 = vrot.slane %v3041_v14, %v8483_v26  ;;  %v3138_v58 = vrot.slane %v7146_v44, %v8483_v26  ;;  %v3158_v14 = vcombine.low %v8802_v25, %v8821_v27 }
  0x7a   : > { %v3040_v15 = vrot.slane %v3012_v32, %v8483_v26  ;;  %v9068_v42 = vcombine.low %v3000_v11, %v3007_v50  ;;  %v3564_v11 = vshrl.u32 %v9043_v9, 16  ;;  %v8172_v50 = vld [vmem:[%s10653_s1 + $0x120] sm:$0xff]  }
  0x7b   : > { %v3140_v8 = vcombine.low %v3131_v51, %v3138_v58  ;;  %v3255_v51 = vcombine.low %v8928_v60, %v8931_v62  ;;  %v7149_v58 = vcombine.high %v8928_v60, %v8931_v62  ;;  %v8184_v60 = vld [vmem:[%s10653_s1 + $0x140] sm:$0xff]  }
  0x7c   : > { %v3042_v19 = vcombine.low %v3033_v1, %v3040_v15  ;;  %v3571_v33 = vshll.u32 %v9068_v42, 16  ;;  %v9148_v15 = vrot.slane %v3566_v49, 1  ;;  %v3575_v25 = vshrl.u32 %v9068_v42, 16 }
  0x7d   : > { %7587 = vmatmul.mubr.bf16.gmra.mxu0 %v1367_v30  ;;  %v3061_v30 = vcombine.low %v2593_v36, %v8714_v61  ;;  %v3107_v61 = vcombine.low %v8738_v29, %v2616_v34  ;;  %v3124_v29 = vrot.slane %v3108_v18, %v8483_v26  ;;  %v3154_v36 = vrot.slane %v3140_v8, %v8483_v26  ;;  %v8182_v18 = vld [vmem:[%s10653_s1 + $0x100] sm:$0xff]  }
  0x7e   : > { %7658 = vmatprep.mubr.msk.bf16.mxu0 %vm8312_vm0, %v10740_v12  ;;  %v3056_v37 = vrot.slane %v3042_v19, %v8483_v26  ;;  %v9150_v22 = vrot.slane %v3571_v33, 1  ;;  %v7147_v19 = vcombine.high %v8793_v39, %v8796_v52 }
  0x7f   : > { %v3089_v40 = vrot.slane %v3061_v30, %v8483_v26  ;;  %v3117_v48 = vrot.slane %v3107_v61, %v8483_v26 }
  0x80   : > { %7711 = vmatmul.mubr.bf16.vlgmr.msra.gmra.mxu1 %v9043_v9  ;;  %v9122_v0 = vcombine.low %v3049_v46, %v3056_v37  ;;  %v3173_v3 = vrot.slane %v7147_v19, %v8483_v26  ;;  %v3180_v37 = vrot.slane %v3158_v14, %v8483_v26  ;;  %v8175_v46 = vld [vmem:[%s10653_s1 + $0x110] sm:$0xff]   ;;  %v7123_v14 = vld.sshfl [vmem:[%s8460_s9 + $0x64] sm:$0x33 pattern:$0x75316420] }
  0x81   : > { %7714 = vmatprep.mubr.msk.bf16.mxu1 %vm8312_vm0, %v10740_v12  ;;  %7799 = vmatpush3.bf16.msra.mxu1 %v8174_v41  ;;  %v3091_v21 = vcombine.low %v3082_v20, %v3089_v40  ;;  %v3139_v1 = vcombine.low %v3117_v48, %v3124_v29  ;;  %v3156_v41 = vcombine.low %v8793_v39, %v8796_v52  ;;  %v8173_v39 = vld [vmem:[%s10653_s1 + $0x118] sm:$0xff]   ;;  %v10755_v48 = vld [vmem:[#allocation33_spill] sm:$0xff] }
  0x82   : > { %7800 = vmatprep.subr.bf16.mxu1 %v10740_v12  ;;  %v3579_v10 = vshll.u32 %v9122_v0, 16  ;;  %v3583_v28 = vshrl.u32 %v9122_v0, 16  ;;  %v2717_v20 = vcombine.high %v8829_v47, %v8829_v47  ;;  %v2740_v40 = vcombine.high %v8838_v2, %v8838_v2 }
  0x83   : > { %v3105_v43 = vrot.slane %v3091_v21, %v8483_v26  ;;  %v3147_v35 = vrot.slane %v3139_v1, %v8483_v26  ;;  %v3166_v57 = vrot.slane %v3156_v41, %v8483_v26  ;;  %v3257_v29 = vcombine.low %v10755_v48, %v8948_v4  ;;  %v10762_v48 = vld [vmem:[#allocation9_spill] sm:$0xff] }
  0x84   : > { %v3205_v49 = vcombine.low %v2717_v20, %v8838_v2  ;;  %v3206_v33 = vcombine.low %v8855_v24, %v2740_v40  ;;  %v9223_v44 = vrot.slane %v3579_v10, 1  ;;  %v3569_v40 = vor.u32 %v9148_v15, %v3564_v11 }
  0x85   : > { %7801 = vmatpush3.bf16.msra.mxu1 %v8176_v55  ;;  %7659 = vmatmul.mubr.bf16.vlgmr.msra.gmra.mxu0 %v9014_v6  ;;  %v3098_v6 = vrot.slane %v3090_v53, %v8483_v26  ;;  %v3159_v55 = vcombine.low %v8829_v47, %v2716_v63  ;;  %v9179_v27 = vcombine.low %v3147_v35, %v3154_v36  ;;  %v10756_v63 = vld [vmem:[#allocation32_spill] sm:$0xff] }
  0x86   : > { %7802 = vmatprep.subr.bf16.mxu1 %v10740_v12  ;;  %7747 = vmatpush3.bf16.msra.mxu0 %v8169_v31  ;;  %v3188_v38 = vcombine.low %v3166_v57, %v3173_v3  ;;  %v8181_v31 = vld [vmem:[%s10653_s1 + $0x150] sm:$0xff]   ;;  %v2741_v53 = vcombine.high %v8855_v24, %v8855_v24  ;;  %v3215_v34 = vrot.slane %v3205_v49, %v8483_v26  ;;  %v7124_v3 = vld.sshfl [vmem:[%s8460_s9 + $0x68] sm:$0x1 pattern:$0x75316420] }
  0x87   : > { %7662 = vmatprep.mubr.msk.bf16.mxu0 %vm8312_vm0, %v10740_v12  ;;  %7748 = vmatprep.subr.bf16.mxu0 %v10740_v12  ;;  %v9134_v32 = vcombine.low %v3098_v6, %v3105_v43  ;;  %v3187_v52 = vrot.slane %v3159_v55, %v8483_v26  ;;  %v3222_v43 = vrot.slane %v3206_v33, %v8483_v26  ;;  %v3595_v55 = vshll.u32 %v9179_v27, 16 }
  0x88   : > { %7715 = vmatmul.mubr.bf16.gmra.mxu1 %v9068_v42  ;;  %v3196_v21 = vrot.slane %v3188_v38, %v8483_v26  ;;  %v3207_v47 = vcombine.low %v2741_v53, %v8866_v5  ;;  %v3285_v62 = vrot.slane %v3257_v29, %v8483_v26  ;;  %v2825_v41 = vcombine.high %v10756_v63, %v10756_v63 }
  0x89   : > { %7718 = vmatprep.mubr.msk.bf16.mxu1 %vm8312_vm0, %v10740_v12  ;;  %7803 = vmatpush3.bf16.msra.mxu1 %v8177_v59  ;;  %v3189_v30 = vcombine.low %v3180_v37, %v3187_v52  ;;  %v3208_v59 = vcombine.low %v8873_v56, %v8921_v23  ;;  %v3237_v5 = vcombine.low %v3215_v34, %v3222_v43  ;;  %v3587_v61 = vshll.u32 %v9134_v32, 16 }
  0x8a   : > { %7804 = vmatprep.subr.bf16.mxu1 %v10740_v12  ;;  %7749 = vmatpush3.bf16.msra.mxu0 %v8170_v45  ;;  %v3229_v2 = vrot.slane %v3207_v47, %v8483_v26  ;;  %v3591_v35 = vshrl.u32 %v9134_v32, 16  ;;  %v9269_v37 = vrot.slane %v2825_v41, %v8483_v26  ;;  %v9274_v52 = vrot.slane %v7123_v14, %v8483_v26 }
  0x8b   : > { %7750 = vmatprep.subr.bf16.mxu0 %v10740_v12  ;;  %v3203_v45 = vrot.slane %v3189_v30, %v8483_v26  ;;  %v3236_v6 = vrot.slane %v3208_v59, %v8483_v26  ;;  %v9287_v20 = vrot.slane %v7124_v3, %v8483_v26  ;;  %v9299_v49 = vsel %vm1291_vm1, %v3569_v40, %v9150_v22 }
  0x8c   : > { %v2841_v30 = vcombine.high %v9269_v37, %v9269_v37  ;;  %v3589_v11 = vrot.slane %v3587_v61, 1  ;;  %v3597_v47 = vrot.slane %v3595_v55, 1  ;;  %v3577_v43 = vor.u32 %v3575_v25, %v9150_v22  ;;  %v10761_v25 = vld [vmem:[#allocation10_spill] sm:$0xff] }
  0x8d   : > { %7805 = vmatpush3.bf16.msra.mxu1 %v8179_v54  ;;  %7663 = vmatmul.mubr.bf16.gmra.mxu0 %v9043_v9  ;;  %v9218_v24 = vcombine.low %v3196_v21, %v3203_v45  ;;  %v3238_v54 = vcombine.low %v3229_v2, %v3236_v6  ;;  %v3917_v29 = vcombine.low %v10762_v48, %v10761_v25  ;;  %v10778_v25 = vld [vmem:[#allocation27_spill] sm:$0xff] }
  0x8e   : > { %7666 = vmatprep.mubr.msk.bf16.mxu0 %vm8312_vm0, %v10740_v12  ;;  %7751 = vmatpush3.bf16.msra.mxu0 %v8171_v13  ;;  %v7148_v13 = vcombine.high %v8873_v56, %v8921_v23  ;;  %v3245_v23 = vrot.slane %v3237_v5, %v8483_v26  ;;  %v3304_v53 = vcombine.low %v2841_v30, %v9274_v52  ;;  %v10765_v30 = vld [vmem:[#allocation14_spill] sm:$0xff] }
  0x8f   : > { %7752 = vmatprep.subr.bf16.mxu0 %v10740_v12  ;;  %7806 = vmatprep.subr.bf16.mxu1 %v10740_v12  ;;  %v3252_v56 = vrot.slane %v3238_v54, %v8483_v26  ;;  %v9318_v5 = vsel %vm1291_vm1, %v3577_v43, %v9223_v44  ;;  %v10758_v54 = vld [vmem:[#allocation5_spill] sm:$0xff] }
  0x90   : > { %7719 = vmatmul.mubr.bf16.gmra.mxu1 %v9122_v0  ;;  %v3264_v8 = vrot.slane %v7148_v13, %v8483_v26  ;;  %v3320_v9 = vrot.slane %v3304_v53, %v8483_v26  ;;  %v10767_v53 = vld [vmem:[#allocation16_spill] sm:$0xff]  ;;  %v10774_v43 = vld [vmem:[#allocation21_spill] sm:$0xff] }
  0x91   : > { %7722 = vmatprep.mubr.msk.bf16.mxu1 %vm8312_vm0, %v10740_v12  ;;  %7807 = vmatpush3.bf16.msra.mxu1 %v8180_v7  ;;  %v3271_v7 = vrot.slane %v3255_v51, %v8483_v26  ;;  %v9263_v36 = vcombine.low %v3245_v23, %v3252_v56  ;;  %v10760_v51 = vld [vmem:[#allocation7_spill] sm:$0xff]  ;;  %v10763_v23 = vld [vmem:[#allocation12_spill] sm:$0xff]  ;;  %v3603_v56 = vshll.u32 %v9218_v24, 16 }
  0x92   : > { %7753 = vmatpush3.bf16.msra.mxu0 %v8172_v50  ;;  %7808 = vmatprep.subr.bf16.mxu1 %v10740_v12  ;;  %v3278_v50 = vrot.slane %v7149_v58, %v8483_v26 }
  0x93   : > { %7754 = vmatprep.subr.bf16.mxu0 %v10740_v12  ;;  %v3286_v1 = vcombine.low %v3264_v8, %v3271_v7  ;;  %v3599_v8 = vshrl.u32 %v9179_v27, 16 }
  0x94   : > { %v3287_v19 = vcombine.low %v3278_v50, %v3285_v62  ;;  %v3611_v50 = vshll.u32 %v9263_v36, 16  ;;  %v3925_v62 = vrot.slane %v3917_v29, %v8483_v26  ;;  %v8185_v29 = vld [vmem:[%s10653_s1 + $0x1b8] sm:$0xff]  }
  0x95   : > { %7667 = vmatmul.mubr.bf16.gmra.mxu0 %v9068_v42  ;;  %7809 = vmatpush3.bf16.msra.mxu1 %v8181_v31  ;;  %v3294_v57 = vrot.slane %v3286_v1, %v8483_v26  ;;  %v3585_v42 = vor.u32 %v3583_v28, %v9223_v44  ;;  %v3593_v1 = vor.u32 %v3591_v35, %v3589_v11 }
  0x96   : > { %7670 = vmatprep.mubr.msk.bf16.mxu0 %vm8312_vm0, %v10740_v12  ;;  %7755 = vmatpush3.bf16.msra.mxu0 %v8173_v39  ;;  %v2840_v39 = vcombine.high %v8948_v4, %v8948_v4  ;;  %v3301_v38 = vrot.slane %v3287_v19, %v8483_v26  ;;  %v3605_v19 = vrot.slane %v3603_v56, 1  ;;  %v3601_v3 = vor.u32 %v3599_v8, %v3597_v47  ;;  %v10779_v8 = vld [vmem:[#allocation26_spill] sm:$0xff] }
  0x97   : > { %7756 = vmatprep.subr.bf16.mxu0 %v10740_v12  ;;  %7810 = vmatprep.subr.bf16.mxu1 %v10740_v12  ;;  %v9341_v44 = vsel %vm1291_vm1, %v3585_v42, %v3589_v11  ;;  %v9352_v41 = vsel %vm1291_vm1, %v3593_v1, %v3597_v47  ;;  %v8193_v1 = vld [vmem:[%s10653_s1 + $0x1e8] sm:$0xff]  }
  0x98   : > { %7723 = vmatmul.mubr.bf16.gmra.mxu1 %v9134_v32  ;;  %v3303_v31 = vcombine.low %v9269_v37, %v2840_v39  ;;  %v3613_v39 = vrot.slane %v3611_v50, 1  ;;  %v9362_v35 = vsel %vm1291_vm1, %v3601_v3, %v3605_v19 }
  0x99   : > { %7726 = vmatprep.mubr.msk.bf16.mxu1 %vm8312_vm0, %v10740_v12  ;;  %7811 = vmatpush3.bf16.msra.mxu1 %v8183_v16  ;;  %v10757_v16 = vld [vmem:[#allocation6_spill] sm:$0xff] }
  0x9a   : > { %7757 = vmatpush3.bf16.msra.mxu0 %v8175_v46  ;;  %7812 = vmatprep.subr.bf16.mxu1 %v10740_v12  ;;  %v2864_v46 = vcombine.high %v9274_v52, %v9274_v52  ;;  %v3313_v59 = vrot.slane %v3303_v31, %v8483_v26  ;;  %v3868_v61 = vcombine.low %v10758_v54, %v10757_v16  ;;  %v10766_v31 = vld [vmem:[#allocation13_spill] sm:$0xff]  ;;  %v8192_v54 = vld [vmem:[%s10653_s1 + $0x1f0] sm:$0xff]  }
  0x9b   : > { %7758 = vmatprep.subr.bf16.mxu0 %v10740_v12 }
  0x9c   : > { %v3335_v6 = vcombine.low %v3313_v59, %v3320_v9  ;;  %v3876_v7 = vrot.slane %v3868_v61, %v8483_v26  ;;  %v10768_v59 = vld [vmem:[#allocation15_spill] sm:$0xff]  ;;  %v10770_v9 = vld [vmem:[#allocation17_spill] sm:$0xff] }
  0x9d   : > { %7671 = vmatmul.mubr.bf16.gmra.mxu0 %v9122_v0  ;;  %7813 = vmatpush3.bf16.msra.mxu1 %v8184_v60  ;;  %v10764_v0 = vld [vmem:[#allocation11_spill] sm:$0xff] }
  0x9e   : > { %7674 = vmatprep.mubr.msk.bf16.mxu0 %vm8312_vm0, %v10740_v12  ;;  %7759 = vmatpush3.bf16.msra.mxu0 %v8178_v17  ;;  %v9314_v17 = vcombine.low %v3294_v57, %v3301_v38  ;;  %v3343_v13 = vrot.slane %v3335_v6, %v8483_v26  ;;  %v3918_v28 = vcombine.low %v10764_v0, %v10763_v23  ;;  %v10780_v23 = vld [vmem:[#allocation25_spill] sm:$0xff] }
  0x9f   : > { %7760 = vmatprep.subr.bf16.mxu0 %v10740_v12  ;;  %7902 = vmatprep.subr.bf16.mxu1 %v10740_v12  ;;  %v4113_v0 = vcombine.low %v10780_v23, %v10779_v8 }
  0xa0   : > { %7727 = vmatmul.mubr.bf16.gmra.mxu1 %v9179_v27  ;;  %v3932_v60 = vrot.slane %v3918_v28, %v8483_v26  ;;  %v3619_v38 = vshll.u32 %v9314_v17, 16  ;;  %v3623_v16 = vshrl.u32 %v9314_v17, 16 }
  0xa1   : > { %7730 = vmatprep.mubr.msk.bf16.mxu1 %vm8312_vm0, %v10740_v12  ;;  %v9439_v3 = vrot.slane %v4113_v0, %v8483_v26 }
  0xa2   : > { %7761 = vmatpush3.bf16.msra.mxu0 %v8182_v18  ;;  %v10759_v18 = vld [vmem:[#allocation8_spill] sm:$0xff]  ;;  %v3933_v57 = vcombine.low %v3925_v62, %v3932_v60  ;;  %v3621_v6 = vrot.slane %v3619_v38, 1 }
  0xa3   : > { %7850 = vmatprep.subr.bf16.mxu0 %v10740_v12  ;;  %v3869_v58 = vcombine.low %v10760_v51, %v10759_v18  ;;  %v10775_v18 = vld [vmem:[#allocation24_spill] sm:$0xff]  ;;  %v10776_v51 = vld [vmem:[#allocation23_spill] sm:$0xff] }
  0xa5   : > { %7675 = vmatmul.mubr.bf16.gmra.mxu0 %v9134_v32  ;;  %v2849_v32 = vcombine.high %v7123_v14, %v7123_v14  ;;  %v3607_v14 = vshrl.u32 %v9218_v24, 16 }
  0xa6   : > { %7678 = vmatprep.mubr.msk.bf16.mxu0 %vm8312_vm0, %v10740_v12 }
  0xa7   : > { %v9282_v10 = vrot.slane %v2849_v32, %v8483_v26  ;;  %v3615_v32 = vshrl.u32 %v9263_v36, 16 }
  0xa8   : > { %7731 = vmatmul.mubr.bf16.gmra.mxu1 %v9218_v24 }
  0xa9   : > { %7734 = vmatprep.mubr.msk.bf16.mxu1 %vm8312_vm0, %v10740_v12  ;;  %v2865_v21 = vcombine.high %v9282_v10, %v9282_v10  ;;  %v3305_v45 = vcombine.low %v9282_v10, %v2864_v46  ;;  %v3966_v46 = vcombine.low %v10766_v31, %v10765_v30  ;;  %v3617_v61 = vor.u32 %v3615_v32, %v3613_v39  ;;  %v8195_v30 = vld [vmem:[%s10653_s1 + $0x1e0] sm:$0xff]  }
  0xab   : > { %v3306_v15 = vcombine.low %v2865_v21, %v9287_v20  ;;  %v3327_v33 = vrot.slane %v3305_v45, %v8483_v26  ;;  %v3967_v21 = vcombine.low %v10768_v59, %v10767_v53  ;;  %v10769_v45 = vld [vmem:[#allocation18_spill] sm:$0xff]  ;;  %v3974_v42 = vrot.slane %v3966_v46, %v8483_v26  ;;  %v10785_v59 = vld [vmem:[#allocation31_spill] sm:$0xff] }
  0xac   : > { %v4015_v11 = vcombine.low %v10770_v9, %v10769_v45  ;;  %v10784_v53 = vld [vmem:[#allocation34_spill] sm:$0xff]  ;;  %v7204_v45 = vcombine.high %v8948_v4, %v9269_v37  ;;  %v7241_v9 = vld.sshfl [vmem:[%s8460_s9 + $0x18] sm:$0x33 pattern:$0x75316420] }
  0xad   : > { %7679 = vmatmul.mubr.bf16.gmra.mxu0 %v9179_v27  ;;  %v3334_v34 = vrot.slane %v3306_v15, %v8483_v26  ;;  %v3883_v27 = vrot.slane %v3869_v58, %v8483_v26  ;;  %v8190_v15 = vld [vmem:[%s10653_s1 + $0x1f8] sm:$0xff]   ;;  %v4065_v58 = vcombine.low %v10776_v51, %v10775_v18  ;;  %v3981_v28 = vrot.slane %v3967_v21, %v8483_v26  ;;  %v7244_v18 = vld.sshfl [vmem:[%s8460_s9 + $0x24] sm:$0x33 pattern:$0x75316420] }
  0xae   : > { %7682 = vmatprep.mubr.msk.bf16.mxu0 %vm8312_vm0, %v10740_v12  ;;  %v9408_v56 = vrot.slane %v4015_v11, %v8483_v26  ;;  %v4163_v21 = vcombine.low %v10785_v59, %v10784_v53  ;;  %v8187_v11 = vld [vmem:[%s10653_s1 + $0x1a8] sm:$0xff]   ;;  %v9552_v59 = vrot.slane %v7244_v18, %v8483_v26 }
  0xaf   : > { %v3336_v2 = vcombine.low %v3327_v33, %v3334_v34  ;;  %v3884_v55 = vcombine.low %v3876_v7, %v3883_v27  ;;  %v10772_v33 = vld [vmem:[#allocation19_spill] sm:$0xff]  ;;  %v10773_v34 = vld [vmem:[#allocation22_spill] sm:$0xff]  ;;  %v3625_v7 = vor.u32 %v3623_v16, %v3621_v6  ;;  %v9419_v60 = vrot.slane %v4065_v58, %v8483_v26 }
  0xb0   : > { %7735 = vmatmul.mubr.bf16.gmra.mxu1 %v9263_v36 }
  0xb1   : > { %7738 = vmatprep.mubr.msk.bf16.mxu1 %vm8312_vm0, %v10740_v12  ;;  %v3350_v22 = vrot.slane %v3336_v2, %v8483_v26  ;;  %v4064_v2 = vcombine.low %v10774_v43, %v10773_v34  ;;  %v4238_v34 = vrot.slane %v7204_v45, %v8483_v26  ;;  %v4182_v43 = vcombine.low %v8948_v4, %v9269_v37  ;;  %v8188_v37 = vld [vmem:[%s10653_s1 + $0x1a0] sm:$0xff]  }
  0xb3   : > { %v9349_v63 = vcombine.low %v3343_v13, %v3350_v22  ;;  %v10777_v22 = vld [vmem:[#allocation28_spill] sm:$0xff]  ;;  %v9416_v62 = vrot.slane %v4064_v2, %v8483_v26 }
  0xb4   : > { %v4114_v48 = vcombine.low %v10778_v25, %v10777_v22 }
  0xb5   : > { %7683 = vmatmul.mubr.bf16.gmra.mxu0 %v9218_v24  ;;  %v3609_v24 = vor.u32 %v3607_v14, %v3605_v19  ;;  %v3627_v13 = vshll.u32 %v9349_v63, 16  ;;  %v9431_v14 = vld.sshfl [vmem:[%s8460_s9 + $0x6c] sm:$0x33 pattern:$0x75316420]  ;;  %v4080_v46 = vcombine.low %v9416_v62, %v9419_v60 }
  0xb6   : > { %7686 = vmatprep.mubr.msk.bf16.mxu0 %vm8312_vm0, %v10740_v12  ;;  %v9456_v31 = vrot.slane %v9431_v14, %v8483_v26  ;;  %v7249_v60 = vld.sshfl [vmem:[%s8460_s9 + $0x38] sm:$0x1 pattern:$0x75316420] }
  0xb7   : > { %v9369_v40 = vsel %vm1291_vm1, %v3609_v24, %v3613_v39  ;;  %v9410_v50 = vrot.slane %v3627_v13, 1  ;;  %v10782_v39 = vld [vmem:[#allocation29_spill] sm:$0xff]  ;;  %v3982_v24 = vcombine.low %v3974_v42, %v3981_v28  ;;  %v7245_v28 = vld.sshfl [vmem:[%s8460_s9 + $0x28] sm:$0x33 pattern:$0x75316420] }
  0xb8   : > { %7739 = vmatmul.mubr.bf16.gmra.mxu1 %v9314_v17  ;;  %10783 = vst [vmem:[#allocation33_spill] sm:$0xff] %v9456_v31  ;;  %v7243_v42 = vld.sshfl [vmem:[%s8460_s9 + $0x20] sm:$0x1 pattern:$0x75316420]  ;;  %v4604_v45 = vcombine.high %v7245_v28, %v7245_v28 }
  0xb9   : > { %7742 = vmatprep.mubr.msk.bf16.mxu1 %vm8312_vm0, %v10740_v12  ;;  %v9428_v19 = vsel %vm1291_vm1, %v3625_v7, %v9410_v50 }
  0xbd   : > { %7687 = vmatmul.mubr.bf16.gmra.mxu0 %v9263_v36  ;;  %v10771_v36 = vld [vmem:[#allocation20_spill] sm:$0xff] }
  0xbe   : > { %7690 = vmatprep.mubr.msk.bf16.mxu0 %vm8312_vm0, %v10740_v12  ;;  %v4016_v47 = vcombine.low %v10772_v33, %v10771_v36  ;;  %v4229_v33 = vcombine.low %v9274_v52, %v9282_v10 }
  0xc0   : > { %7743 = vmatmul.mubr.bf16.gmra.mxu1 %v9349_v63  ;;  %v9413_v27 = vrot.slane %v4016_v47, %v8483_v26  ;;  %v7205_v47 = vcombine.high %v9274_v52, %v9282_v10  ;;  %v4245_v2 = vrot.slane %v4229_v33, %v8483_v26  ;;  %v9489_v52 = vrot.slane %v4163_v21, %v8483_v26  ;;  %v8196_v10 = vld [vmem:[%s10653_s1 + $0x1d8] sm:$0xff]  }
  0xc1   : > { %7814 = vmatprep.mubr.msk.bf16.mxu1 %vm8312_vm0, %v10740_v12 }
  0xc2   : > { %v4031_v38 = vcombine.low %v9408_v56, %v9413_v27  ;;  %v4252_v16 = vrot.slane %v7205_v47, %v8483_v26  ;;  %v9575_v56 = vrot.slane %v4604_v45, %v8483_v26  ;;  %v7246_v27 = vld.sshfl [vmem:[%s8460_s9 + $0x2c] sm:$0x1 pattern:$0x75316420] }
  0xc5   : > { %7691 = vmatmul.mubr.bf16.gmra.mxu0 %v9314_v17  ;;  %v9399_v17 = vsel %vm1291_vm1, %v3617_v61, %v3621_v6  ;;  %v4231_v6 = vcombine.low %v9287_v20, %v9456_v31  ;;  %v4518_v61 = vcombine.high %v7241_v9, %v7241_v9  ;;  %v4260_v20 = vcombine.low %v4238_v34, %v4245_v2  ;;  %v8199_v34 = vld [vmem:[%s10653_s1 + $0x1c8] sm:$0xff]  }
  0xc6   : > { %7762 = vmatprep.mubr.msk.bf16.mxu0 %vm8312_vm0, %v10740_v12 }
  0xc7   : > { %v4259_v4 = vrot.slane %v4231_v6, %v8483_v26  ;;  %v9504_v13 = vrot.slane %v4518_v61, %v8483_v26  ;;  %v9513_v22 = vrot.slane %v4260_v20, %v8483_v26  ;;  %v4595_v6 = vcombine.high %v9552_v59, %v9552_v59 }
  0xc8   : > { %7815 = vmatmul.mubr.bf16.vlgmr.msra.gmra.mxu1 %v3884_v55  ;;  %v8186_v55 = vld [vmem:[%s10653_s1 + $0x1b0] sm:$0xff]  }
  0xc9   : > { %7818 = vmatprep.mubr.msk.bf16.mxu1 %vm8312_vm0, %v10740_v12  ;;  %7903 = vmatpush3.bf16.msra.mxu1 %v8190_v15  ;;  %v4261_v51 = vcombine.low %v4252_v16, %v4259_v4 }
  0xca   : > { %7904 = vmatprep.subr.bf16.mxu1 %v10740_v12 }
  0xcb   : > { %v9524_v8 = vrot.slane %v4261_v51, %v8483_v26  ;;  %v4620_v51 = vcombine.high %v9575_v56, %v9575_v56 }
  0xcd   : > { %7905 = vmatpush3.bf16.msra.mxu1 %v8192_v54  ;;  %7763 = vmatmul.mubr.bf16.vlgmr.msra.gmra.mxu0 %v9299_v49  ;;  %v9442_v49 = vrot.slane %v4114_v48, %v8483_v26  ;;  %v7242_v54 = vld.sshfl [vmem:[%s8460_s9 + $0x1c] sm:$0x33 pattern:$0x75316420] }
  0xce   : > { %7906 = vmatprep.subr.bf16.mxu1 %v10740_v12  ;;  %7851 = vmatpush3.bf16.msra.mxu0 %v8185_v29  ;;  %v4542_v58 = vcombine.high %v7242_v54, %v7242_v54  ;;  %v9516_v25 = vrot.slane %v7242_v54, %v8483_v26  ;;  %v9521_v29 = vrot.slane %v4182_v43, %v8483_v26  ;;  %v7247_v54 = vld.sshfl [vmem:[%s8460_s9 + $0x30] sm:$0x33 pattern:$0x75316420] }
  0xcf   : > { %7766 = vmatprep.mubr.msk.bf16.mxu0 %vm8312_vm0, %v10740_v12  ;;  %7852 = vmatprep.subr.bf16.mxu0 %v10740_v12  ;;  %v4129_v15 = vcombine.low %v9439_v3, %v9442_v49 }
  0xd0   : > { %7819 = vmatmul.mubr.bf16.gmra.mxu1 %v3933_v57  ;;  %v10781_v57 = vld [vmem:[#allocation30_spill] sm:$0xff]  ;;  %v9527_v23 = vrot.slane %v4542_v58, %v8483_v26  ;;  %v9600_v58 = vrot.slane %v7246_v27, %v8483_v26  ;;  %v8198_v27 = vld [vmem:[%s10653_s1 + $0x180] sm:$0xff]  }
  0xd1   : > { %v4162_v32 = vcombine.low %v10782_v39, %v10781_v57  ;;  %7822 = vmatprep.mubr.msk.bf16.mxu1 %vm8312_vm0, %v10740_v12  ;;  %7907 = vmatpush3.bf16.msra.mxu1 %v8193_v1  ;;  %v9535_v1 = vrot.slane %v7243_v42, %v8483_v26  ;;  %v8189_v57 = vld [vmem:[%s10653_s1 + $0x198] sm:$0xff]   ;;  %v8197_v39 = vld [vmem:[%s10653_s1 + $0x1d0] sm:$0xff]  }
  0xd2   : > { %7908 = vmatprep.subr.bf16.mxu1 %v10740_v12  ;;  %7853 = vmatpush3.bf16.msra.mxu0 %v8186_v55  ;;  %v4580_v55 = vcombine.high %v7244_v18, %v7244_v18  ;;  %v7248_v18 = vld.sshfl [vmem:[%s8460_s9 + $0x34] sm:$0x33 pattern:$0x75316420]  ;;  %v5136_v62 = vcombine.low %v4620_v51, %v9600_v58 }
  0xd3   : > { %v9472_v36 = vrot.slane %v4162_v32, %v8483_v26  ;;  %7854 = vmatprep.subr.bf16.mxu0 %v10740_v12  ;;  %v5087_v61 = vcombine.low %v9535_v1, %v9552_v59  ;;  %v4666_v45 = vcombine.high %v7248_v18, %v7248_v18 }
  0xd4   : > { %v9555_v21 = vrot.slane %v4580_v55, %v8483_v26  ;;  %v3555_v55 = vrot.slane %v9456_v31, %v8483_v26 }
  0xd5   : > { %7909 = vmatpush3.bf16.msra.mxu1 %v8195_v30  ;;  %7767 = vmatmul.mubr.bf16.gmra.mxu0 %v9318_v5  ;;  %v9501_v5 = vrot.slane %v7241_v9, %v8483_v26  ;;  %v7283_v30 = vcombine.high %v9516_v25, %v9527_v23  ;;  %v9558_v9 = vrot.slane %v7245_v28, %v8483_v26 }
  0xd6   : > { %7770 = vmatprep.mubr.msk.bf16.mxu0 %vm8312_vm0, %v10740_v12  ;;  %7855 = vmatpush3.bf16.msra.mxu0 %v8187_v11  ;;  %v5097_v42 = vrot.slane %v5087_v61, %v8483_v26  ;;  %v4642_v28 = vcombine.high %v7247_v54, %v7247_v54  ;;  %v5146_v61 = vrot.slane %v5136_v62, %v8483_v26 }
  0xd7   : > { %7856 = vmatprep.subr.bf16.mxu0 %v10740_v12  ;;  %7910 = vmatprep.subr.bf16.mxu1 %v10740_v12  ;;  %v5038_v48 = vcombine.low %v9501_v5, %v9504_v13  ;;  %v7282_v0 = vcombine.high %v9501_v5, %v9504_v13  ;;  %v5069_v33 = vrot.slane %v7283_v30, %v8483_v26 }
  0xd8   : > { %7823 = vmatmul.mubr.bf16.gmra.mxu1 %v3982_v24  ;;  %v5040_v24 = vcombine.low %v9516_v25, %v9527_v23  ;;  %v4619_v16 = vcombine.high %v9558_v9, %v9558_v9 }
  0xd9   : > { %7826 = vmatprep.mubr.msk.bf16.mxu1 %vm8312_vm0, %v10740_v12  ;;  %7911 = vmatpush3.bf16.msra.mxu1 %v8196_v10  ;;  %v5048_v7 = vrot.slane %v5038_v48, %v8483_v26  ;;  %v5055_v53 = vrot.slane %v7282_v0, %v8483_v26  ;;  %v5088_v10 = vcombine.low %v9555_v21, %v4595_v6  ;;  %v7250_v6 = vld.sshfl [vmem:[%s8460_s9 + $0x3c] sm:$0x33 pattern:$0x75316420] }
  0xda   : > { %7857 = vmatpush3.bf16.msra.mxu0 %v8188_v37  ;;  %7912 = vmatprep.subr.bf16.mxu1 %v10740_v12  ;;  %v5062_v11 = vrot.slane %v5040_v24, %v8483_v26  ;;  %v5090_v20 = vcombine.low %v9575_v56, %v4619_v16  ;;  %v9615_v24 = vrot.slane %v7247_v54, %v8483_v26  ;;  %v10787_v16 = vld [vmem:[#allocation35_spill] sm:$0xff] }
  0xdb   : > { %7858 = vmatprep.subr.bf16.mxu0 %v10740_v12  ;;  %v5070_v47 = vcombine.low %v5048_v7, %v5055_v53  ;;  %v5104_v48 = vrot.slane %v5088_v10, %v8483_v26  ;;  %v8194_v7 = vld [vmem:[%s10653_s1 + $0x188] sm:$0xff]   ;;  %v9620_v53 = vrot.slane %v4642_v28, %v8483_v26  ;;  %v7251_v10 = vld.sshfl [vmem:[%s8460_s9 + $0x40] sm:$0x33 pattern:$0x75316420]  ;;  %v9669_v28 = vrot.slane %v7250_v6, %v8483_v26 }
  0xdc   : > { %v5071_v43 = vcombine.low %v5062_v11, %v5069_v33 }
  0xdd   : > { %7771 = vmatmul.mubr.bf16.gmra.mxu0 %v9341_v44  ;;  %v4596_v44 = vcombine.high %v9555_v21, %v9555_v21  ;;  %7913 = vmatpush3.bf16.msra.mxu1 %v8197_v39  ;;  %v5078_v2 = vrot.slane %v5070_v47, %v8483_v26  ;;  %v5118_v39 = vrot.slane %v5090_v20, %v8483_v26 }
  0xde   : > { %7774 = vmatprep.mubr.msk.bf16.mxu0 %vm8312_vm0, %v10740_v12  ;;  %7859 = vmatpush3.bf16.msra.mxu0 %v8189_v57  ;;  %v5085_v37 = vrot.slane %v5071_v43, %v8483_v26  ;;  %v8200_v57 = vld [vmem:[%s10653_s1 + $0x1c0] sm:$0xff]   ;;  %v5119_v30 = vcombine.low %v5097_v42, %v5104_v48  ;;  %v9629_v47 = vrot.slane %v7248_v18, %v8483_v26 }
  0xdf   : > { %7860 = vmatprep.subr.bf16.mxu0 %v10740_v12  ;;  %7914 = vmatprep.subr.bf16.mxu1 %v10740_v12  ;;  %v5089_v4 = vcombine.low %v4596_v44, %v9558_v9  ;;  %v9638_v44 = vrot.slane %v4666_v45, %v8483_v26  ;;  %v7284_v43 = vcombine.high %v9615_v24, %v9620_v53 }
  0xe0   : > { %7827 = vmatmul.mubr.bf16.gmra.mxu1 %v4031_v38  ;;  %v8191_v38 = vld [vmem:[%s10653_s1 + $0x190] sm:$0xff]   ;;  %v9626_v11 = vcombine.low %v5078_v2, %v5085_v37  ;;  %v10786_v2 = vld [vmem:[#allocation36_spill] sm:$0xff]  ;;  %v10788_v37 = vld [vmem:[#allocation37_spill] sm:$0xff]  ;;  %v9663_v42 = vrot.slane %v7249_v60, %v8483_v26  ;;  %v3562_v48 = vrot.slane %v3555_v55, %v8483_v26  ;;  %v4719_v45 = vcombine.high %v9669_v28, %v9669_v28 }
  0xe1   : > { %7830 = vmatprep.mubr.msk.bf16.mxu1 %vm8312_vm0, %v10740_v12  ;;  %v5111_v0 = vrot.slane %v5089_v4, %v8483_v26  ;;  %7915 = vmatpush3.bf16.msra.mxu1 %v8199_v34  ;;  %v5137_v34 = vcombine.low %v9615_v24, %v9620_v53  ;;  %v4211_v54 = vcombine.low %v10787_v16, %v10786_v2  ;;  %v7253_v60 = vld.sshfl [vmem:[%s8460_s9 + $0x48] sm:$0x33 pattern:$0x75316420] }
  0xe2   : > { %7861 = vmatpush3.bf16.msra.mxu0 %v8191_v38  ;;  %7916 = vmatprep.subr.bf16.mxu1 %v10740_v12  ;;  %v4704_v4 = vcombine.high %v7250_v6, %v7250_v6  ;;  %v4212_v20 = vcombine.low %v10788_v37, %v9521_v29  ;;  %v5160_v51 = vrot.slane %v7284_v43, %v8483_v26  ;;  %v3635_v3 = vshll.u32 %v3562_v48, 16  ;;  %v7254_v37 = vld.sshfl [vmem:[%s8460_s9 + $0x4c] sm:$0x33 pattern:$0x75316420] }
  0xe3   : > { %7862 = vmatprep.subr.bf16.mxu0 %v10740_v12  ;;  %v5120_v33 = vcombine.low %v5111_v0, %v5118_v39  ;;  %v5153_v18 = vrot.slane %v5137_v34, %v8483_v26  ;;  %v7285_v6 = vcombine.high %v9629_v47, %v9638_v44  ;;  %v5186_v62 = vcombine.low %v9663_v42, %v9669_v28 }
  0xe4   : > { %v5691_v34 = vshrl.u32 %v9626_v11, 16 }
  0xe5   : > { %7775 = vmatmul.mubr.bf16.gmra.mxu0 %v9352_v41  ;;  %v5127_v41 = vrot.slane %v5119_v30, %v8483_v26  ;;  %7917 = vmatpush3.bf16.msra.mxu1 %v8200_v57  ;;  %v5134_v38 = vrot.slane %v5120_v33, %v8483_v26  ;;  %v5693_v57 = vshll.u32 %v9626_v11, 16  ;;  %v5168_v39 = vcombine.low %v5146_v61, %v5153_v18 }
  0xe6   : > { %7778 = vmatprep.mubr.msk.bf16.mxu0 %vm8312_vm0, %v10740_v12  ;;  %7863 = vmatpush3.bf16.msra.mxu0 %v8194_v7  ;;  %v9672_v7 = vrot.slane %v4704_v4, %v8483_v26  ;;  %v9678_v30 = vrot.slane %v7251_v10, %v8483_v26  ;;  %v5195_v61 = vrot.slane %v7285_v6, %v8483_v26  ;;  %v3637_v18 = vrot.slane %v3635_v3, 1  ;;  %v7256_v6 = vld.sshfl [vmem:[%s8460_s9 + $0x54] sm:$0x33 pattern:$0x75316420] }
  0xe7   : > { %7864 = vmatprep.subr.bf16.mxu0 %v10740_v12  ;;  %8006 = vmatprep.subr.bf16.mxu1 %v10740_v12  ;;  %v9674_v29 = vcombine.low %v5127_v41, %v5134_v38  ;;  %v5176_v41 = vrot.slane %v5168_v39, %v8483_v26  ;;  %v5695_v43 = vrot.slane %v5693_v57, 1  ;;  %v4766_v4 = vcombine.high %v7253_v60, %v7253_v60 }
  0xe8   : > { %7831 = vmatmul.mubr.bf16.gmra.mxu1 %v4080_v46  ;;  %v3631_v46 = vshrl.u32 %v9349_v63, 16  ;;  %v5139_v63 = vcombine.low %v9629_v47, %v9638_v44  ;;  %v4720_v33 = vcombine.high %v9672_v7, %v9672_v7  ;;  %v9730_v57 = vrot.slane %v7253_v60, %v8483_v26 }
  0xe9   : > { %7834 = vmatprep.mubr.msk.bf16.mxu1 %vm8312_vm0, %v10740_v12  ;;  %v5698_v2 = vshll.u32 %v9674_v29, 16  ;;  %v5696_v48 = vor.u32 %v5695_v43, %v5691_v34  ;;  %v9733_v39 = vrot.slane %v4766_v4, %v8483_v26 }
  0xea   : > { %v5167_v0 = vrot.slane %v5139_v63, %v8483_v26  ;;  %7865 = vmatpush3.bf16.msra.mxu0 %v8198_v27  ;;  %v4728_v27 = vcombine.high %v7251_v10, %v7251_v10  ;;  %v3633_v38 = vor.u32 %v3631_v46, %v9410_v50  ;;  %v9710_v63 = vrot.slane %v4211_v54, %v8483_v26 }
  0xeb   : > { %7954 = vmatprep.subr.bf16.mxu0 %v10740_v12  ;;  %v5187_v50 = vcombine.low %v9672_v7, %v4719_v45  ;;  %v5202_v10 = vrot.slane %v5186_v62, %v8483_v26  ;;  %v4743_v54 = vcombine.high %v9678_v30, %v9678_v30 }
  0xec   : > { %v5169_v55 = vcombine.low %v5160_v51, %v5167_v0  ;;  %v9707_v16 = vrot.slane %v4728_v27, %v8483_v26  ;;  %v5700_v0 = vrot.slane %v5698_v2, 1 }
  0xed   : > { %7779 = vmatmul.mubr.bf16.gmra.mxu0 %v9362_v35  ;;  %v4178_v35 = vcombine.low %v9472_v36, %v9489_v52  ;;  %v9713_v36 = vrot.slane %v4212_v20, %v8483_v26  ;;  %v5188_v52 = vcombine.low %v4720_v33, %v9678_v30  ;;  %v5209_v45 = vrot.slane %v5187_v50, %v8483_v26 }
  0xee   : > { %7782 = vmatprep.mubr.msk.bf16.mxu0 %vm8312_vm0, %v10740_v12  ;;  %v5183_v49 = vrot.slane %v5169_v55, %v8483_v26  ;;  %v4744_v20 = vcombine.high %v9707_v16, %v9707_v16  ;;  %v5702_v55 = vshrl.u32 %v9674_v29, 16  ;;  %v5217_v3 = vcombine.low %v5195_v61, %v5202_v10 }
  0xef   : > { %v5216_v33 = vrot.slane %v5188_v52, %v8483_v26  ;;  %v4227_v27 = vcombine.low %v9710_v63, %v9713_v36  ;;  %v9757_v2 = vsel %vm1291_vm1, %v5696_v48, %v5700_v0  ;;  %v5236_v63 = vcombine.low %v9730_v57, %v9733_v39  ;;  %v7257_v48 = vld.sshfl [vmem:[%s8460_s9 + $0x58] sm:$0x33 pattern:$0x75316420] }
  0xf0   : > { %7835 = vmatmul.mubr.bf16.gmra.mxu1 %v4129_v15  ;;  %v7252_v15 = vld.sshfl [vmem:[%s8460_s9 + $0x44] sm:$0x1 pattern:$0x75316420]  ;;  %v9717_v46 = vcombine.low %v5176_v41, %v5183_v49  ;;  %v4790_v41 = vcombine.high %v7254_v37, %v7254_v37  ;;  %v7286_v36 = vcombine.high %v9730_v57, %v9733_v39  ;;  %v4828_v10 = vcombine.high %v7256_v6, %v7256_v6 }
  0xf1   : > { %7838 = vmatprep.mubr.msk.bf16.mxu1 %vm8312_vm0, %v10740_v12  ;;  %v9727_v51 = vrot.slane %v7252_v15, %v8483_v26  ;;  %v7255_v49 = vld.sshfl [vmem:[%s8460_s9 + $0x50] sm:$0x1 pattern:$0x75316420]  ;;  %v9745_v15 = vrot.slane %v7254_v37, %v8483_v26  ;;  %v5218_v52 = vcombine.low %v5209_v45, %v5216_v33  ;;  %v4852_v32 = vcombine.high %v7257_v48, %v7257_v48 }
  0xf2   : > { %v5706_v60 = vshll.u32 %v9717_v46, 16  ;;  %v9764_v50 = vrot.slane %v4790_v41, %v8483_v26  ;;  %v9767_v61 = vrot.slane %v7255_v49, %v8483_v26 }
  0xf3   : > { %10789 = vst [vmem:[#allocation32_spill] sm:$0xff] %v9727_v51  ;;  %10790 = vst [vmem:[#allocation6_spill] sm:$0xff] %v9745_v15  ;;  %v5235_v34 = vcombine.low %v4744_v20, %v9727_v51 }
  0xf4   : > { %10791 = vst [vmem:[#allocation5_spill] sm:$0xff] %v9764_v50  ;;  %10792 = vst [vmem:[#allocation8_spill] sm:$0xff] %v9767_v61  ;;  %v5708_v37 = vrot.slane %v5706_v60, 1  ;;  %v5283_v20 = vcombine.low %v9745_v15, %v9764_v50  ;;  %v7287_v45 = vcombine.high %v9745_v15, %v9764_v50  ;;  %v5258_v60 = vrot.slane %v5236_v63, %v8483_v26 }
  0xf5   : > { %7783 = vmatmul.mubr.bf16.gmra.mxu0 %v9369_v40  ;;  %v9752_v40 = vsel %vm1291_vm1, %v3633_v38, %v3637_v18  ;;  %v5704_v38 = vor.u32 %v5702_v55, %v5700_v0  ;;  %v5225_v18 = vrot.slane %v5217_v3, %v8483_v26  ;;  %v5251_v0 = vrot.slane %v5235_v34, %v8483_v26 }
  0xf6   : > { %7786 = vmatprep.mubr.msk.bf16.mxu0 %vm8312_vm0, %v10740_v12  ;;  %v9779_v55 = vrot.slane %v4828_v10, %v8483_v26  ;;  %v5293_v34 = vrot.slane %v5283_v20, %v8483_v26  ;;  %v7259_v10 = vld.sshfl [vmem:[%s8460_s9 + $0x60] sm:$0x33 pattern:$0x75316420]  ;;  %v5710_v50 = vshrl.u32 %v9717_v46, 16 }
  0xf8   : > { %v1621_v62 = vpop.f32.mrf.mxu1  ;;  %7839 = vmatmul.mubr.bf16.gmra.mxu1 %v4178_v35  ;;  %v5234_v35 = vcombine.low %v9707_v16, %v4743_v54  ;;  %v9771_v54 = vrot.slane %v7256_v6, %v8483_v26  ;;  %10794 = vst [vmem:[#allocation10_spill] sm:$0xff] %v9779_v55  ;;  %v5265_v6 = vrot.slane %v7286_v36, %v8483_v26 }
  0xf9   : > { %7842 = vmatprep.mubr.msk.bf16.mxu1 %vm8312_vm0, %v10740_v12  ;;  %v9795_v36 = vsel %vm1291_vm1, %v5704_v38, %v5708_v37  ;;  %v9821_v51 = vor.u32 %v5710_v50, %v5708_v37 }
  0xfa   : > { %v7608_v43 = vpop.f32.mrf.mxu1  ;;  %10793 = vst [vmem:[#allocation7_spill] sm:$0xff] %v9771_v54  ;;  %v5244_v41 = vrot.slane %v5234_v35, %v8483_v26  ;;  %v4843_v3 = vcombine.high %v9771_v54, %v9771_v54  ;;  %v5285_v49 = vcombine.low %v9767_v61, %v9771_v54  ;;  %v5232_v35 = vrot.slane %v5218_v52, %v8483_v26  ;;  %v7258_v54 = vld.sshfl [vmem:[%s8460_s9 + $0x5c] sm:$0x1 pattern:$0x75316420] }
  0xfb   : > { %v5300_v43 = vrot.slane %v7287_v45, %v8483_v26  ;;  %v5267_v15 = vcombine.low %v5258_v60, %v5265_v6 }
  0xfc   : > { %v1624_v4 = vpop.f32.mrf.mxu1  ;;  %v5286_v61 = vcombine.low %v9779_v55, %v4843_v3  ;;  %v5307_v52 = vrot.slane %v5285_v49, %v8483_v26 }
  0xfd   : > { %7787 = vmatmul.mubr.bf16.gmra.mxu0 %v9399_v17  ;;  %v5266_v17 = vcombine.low %v5244_v41, %v5251_v0  ;;  %v5315_v49 = vcombine.low %v5293_v34, %v5300_v43  ;;  %v9819_v41 = vrot.slane %v7258_v54, %v8483_v26  ;;  %v4890_v0 = vcombine.high %v7259_v10, %v7259_v10 }
  0xfe   : > { %v7609_v33 = vpop.f32.mrf.mxu1  ;;  %7790 = vmatprep.mubr.msk.bf16.mxu0 %vm8312_vm0, %v10740_v12  ;;  %v5314_v3 = vrot.slane %v5286_v61, %v8483_v26  ;;  %v5281_v43 = vrot.slane %v5267_v15, %v8483_v26 }
  0xff   : > { %v1459_v33 = vpop.f32.mrf.mxu0  ;;  %10797 = vst [vmem:[#allocation11_spill] sm:$0xff] %v9819_v41  ;;  %v9834_v54 = vrot.slane %v4890_v0, %v8483_v26  ;;  %v5274_v34 = vrot.slane %v5266_v17, %v8483_v26  ;;  %v10800_v17 = vcombine.low %v9513_v22, %v9524_v8 }
 0x100   : > { %v1629_v63 = vpop.f32.mrf.mxu1  ;;  %7843 = vmatmul.mubr.bf16.gmra.mxu1 %v4227_v27  ;;  %v9801_v20 = vadd.f32 %v1621_v62, %v1459_v33  ;;  %v4844_v27 = vcombine.high %v9779_v55, %v9779_v55  ;;  %v9811_v62 = vrot.slane %v7257_v48, %v8483_v26  ;;  %v9813_v33 = vcombine.low %v5225_v18, %v5232_v35  ;;  %v7260_v18 = vld.sshfl [vmem:[%s8460_s9 + $0x64] sm:$0x33 pattern:$0x75316420] }
 0x101   : > { %7846 = vmatprep.mubr.msk.bf16.mxu1 %vm8312_vm0, %v10740_v12  ;;  %v7556_v38 = vpop.f32.mrf.mxu0  ;;  %v5316_v60 = vcombine.low %v5307_v52, %v5314_v3  ;;  %v9826_v48 = vrot.slane %v7259_v10, %v8483_v26  ;;  %10799 = vst [vmem:[#allocation13_spill] sm:$0xff] %v9834_v54  ;;  %v5323_v10 = vrot.slane %v5315_v49, %v8483_v26 }
 0x102   : > { %10795 = vst [vmem:[#allocation9_spill] sm:$0xff] %v9801_v20  ;;  %v7612_v45 = vpop.f32.mrf.mxu1  ;;  %10796 = vst [vmem:[#allocation12_spill] sm:$0xff] %v9811_v62  ;;  %v9816_v20 = vrot.slane %v4852_v32, %v8483_v26  ;;  %v4867_v61 = vcombine.high %v9811_v62, %v9811_v62  ;;  %v5332_v35 = vcombine.low %v4844_v27, %v9811_v62 }
 0x103   : > { %v1462_v55 = vpop.f32.mrf.mxu0  ;;  %v5335_v52 = vcombine.low %v9826_v48, %v9834_v54  ;;  %v4914_v3 = vcombine.high %v7260_v18, %v7260_v18  ;;  %v5330_v15 = vrot.slane %v5316_v60, %v8483_v26 }
 0x104   : > { %v1632_v38 = vpop.f32.mrf.mxu1  ;;  %v9829_v6 = vadd.f32 %v1624_v4, %v1462_v55  ;;  %v4868_v32 = vcombine.high %v9816_v20, %v9816_v20  ;;  %v5333_v4 = vcombine.low %v9816_v20, %v4867_v61  ;;  %v5342_v45 = vrot.slane %v5332_v35, %v8483_v26  ;;  %v7261_v61 = vld.sshfl [vmem:[%s8460_s9 + $0x68] sm:$0x1 pattern:$0x75316420] }
 0x105   : > { %v7557_v50 = vpop.f32.mrf.mxu0  ;;  %7791 = vmatmul.mubr.bf16.gmra.mxu0 %v9428_v19  ;;  %v5714_v19 = vshll.u32 %v9813_v33, 16  ;;  %v5363_v8 = vrot.slane %v5335_v52, %v8483_v26  ;;  %v4952_v52 = vcombine.high %v9431_v14, %v9431_v14 }
 0x106   : > { %10798 = vst [vmem:[#allocation14_spill] sm:$0xff] %v9829_v6  ;;  %v7613_v37 = vpop.f32.mrf.mxu1  ;;  %v5334_v55 = vcombine.low %v4868_v32, %v9819_v41  ;;  %v5349_v49 = vrot.slane %v5333_v4, %v8483_v26  ;;  %v9853_v32 = vrot.slane %v7260_v18, %v8483_v26  ;;  %7794 = vmatprep.mubr.msk.bf16.mxu0 %vm8312_vm0, %v10740_v12  ;;  %v5718_v18 = vshrl.u32 %v9813_v33, 16 }
 0x107   : > { %v1467_v27 = vpop.f32.mrf.mxu0  ;;  %v9864_v37 = vcombine.low %v5274_v34, %v5281_v43  ;;  %v9868_v4 = vrot.slane %v4914_v3, %v8483_v26  ;;  %v9877_v43 = vcombine.low %v5323_v10, %v5330_v15 }
 0x108   : > { %v1637_v0 = vpop.f32.mrf.mxu1  ;;  %7847 = vmatmul.mubr.bf16.gmra.mxu1 %v10800_v17  ;;  %10801 = vst [vmem:[#allocation16_spill] sm:$0xff] %v9853_v32  ;;  %v9855_v50 = vadd.f32 %v1629_v63, %v1467_v27  ;;  %v5356_v22 = vrot.slane %v5334_v55, %v8483_v26  ;;  %v5364_v63 = vcombine.low %v5342_v45, %v5349_v49 }
 0x109   : > { %7918 = vmatprep.mubr.msk.bf16.mxu1 %vm8312_vm0, %v10740_v12  ;;  %v7560_v60 = vpop.f32.mrf.mxu0  ;;  %10803 = vst [vmem:[#allocation18_spill] sm:$0xff] %v9864_v37  ;;  %10804 = vst [vmem:[#allocation17_spill] sm:$0xff] %v9868_v4  ;;  %v9871_v17 = vrot.slane %v7261_v61, %v8483_v26  ;;  %v7288_v55 = vcombine.high %v9826_v48, %v9834_v54  ;;  %v5382_v3 = vcombine.low %v9853_v32, %v9868_v4 }
 0x10a   : > { %10802 = vst [vmem:[#allocation15_spill] sm:$0xff] %v9855_v50  ;;  %v7616_v35 = vpop.f32.mrf.mxu1  ;;  %v5365_v27 = vcombine.low %v5356_v22, %v5363_v8  ;;  %10806 = vst [vmem:[#allocation19_spill] sm:$0xff] %v9877_v43  ;;  %v5372_v45 = vrot.slane %v5364_v63, %v8483_v26  ;;  %v7289_v49 = vcombine.high %v9853_v32, %v9868_v4  ;;  %v9891_v63 = vrot.slane %v5714_v19, 1 }
 0x10b   : > { %10805 = vst [vmem:[#allocation20_spill] sm:$0xff] %v9871_v17  ;;  %v1470_v60 = vpop.f32.mrf.mxu0  ;;  %v5384_v8 = vcombine.low %v9871_v17, %v9456_v31  ;;  %v5391_v14 = vrot.slane %v7288_v55, %v8483_v26  ;;  %v7263_v35 = vld.sshfl [vmem:[%s8460_s9 + $0x70] sm:$0x33 pattern:$0x75316420]  ;;  %v5722_v50 = vshll.u32 %v9864_v37, 16  ;;  %v5398_v6 = vrot.slane %v5382_v3, %v8483_v26 }
 0x10c   : > { %v1640_v34 = vpop.f32.mrf.mxu1  ;;  %v9884_v61 = vadd.f32 %v1632_v38, %v1470_v60  ;;  %v5379_v22 = vrot.slane %v5365_v27, %v8483_v26  ;;  %v5405_v38 = vrot.slane %v7289_v49, %v8483_v26  ;;  %v4967_v55 = vcombine.high %v9456_v31, %v9456_v31 }
 0x10d   : > { %v7561_v10 = vpop.f32.mrf.mxu0  ;;  %v5412_v27 = vrot.slane %v5384_v8, %v8483_v26  ;;  %7795 = vmatmul.mubr.bf16.gmra.mxu0 %v9752_v40  ;;  %v5726_v3 = vshrl.u32 %v9864_v37, 16  ;;  %v4976_v49 = vcombine.high %v7263_v35, %v7263_v35  ;;  %v5730_v40 = vshll.u32 %v9877_v43, 16 }
 0x10e   : > { %10807 = vst [vmem:[#allocation22_spill] sm:$0xff] %v9884_v61  ;;  %v7617_v15 = vpop.f32.mrf.mxu1  ;;  %v9896_v60 = vcombine.low %v5372_v45, %v5379_v22  ;;  %v9900_v61 = vrot.slane %v4952_v52, %v8483_v26  ;;  %v7264_v45 = vld.sshfl [vmem:[%s8460_s9 + $0x74] sm:$0x1 pattern:$0x75316420]  ;;  %v9909_v22 = vrot.slane %v7263_v35, %v8483_v26  ;;  %7866 = vmatprep.mubr.msk.bf16.mxu0 %vm8312_vm0, %v10740_v12 }
 0x10f   : > { %v1475_v10 = vpop.f32.mrf.mxu0  ;;  %v5413_v15 = vcombine.low %v5391_v14, %v5398_v6  ;;  %v5414_v8 = vcombine.low %v5405_v38, %v5412_v27  ;;  %v9931_v38 = vrot.slane %v7264_v45, %v8483_v26  ;;  %v5720_v45 = vor.u32 %v5718_v18, %v9891_v63 }
 0x110   : > { %10808 = vst [vmem:[#allocation21_spill] sm:$0xff] %v9900_v61  ;;  %v1645_v19 = vpop.f32.mrf.mxu1  ;;  %7919 = vmatmul.mubr.bf16.vlgmr.msra.gmra.mxu1 %v9757_v2  ;;  %v9911_v52 = vadd.f32 %v1637_v0, %v1475_v10  ;;  %v5734_v2 = vshrl.u32 %v9877_v43, 16  ;;  %v5738_v17 = vshll.u32 %v9896_v60, 16  ;;  %v4968_v35 = vcombine.high %v9900_v61, %v9900_v61 }
 0x111   : > { %7922 = vmatprep.mubr.msk.bf16.mxu1 %vm8312_vm0, %v10740_v12  ;;  %v7564_v6 = vpop.f32.mrf.mxu0  ;;  %v9923_v0 = vrot.slane %v4976_v49, %v8483_v26  ;;  %v4991_v10 = vcombine.high %v9909_v22, %v9909_v22  ;;  %v5421_v31 = vrot.slane %v5413_v15, %v8483_v26  ;;  %v5428_v4 = vrot.slane %v5414_v8, %v8483_v26  ;;  %v8201_v15 = vld [vmem:[%s10653_s1 + $0x238] sm:$0xff]  }
 0x112   : > { %10809 = vst [vmem:[#allocation24_spill] sm:$0xff] %v9911_v52  ;;  %v7620_v14 = vpop.f32.mrf.mxu1  ;;  %v7265_v52 = vld.sshfl [vmem:[%s8460_s9 + $0x78] sm:$0x33 pattern:$0x75316420]  ;;  %v5430_v27 = vcombine.low %v9900_v61, %v4967_v55  ;;  %v5724_v43 = vrot.slane %v5722_v50, 1  ;;  %v5431_v32 = vcombine.low %v4968_v35, %v9909_v22 }
 0x113   : > { %v1478_v6 = vpop.f32.mrf.mxu0  ;;  %v4992_v49 = vcombine.high %v9923_v0, %v9923_v0  ;;  %v5432_v37 = vcombine.low %v9923_v0, %v4991_v10  ;;  %v5732_v8 = vrot.slane %v5730_v40, 1  ;;  %v9945_v55 = vrot.slane %v7265_v52, %v8483_v26  ;;  %s8314_s9 = smov [#allocation2]  }
 0x114   : > { %v1648_v14 = vpop.f32.mrf.mxu1  ;;  %v9938_v54 = vadd.f32 %v1640_v34, %v1478_v6  ;;  %v5728_v41 = vor.u32 %v5726_v3, %v5724_v43  ;;  %v5440_v35 = vrot.slane %v5430_v27, %v8483_v26  ;;  %v5447_v34 = vrot.slane %v5431_v32, %v8483_v26  ;;  %s8221_s10 = sshll.u32 %s8314_s9, 4  ;;  %s8222_s10 = int_to_ptr.vmem [resolvable:$false] %s8221_s10 }
 0x115   : > { %v7565_v50 = vpop.f32.mrf.mxu0  ;;  %v5433_v62 = vcombine.low %v4992_v49, %v9931_v38  ;;  %v5736_v10 = vor.u32 %v5734_v2, %v5732_v8  ;;  %v5740_v6 = vrot.slane %v5738_v17, 1  ;;  %v6358_v18 = vcombine.low %v9931_v38, %v9945_v55  ;;  %7867 = vmatmul.mubr.bf16.vlgmr.msra.gmra.mxu0 %v9626_v11  ;;  %s8223_s14 = scalar_lea.vmem %s8222_s10, 4608  ;;  %p8224_p2 = scmp.lt.s32.totalorder %s10595_s27, %s8222_s10 }
 0x116   : > { %10810 = vst [vmem:[#allocation23_spill] sm:$0xff] %v9938_v54  ;;  %v7621_v61 = vpop.f32.mrf.mxu1  ;;  %v9950_v54 = vcombine.low %v5421_v31, %v5428_v4  ;;  %v4533_v32 = vcombine.high %v9501_v5, %v9501_v5  ;;  %7955 = vmatpush3.bf16.msra.mxu0 %v8201_v15  ;;  %7870 = vmatprep.mubr.msk.bf16.mxu0 %vm8312_vm0, %v10740_v12  ;;  %v8202_v31 = vld [vmem:[%s10653_s1 + $0x230] sm:$0xff]   ;;  %p8225_p4 = scmp.lt.s32.totalorder %s8223_s14, %s8217_s13 }
 0x117   : > { %v1483_v40 = vpop.f32.mrf.mxu0  ;;  %v5454_v61 = vrot.slane %v5432_v37, %v8483_v26  ;;  %v5461_v3 = vrot.slane %v5433_v62, %v8483_v26  ;;  %v5717_v11 = vsel %vm1291_vm1, %v9821_v51, %v9891_v63  ;;  %v4534_v62 = vcombine.high %v9504_v13, %v9504_v13  ;;  %7956 = vmatprep.subr.bf16.mxu0 %v10740_v12 }
 0x118   : > { %v1653_v52 = vpop.f32.mrf.mxu1  ;;  %7923 = vmatmul.mubr.bf16.gmra.mxu1 %v9795_v36  ;;  %v9960_v2 = vadd.f32 %v1645_v19, %v1483_v40  ;;  %v5742_v36 = vshrl.u32 %v9896_v60, 16  ;;  %v9977_v4 = vsel %vm1291_vm1, %v5720_v45, %v5724_v43  ;;  %v9979_v17 = vcombine.low %v5440_v35, %v5447_v34  ;;  %p8226_p5 = por %p8225_p4, %p8224_p2 }
 0x119   : > { %v7568_v5 = vpop.f32.mrf.mxu0  ;;  %7926 = vmatprep.mubr.msk.bf16.mxu1 %vm8312_vm0, %v10740_v12  ;;  %v4557_v51 = vcombine.high %v9516_v25, %v9516_v25  ;;  %v9984_v63 = vsel %vm1291_vm1, %v5728_v41, %v5732_v8  ;;  %v9987_v19 = vsel %vm1291_vm1, %v5736_v10, %v5740_v6  ;;  %v5746_v27 = vshll.u32 %v9950_v54, 16  ;;  %v8203_v41 = vld [vmem:[%s10653_s1 + $0x228] sm:$0xff]  }
 0x11a   : > { %v7624_v37 = vpop.f32.mrf.mxu1  ;;  %v4558_v49 = vcombine.high %v9527_v23, %v9527_v23  ;;  %v5463_v43 = vcombine.low %v5454_v61, %v5461_v3  ;;  %v5963_v45 = vcombine.low %v9504_v13, %v4533_v32  ;;  %v5964_v35 = vcombine.low %v4534_v62, %v9516_v25  ;;  %7957 = vmatpush3.bf16.msra.mxu0 %v8202_v31  ;;  %p8227_p6 = pnand %p8226_p5, %p8220_p1 }
 0x11b   : > { %v1486_v15 = vpop.f32.mrf.mxu0  ;;  %v5965_v34 = vcombine.low %v9527_v23, %v4557_v51  ;;  %v5744_v8 = vor.u32 %v5742_v36, %v5740_v6  ;;  %v6012_v5 = vcombine.low %v9552_v59, %v9555_v21  ;;  %7958 = vmatprep.subr.bf16.mxu0 %v10740_v12  ;;  %v5470_v13 = vrot.slane %v9979_v17, %v8483_v26 }
 0x11c   : > { %v1656_v50 = vpop.f32.mrf.mxu1  ;;  %v9995_v40 = vadd.f32 %v1648_v14, %v1486_v15  ;;  %v5966_v10 = vcombine.low %v4558_v49, %v9535_v1  ;;  %v5973_v25 = vrot.slane %v5963_v45, %v8483_v26  ;;  %v5980_v23 = vrot.slane %v5964_v35, %v8483_v26 }
 0x11d   : > { %v7569_v61 = vpop.f32.mrf.mxu0  ;;  %v5987_v14 = vrot.slane %v5965_v34, %v8483_v26  ;;  %v7338_v1 = vcombine.high %v9552_v59, %v9555_v21  ;;  %v6014_v32 = vcombine.low %v9558_v9, %v9575_v56  ;;  %v7339_v31 = vcombine.high %v9558_v9, %v9575_v56  ;;  %7871 = vmatmul.mubr.bf16.gmra.mxu0 %v9674_v29  ;;  %v8204_v59 = vld [vmem:[%s10653_s1 + $0x220] sm:$0xff]  }
 0x11e   : > { %v7625_v3 = vpop.f32.mrf.mxu1  ;;  %v5994_v6 = vrot.slane %v5966_v10, %v8483_v26  ;;  %v10017_v37 = vrot.slane %v5746_v27, 1  ;;  %v5477_v17 = vrot.slane %v5463_v43, %v8483_v26  ;;  %v5995_v51 = vcombine.low %v5973_v25, %v5980_v23  ;;  %7874 = vmatprep.mubr.msk.bf16.mxu0 %vm8312_vm0, %v10740_v12  ;;  %7959 = vmatpush3.bf16.msra.mxu0 %v8203_v41 }
 0x11f   : > { %v1491_v36 = vpop.f32.mrf.mxu0  ;;  %v6022_v49 = vrot.slane %v6012_v5, %v8483_v26  ;;  %v6029_v9 = vrot.slane %v7338_v1, %v8483_v26  ;;  %7960 = vmatprep.subr.bf16.mxu0 %v10740_v12  ;;  %v6043_v27 = vrot.slane %v7339_v31, %v8483_v26  ;;  %v4657_v35 = vcombine.high %v9615_v24, %v9615_v24  ;;  %v8205_v31 = vld [vmem:[%s10653_s1 + $0x218] sm:$0xff]  }
 0x120   : > { %v1661_v62 = vpop.f32.mrf.mxu1  ;;  %7927 = vmatmul.mubr.bf16.gmra.mxu1 %v5717_v11  ;;  %v10021_v15 = vadd.f32 %v1653_v52, %v1491_v36  ;;  %v5996_v21 = vcombine.low %v5987_v14, %v5994_v6  ;;  %v6003_v52 = vrot.slane %v5995_v51, %v8483_v26  ;;  %v6036_v11 = vrot.slane %v6014_v32, %v8483_v26 }
 0x121   : > { %v7572_v56 = vpop.f32.mrf.mxu0  ;;  %7930 = vmatprep.mubr.msk.bf16.mxu1 %vm8312_vm0, %v10740_v12  ;;  %v6044_v45 = vcombine.low %v6022_v49, %v6029_v9  ;;  %v4658_v34 = vcombine.high %v9620_v53, %v9620_v53  ;;  %v10042_v5 = vsel %vm1291_vm1, %v5744_v8, %v10017_v37  ;;  %v5682_v61 = vrot.slane %v9945_v55, %v8483_v26 }
 0x122   : > { %v7628_v29 = vpop.f32.mrf.mxu1  ;;  %v6010_v43 = vrot.slane %v5996_v21, %v8483_v26  ;;  %v6045_v3 = vcombine.low %v6036_v11, %v6043_v27  ;;  %v4681_v25 = vcombine.high %v9629_v47, %v9629_v47  ;;  %7961 = vmatpush3.bf16.msra.mxu0 %v8204_v59  ;;  %v6061_v1 = vcombine.low %v9600_v58, %v9615_v24 }
 0x123   : > { %v1494_v41 = vpop.f32.mrf.mxu0  ;;  %v10053_v6 = vrot.slane %v6044_v45, %v8483_v26  ;;  %7962 = vmatprep.subr.bf16.mxu0 %v10740_v12  ;;  %v10061_v36 = vcombine.low %v5470_v13, %v5477_v17  ;;  %v6062_v51 = vcombine.low %v9620_v53, %v4657_v35  ;;  %v6063_v49 = vcombine.low %v4658_v34, %v9629_v47 }
 0x124   : > { %v1664_v10 = vpop.f32.mrf.mxu1  ;;  %v10048_v23 = vadd.f32 %v1656_v50, %v1494_v41  ;;  %v10050_v14 = vcombine.low %v6003_v52, %v6010_v43  ;;  %v10064_v50 = vrot.slane %v6045_v3, %v8483_v26  ;;  %v6064_v59 = vcombine.low %v9638_v44, %v4681_v25  ;;  %v8206_v52 = vld [vmem:[%s10653_s1 + $0x210] sm:$0xff]  }
 0x125   : > { %v7573_v8 = vpop.f32.mrf.mxu0  ;;  %v6071_v58 = vrot.slane %v6061_v1, %v8483_v26  ;;  %v4682_v24 = vcombine.high %v9638_v44, %v9638_v44  ;;  %v6111_v21 = vcombine.low %v9669_v28, %v9672_v7  ;;  %7875 = vmatmul.mubr.bf16.gmra.mxu0 %v9717_v46  ;;  %v6078_v47 = vrot.slane %v6062_v51, %v8483_v26  ;;  %v10811_v51 = vld [vmem:[#allocation32_spill] sm:$0xff] }
 0x126   : > { %v7629_v32 = vpop.f32.mrf.mxu1  ;;  %v6060_v53 = vcombine.low %v10053_v6, %v10064_v50  ;;  %v6085_v17 = vrot.slane %v6063_v49, %v8483_v26  ;;  %7878 = vmatprep.mubr.msk.bf16.mxu0 %vm8312_vm0, %v10740_v12  ;;  %v6092_v44 = vrot.slane %v6064_v59, %v8483_v26  ;;  %7963 = vmatpush3.bf16.msra.mxu0 %v8205_v31 }
 0x127   : > { %v1499_v9 = vpop.f32.mrf.mxu0  ;;  %v6110_v46 = vcombine.low %v4682_v24, %v9663_v42  ;;  %v6093_v11 = vcombine.low %v6071_v58, %v6078_v47  ;;  %v6113_v27 = vcombine.low %v9678_v30, %v9707_v16  ;;  %v6127_v43 = vrot.slane %v6111_v21, %v8483_v26  ;;  %7964 = vmatprep.subr.bf16.mxu0 %v10740_v12  ;;  %v8207_v24 = vld [vmem:[%s10653_s1 + $0x208] sm:$0xff]  }
 0x128   : > { %v1669_v13 = vpop.f32.mrf.mxu1  ;;  %7931 = vmatmul.mubr.bf16.gmra.mxu1 %v9977_v4  ;;  %v10080_v56 = vadd.f32 %v1661_v62, %v1499_v9  ;;  %v7340_v62 = vcombine.high %v9669_v28, %v9672_v7  ;;  %v6094_v45 = vcombine.low %v6085_v17, %v6092_v44  ;;  %v4781_v35 = vcombine.high %v9730_v57, %v9730_v57  ;;  %v10812_v47 = vld [vmem:[#allocation6_spill] sm:$0xff] }
 0x129   : > { %7934 = vmatprep.mubr.msk.bf16.mxu1 %vm8312_vm0, %v10740_v12  ;;  %v7576_v4 = vpop.f32.mrf.mxu0  ;;  %v6120_v42 = vrot.slane %v6110_v46, %v8483_v26  ;;  %v4782_v34 = vcombine.high %v9733_v39, %v9733_v39  ;;  %v6101_v28 = vrot.slane %v6093_v11, %v8483_v26  ;;  %v6141_v25 = vrot.slane %v6113_v27, %v8483_v26  ;;  %v10813_v27 = vld [vmem:[#allocation5_spill] sm:$0xff] }
 0x12a   : > { %v7632_v29 = vpop.f32.mrf.mxu1  ;;  %v6134_v7 = vrot.slane %v7340_v62, %v8483_v26  ;;  %v7341_v1 = vcombine.high %v9678_v30, %v9707_v16  ;;  %v6108_v32 = vrot.slane %v6094_v45, %v8483_v26  ;;  %v6160_v49 = vcombine.low %v10811_v51, %v9730_v57  ;;  %7965 = vmatpush3.bf16.msra.mxu0 %v8206_v52  ;;  %v8208_v45 = vld [vmem:[%s10653_s1 + $0x200] sm:$0xff]  }
 0x12b   : > { %v1502_v41 = vpop.f32.mrf.mxu0  ;;  %v6142_v31 = vcombine.low %v6120_v42, %v6127_v43  ;;  %v6161_v9 = vcombine.low %v9733_v39, %v4781_v35  ;;  %v6162_v30 = vcombine.low %v4782_v34, %v10812_v47  ;;  %7966 = vmatprep.subr.bf16.mxu0 %v10740_v12  ;;  %v4805_v44 = vcombine.high %v10812_v47, %v10812_v47  ;;  %v10814_v34 = vld [vmem:[#allocation10_spill] sm:$0xff] }
 0x12c   : > { %v1672_v3 = vpop.f32.mrf.mxu1  ;;  %v10107_v8 = vadd.f32 %v1664_v10, %v1502_v41  ;;  %v6143_v21 = vcombine.low %v6134_v7, %v6141_v25  ;;  %v6169_v16 = vrot.slane %v7341_v1, %v8483_v26  ;;  %v10119_v10 = vcombine.low %v6101_v28, %v6108_v32  ;;  %v10815_v41 = vld [vmem:[#allocation7_spill] sm:$0xff]  ;;  %v10816_v25 = vld [vmem:[#allocation8_spill] sm:$0xff] }
 0x12d   : > { %v7577_v59 = vpop.f32.mrf.mxu0  ;;  %v6150_v57 = vrot.slane %v6142_v31, %v8483_v26  ;;  %v6176_v17 = vrot.slane %v6160_v49, %v8483_v26  ;;  %7879 = vmatmul.mubr.bf16.gmra.mxu0 %v9813_v33  ;;  %v6183_v29 = vrot.slane %v6161_v9, %v8483_v26  ;;  %v6190_v52 = vrot.slane %v6162_v30, %v8483_v26 }
 0x12e   : > { %v7633_v58 = vpop.f32.mrf.mxu1  ;;  %v6157_v39 = vrot.slane %v6143_v21, %v8483_v26  ;;  %7882 = vmatprep.mubr.msk.bf16.mxu0 %vm8312_vm0, %v10740_v12  ;;  %v4806_v33 = vcombine.high %v10813_v27, %v10813_v27  ;;  %7967 = vmatpush3.bf16.msra.mxu0 %v8207_v24  ;;  %v6208_v35 = vcombine.low %v10813_v27, %v4805_v44  ;;  %v10817_v21 = vld [vmem:[#allocation12_spill] sm:$0xff] }
 0x12f   : > { %v1507_v46 = vpop.f32.mrf.mxu0  ;;  %v6191_v62 = vcombine.low %v6169_v16, %v6176_v17  ;;  %v6210_v28 = vcombine.low %v10815_v41, %v10814_v34  ;;  %7968 = vmatprep.subr.bf16.mxu0 %v10740_v12  ;;  %v7342_v32 = vcombine.high %v10815_v41, %v10814_v34  ;;  %v4905_v31 = vcombine.high %v9826_v48, %v9826_v48  ;;  %v10821_v41 = vld [vmem:[#allocation16_spill] sm:$0xff] }
 0x130   : > { %v1677_v4 = vpop.f32.mrf.mxu1  ;;  %7935 = vmatmul.mubr.bf16.gmra.mxu1 %v9984_v63  ;;  %v10130_v11 = vadd.f32 %v1669_v13, %v1507_v46  ;;  %v10141_v42 = vcombine.low %v6150_v57, %v6157_v39  ;;  %v6192_v13 = vcombine.low %v6183_v29, %v6190_v52  ;;  %v6209_v1 = vcombine.low %v4806_v33, %v10816_v25  ;;  %v10818_v39 = vld [vmem:[#allocation11_spill] sm:$0xff]  ;;  %v10819_v52 = vld [vmem:[#allocation13_spill] sm:$0xff] }
 0x131   : > { %7938 = vmatprep.mubr.msk.bf16.mxu1 %vm8312_vm0, %v10740_v12  ;;  %v7580_v43 = vpop.f32.mrf.mxu0  ;;  %v6199_v7 = vrot.slane %v6191_v62, %v8483_v26  ;;  %v6218_v58 = vrot.slane %v6208_v35, %v8483_v26  ;;  %v6232_v24 = vrot.slane %v6210_v28, %v8483_v26  ;;  %v6257_v9 = vcombine.low %v10817_v21, %v9816_v20 }
 0x132   : > { %v7636_v63 = vpop.f32.mrf.mxu1  ;;  %v6206_v59 = vrot.slane %v6192_v13, %v8483_v26  ;;  %v6225_v30 = vrot.slane %v6209_v1, %v8483_v26  ;;  %v6239_v16 = vrot.slane %v7342_v32, %v8483_v26  ;;  %v7343_v57 = vcombine.high %v10817_v21, %v9816_v20  ;;  %7969 = vmatpush3.bf16.msra.mxu0 %v8208_v45  ;;  %v10820_v13 = vld [vmem:[#allocation18_spill] sm:$0xff] }
 0x133   : > { %v1510_v51 = vpop.f32.mrf.mxu0  ;;  %v6259_v29 = vcombine.low %v10818_v39, %v9826_v48  ;;  %v6260_v62 = vcombine.low %v10819_v52, %v4905_v31  ;;  %v4906_v63 = vcombine.high %v10819_v52, %v10819_v52  ;;  %v5750_v35 = vshrl.u32 %v9950_v54, 16 }
 0x134   : > { %v1680_v49 = vpop.f32.mrf.mxu1  ;;  %v10158_v47 = vadd.f32 %v1672_v3, %v1510_v51  ;;  %v10164_v46 = vcombine.low %v6199_v7, %v6206_v59  ;;  %v6267_v3 = vrot.slane %v6257_v9, %v8483_v26  ;;  %v6240_v27 = vcombine.low %v6218_v58, %v6225_v30  ;;  %v10822_v58 = vld [vmem:[#allocation17_spill] sm:$0xff] }
 0x135   : > { %v7581_v17 = vpop.f32.mrf.mxu0  ;;  %v6241_v33 = vcombine.low %v6232_v24, %v6239_v16  ;;  %v6274_v43 = vrot.slane %v7343_v57, %v8483_v26  ;;  %7883 = vmatmul.mubr.bf16.gmra.mxu0 %v10820_v13  ;;  %v6281_v48 = vrot.slane %v6259_v29, %v8483_v26  ;;  %v6288_v34 = vrot.slane %v6260_v62, %v8483_v26  ;;  %v10823_v30 = vld [vmem:[#allocation21_spill] sm:$0xff]  ;;  %v10825_v62 = vld [vmem:[#allocation20_spill] sm:$0xff] }
 0x136   : > { %v7637_v44 = vpop.f32.mrf.mxu1  ;;  %v4929_v28 = vcombine.high %v10821_v41, %v10821_v41  ;;  %7886 = vmatprep.mubr.msk.bf16.mxu0 %vm8312_vm0, %v10740_v12  ;;  %v5754_v25 = vshll.u32 %v10061_v36, 16  ;;  %v6306_v24 = vcombine.low %v4906_v63, %v10821_v41  ;;  %v10824_v16 = vld [vmem:[#allocation33_spill] sm:$0xff] }
 0x137   : > { %v1515_v20 = vpop.f32.mrf.mxu0  ;;  %v6255_v1 = vrot.slane %v6241_v33, %v8483_v26  ;;  %v6289_v51 = vcombine.low %v6267_v3, %v6274_v43  ;;  %v6290_v59 = vcombine.low %v6281_v48, %v6288_v34  ;;  %v6309_v57 = vcombine.low %v10824_v16, %v10823_v30 }
 0x138   : > { %v1685_v45 = vpop.f32.mrf.mxu1  ;;  %7939 = vmatmul.mubr.bf16.gmra.mxu1 %v9987_v19  ;;  %v10180_v7 = vadd.f32 %v1677_v4, %v1515_v20  ;;  %v6248_v19 = vrot.slane %v6240_v27, %v8483_v26  ;;  %v4930_v4 = vcombine.high %v10822_v58, %v10822_v58  ;;  %v6307_v9 = vcombine.low %v10822_v58, %v4929_v28 }
 0x139   : > { %7942 = vmatprep.mubr.msk.bf16.mxu1 %vm8312_vm0, %v10740_v12  ;;  %v7584_v32 = vpop.f32.mrf.mxu0  ;;  %v7344_v17 = vcombine.high %v10824_v16, %v10823_v30  ;;  %v6297_v29 = vrot.slane %v6289_v51, %v8483_v26  ;;  %v6304_v52 = vrot.slane %v6290_v59, %v8483_v26  ;;  %v6316_v27 = vrot.slane %v6306_v24, %v8483_v26  ;;  %v10826_v59 = vld [vmem:[#allocation19_spill] sm:$0xff] }
 0x13a   : > { %v7640_v31 = vpop.f32.mrf.mxu1  ;;  %v10192_v21 = vcombine.low %v6248_v19, %v6255_v1  ;;  %v6308_v3 = vcombine.low %v4930_v4, %v10825_v62  ;;  %v6323_v43 = vrot.slane %v6307_v9, %v8483_v26  ;;  %v6337_v63 = vrot.slane %v6309_v57, %v8483_v26 }
 0x13b   : > { %v1518_v44 = vpop.f32.mrf.mxu0  ;;  %v6356_v20 = vcombine.low %v9909_v22, %v9923_v0  ;;  %v10209_v34 = vcombine.low %v6297_v29, %v6304_v52  ;;  %v7345_v28 = vcombine.high %v9909_v22, %v9923_v0  ;;  %v6365_v19 = vrot.slane %v7344_v17, %v8483_v26 }
 0x13c   : > { %v1688_v39 = vpop.f32.mrf.mxu1  ;;  %v10203_v33 = vadd.f32 %v1680_v49, %v1518_v44  ;;  %v6330_v41 = vrot.slane %v6308_v3, %v8483_v26  ;;  %v5689_v49 = vrot.slane %v5682_v61, %v8483_v26  ;;  %v6338_v1 = vcombine.low %v6316_v27, %v6323_v43 }
 0x13d   : > { %v7585_v13 = vpop.f32.mrf.mxu0  ;;  %v6372_v32 = vrot.slane %v6356_v20, %v8483_v26  ;;  %v6386_v31 = vrot.slane %v6358_v18, %v8483_v26  ;;  %7887 = vmatmul.mubr.bf16.gmra.mxu0 %v10826_v59  ;;  %v5752_v22 = vor.u32 %v5750_v35, %v10017_v37  ;;  %v6379_v4 = vrot.slane %v7345_v28, %v8483_v26 }
 0x13e   : > { %v7641_v48 = vpop.f32.mrf.mxu1  ;;  %v6339_v0 = vcombine.low %v6330_v41, %v6337_v63  ;;  %7890 = vmatprep.mubr.msk.bf16.mxu0 %vm8312_vm0, %v10740_v12  ;;  %v5756_v38 = vrot.slane %v5754_v25, 1  ;;  %v6346_v55 = vrot.slane %v6338_v1, %v8483_v26  ;;  %v5758_v44 = vshrl.u32 %v10061_v36, 16  ;;  %v10827_v63 = vld [vmem:[#allocation9_spill] sm:$0xff] }
 0x13f   : > { %v1523_v51 = vpop.f32.mrf.mxu0  ;;  %v6387_v18 = vcombine.low %v6365_v19, %v6372_v32  ;;  %v6388_v37 = vcombine.low %v6379_v4, %v6386_v31  ;;  %v5762_v29 = vshll.u32 %v5689_v49, 16  ;;  %v10828_v49 = vld [vmem:[#allocation14_spill] sm:$0xff] }
 0x140   : > { %v3443_v58 = vpop.f32.mrf.mxu1  ;;  %7943 = vmatmul.mubr.bf16.gmra.mxu1 %v10042_v5  ;;  %v10228_v61 = vadd.f32 %v1685_v45, %v1523_v51  ;;  %v6353_v5 = vrot.slane %v6339_v0, %v8483_v26  ;;  %v5757_v25 = vsel %vm1291_vm1, %v5752_v22, %v5756_v38  ;;  %v10829_v0 = vld [vmem:[#allocation15_spill] sm:$0xff] }
 0x141   : > { %7946 = vmatprep.mubr.msk.bf16.mxu1 %vm8312_vm0, %v10740_v12  ;;  %v7588_v24 = vpop.f32.mrf.mxu0  ;;  %v10237_v35 = vrot.slane %v6387_v18, %v8483_v26  ;;  %v10242_v57 = vrot.slane %v6388_v37, %v8483_v26  ;;  %v5764_v20 = vrot.slane %v5762_v29, 1 }
 0x142   : > { %v7712_v9 = vpop.f32.mrf.mxu1  ;;  %v10239_v16 = vcombine.low %v6346_v55, %v6353_v5 }
 0x143   : > { %v1526_v45 = vpop.f32.mrf.mxu0  ;;  %v6403_v3 = vcombine.low %v10237_v35, %v10242_v57  ;;  %v10830_v9 = vld [vmem:[#allocation22_spill] sm:$0xff] }
 0x144   : > { %v3446_v30 = vpop.f32.mrf.mxu1  ;;  %v10244_v17 = vadd.f32 %v1688_v39, %v1526_v45  ;;  %v5760_v39 = vor.u32 %v5758_v44, %v5756_v38  ;;  %v10831_v44 = vld [vmem:[#allocation24_spill] sm:$0xff] }
 0x145   : > { %v7589_v52 = vpop.f32.mrf.mxu0  ;;  %7891 = vmatmul.mubr.bf16.gmra.mxu0 %v9896_v60 }
 0x146   : > { %v7713_v62 = vpop.f32.mrf.mxu1  ;;  %7894 = vmatprep.mubr.msk.bf16.mxu0 %vm8312_vm0, %v10740_v12  ;;  %v5765_v1 = vsel %vm1291_vm1, %v5760_v39, %v5764_v20 }
 0x147   : > { %v2241_v27 = vpop.f32.mrf.mxu0 }
 0x148   : > { %v3451_v43 = vpop.f32.mrf.mxu1  ;;  %7947 = vmatmul.mubr.bf16.gmra.mxu1 %v5757_v25  ;;  %v2312_v26 = vadd.f32 %v2241_v27, %v10827_v63 }
 0x149   : > { %7950 = vmatprep.mubr.msk.bf16.mxu1 %vm8312_vm0, %v10740_v12  ;;  %v7660_v13 = vpop.f32.mrf.mxu0 }
 0x14a   : > { %v7716_v48 = vpop.f32.mrf.mxu1  ;;  %v10256_v41 = vadd.f32 %v3443_v58, %v2312_v26  ;;  %v10832_v26 = vld [vmem:[#allocation23_spill] sm:$0xff] }
 0x14b   : > { %v2244_v28 = vpop.f32.mrf.mxu0 }
 0x14c   : > { %v3454_v19 = vpop.f32.mrf.mxu1  ;;  %v2313_v60 = vadd.f32 %v2244_v28, %v10828_v49 }
 0x14d   : > { %v7661_v32 = vpop.f32.mrf.mxu0  ;;  %7895 = vmatmul.mubr.bf16.gmra.mxu0 %v9950_v54 }
 0x14e   : > { %v7717_v31 = vpop.f32.mrf.mxu1  ;;  %v10260_v51 = vadd.f32 %v3446_v30, %v2313_v60  ;;  %7898 = vmatprep.mubr.msk.bf16.mxu0 %vm8312_vm0, %v10740_v12 }
 0x14f   : > { %v2249_v59 = vpop.f32.mrf.mxu0 }
 0x150   : > { %v3459_v22 = vpop.f32.mrf.mxu1  ;;  %7951 = vmatmul.mubr.bf16.gmra.mxu1 %v5765_v1  ;;  %v2314_v4 = vadd.f32 %v2249_v59, %v10829_v0 }
 0x151   : > { %8022 = vmatprep.mubr.msk.bf16.mxu1 %vm8312_vm0, %v10740_v12  ;;  %v7664_v58 = vpop.f32.mrf.mxu0 }
 0x152   : > { %v7720_v38 = vpop.f32.mrf.mxu1  ;;  %v10268_v55 = vadd.f32 %v3451_v43, %v2314_v4 }
 0x153   : > { %v2252_v18 = vpop.f32.mrf.mxu0 }
 0x154   : > { %v3462_v24 = vpop.f32.mrf.mxu1  ;;  %v2315_v5 = vadd.f32 %v2252_v18, %v10830_v9 }
 0x155   : > { %v7665_v37 = vpop.f32.mrf.mxu0  ;;  %7899 = vmatmul.mubr.bf16.gmra.mxu0 %v10061_v36 }
 0x156   : > { %v7721_v54 = vpop.f32.mrf.mxu1  ;;  %v10271_v45 = vadd.f32 %v3454_v19, %v2315_v5  ;;  %7970 = vmatprep.mubr.msk.bf16.mxu0 %vm8312_vm0, %v10740_v12 }
 0x157   : > { %v2257_v30 = vpop.f32.mrf.mxu0 }
 0x158   : > { %v3467_v25 = vpop.f32.mrf.mxu1  ;;  %v2316_v29 = vadd.f32 %v2257_v30, %v10831_v44 }
 0x159   : > { %v7668_v52 = vpop.f32.mrf.mxu0 }
 0x15a   : > { %v7724_v62 = vpop.f32.mrf.mxu1  ;;  %v10277_v27 = vadd.f32 %v3459_v22, %v2316_v29 }
 0x15b   : > { %v2260_v43 = vpop.f32.mrf.mxu0 }
 0x15c   : > { %v3470_v63 = vpop.f32.mrf.mxu1  ;;  %v2317_v39 = vadd.f32 %v2260_v43, %v10832_v26 }
 0x15d   : > { %v7669_v20 = vpop.f32.mrf.mxu0  ;;  %7971 = vmatmul.mubr.bf16.vlgmr.msra.gmra.mxu0 %v10050_v14  ;;  %v8209_v14 = vld [vmem:[%s10655_s3 + $0x38] sm:$0xff]  }
 0x15e   : > { %v7725_v13 = vpop.f32.mrf.mxu1  ;;  %v10280_v48 = vadd.f32 %v3462_v24, %v2317_v39  ;;  %7974 = vmatprep.mubr.msk.bf16.mxu0 %vm8312_vm0, %v10740_v12  ;;  %8007 = vmatpush3.bf16.msra.mxu1 %v8209_v14 }
 0x15f   : > { %v2265_v28 = vpop.f32.mrf.mxu0  ;;  %8008 = vmatprep.subr.bf16.mxu1 %v10740_v12  ;;  %v8211_v13 = vld [vmem:[%s10655_s3 + $0x28] sm:$0xff]  }
 0x160   : > { %v3475_v36 = vpop.f32.mrf.mxu1  ;;  %v2318_v19 = vadd.f32 %v2265_v28, %v9960_v2 }
 0x161   : > { %v7672_v49 = vpop.f32.mrf.mxu0 }
 0x162   : > { %v7728_v60 = vpop.f32.mrf.mxu1  ;;  %v10286_v1 = vadd.f32 %v3467_v25, %v2318_v19  ;;  %v8210_v25 = vld [vmem:[%s10655_s3 + $0x30] sm:$0xff]  }
 0x163   : > { %v2268_v32 = vpop.f32.mrf.mxu0  ;;  %8009 = vmatpush3.bf16.msra.mxu1 %v8210_v25 }
 0x164   : > { %v3478_v31 = vpop.f32.mrf.mxu1  ;;  %v2319_v59 = vadd.f32 %v2268_v32, %v9995_v40  ;;  %8010 = vmatprep.subr.bf16.mxu1 %v10740_v12 }
 0x165   : > { %v7673_v22 = vpop.f32.mrf.mxu0  ;;  %7975 = vmatmul.mubr.bf16.gmra.mxu0 %v6060_v53 }
 0x166   : > { %v7729_v0 = vpop.f32.mrf.mxu1  ;;  %v10289_v4 = vadd.f32 %v3470_v63, %v2319_v59  ;;  %7978 = vmatprep.mubr.msk.bf16.mxu0 %vm8312_vm0, %v10740_v12 }
 0x167   : > { %v2273_v2 = vpop.f32.mrf.mxu0  ;;  %8011 = vmatpush3.bf16.msra.mxu1 %v8211_v13 }
 0x168   : > { %v3483_v58 = vpop.f32.mrf.mxu1  ;;  %v2320_v38 = vadd.f32 %v2273_v2, %v10021_v15  ;;  %8012 = vmatprep.subr.bf16.mxu1 %v10740_v12 }
 0x169   : > { %v7676_v40 = vpop.f32.mrf.mxu0 }
 0x16a   : > { %v7732_v18 = vpop.f32.mrf.mxu1  ;;  %v10301_v24 = vadd.f32 %v3475_v36, %v2320_v38 }
 0x16b   : > { %v2276_v9 = vpop.f32.mrf.mxu0 }
 0x16c   : > { %v3486_v5 = vpop.f32.mrf.mxu1  ;;  %v2321_v37 = vadd.f32 %v2276_v9, %v10048_v23 }
 0x16d   : > { %v7677_v54 = vpop.f32.mrf.mxu0  ;;  %7979 = vmatmul.mubr.bf16.gmra.mxu0 %v10119_v10 }
 0x16e   : > { %v7733_v6 = vpop.f32.mrf.mxu1  ;;  %v10304_v50 = vadd.f32 %v3478_v31, %v2321_v37  ;;  %7982 = vmatprep.mubr.msk.bf16.mxu0 %vm8312_vm0, %v10740_v12 }
 0x16f   : > { %v2281_v53 = vpop.f32.mrf.mxu0 }
 0x170   : > { %v3491_v15 = vpop.f32.mrf.mxu1  ;;  %v2322_v30 = vadd.f32 %v2281_v53, %v10080_v56 }
 0x171   : > { %v7680_v44 = vpop.f32.mrf.mxu0 }
 0x172   : > { %v7736_v29 = vpop.f32.mrf.mxu1  ;;  %v10313_v23 = vadd.f32 %v3483_v58, %v2322_v30 }
 0x173   : > { %v2284_v52 = vpop.f32.mrf.mxu0 }
 0x174   : > { %v3494_v62 = vpop.f32.mrf.mxu1  ;;  %v2323_v10 = vadd.f32 %v2284_v52, %v10107_v8 }
 0x175   : > { %v7681_v43 = vpop.f32.mrf.mxu0  ;;  %7983 = vmatmul.mubr.bf16.gmra.mxu0 %v10141_v42 }
 0x176   : > { %v7737_v56 = vpop.f32.mrf.mxu1  ;;  %v10317_v63 = vadd.f32 %v3486_v5, %v2323_v10  ;;  %7986 = vmatprep.mubr.msk.bf16.mxu0 %vm8312_vm0, %v10740_v12 }
 0x177   : > { %v2289_v26 = vpop.f32.mrf.mxu0 }
 0x178   : > { %v3499_v39 = vpop.f32.mrf.mxu1  ;;  %v2324_v20 = vadd.f32 %v2289_v26, %v10130_v11 }
 0x179   : > { %v7684_v28 = vpop.f32.mrf.mxu0 }
 0x17a   : > { %v7740_v36 = vpop.f32.mrf.mxu1  ;;  %v10326_v8 = vadd.f32 %v3491_v15, %v2324_v20  ;;  %v8214_v20 = vld [vmem:[%s10655_s3 + $0x10] sm:$0xff]  }
 0x17b   : > { %v2292_v19 = vpop.f32.mrf.mxu0 }
 0x17c   : > { %v3502_v49 = vpop.f32.mrf.mxu1  ;;  %v2325_v42 = vadd.f32 %v2292_v19, %v10158_v47  ;;  %v8212_v47 = vld [vmem:[%s10655_s3 + $0x20] sm:$0xff]  }
 0x17d   : > { %v7685_v60 = vpop.f32.mrf.mxu0  ;;  %7987 = vmatmul.mubr.bf16.gmra.mxu0 %v10164_v46  ;;  %8013 = vmatpush3.bf16.msra.mxu1 %v8212_v47 }
 0x17e   : > { %v7741_v11 = vpop.f32.mrf.mxu1  ;;  %v10330_v32 = vadd.f32 %v3494_v62, %v2325_v42  ;;  %7990 = vmatprep.mubr.msk.bf16.mxu0 %vm8312_vm0, %v10740_v12  ;;  %8014 = vmatprep.subr.bf16.mxu1 %v10740_v12 }
 0x17f   : > { %v2297_v31 = vpop.f32.mrf.mxu0 }
 0x180   : > { %v3507_v59 = vpop.f32.mrf.mxu1  ;;  %v2326_v22 = vadd.f32 %v2297_v31, %v10180_v7 }
 0x181   : > { %v7688_v0 = vpop.f32.mrf.mxu0 }
 0x182   : > { %v7744_v14 = vpop.f32.mrf.mxu1  ;;  %v10336_v2 = vadd.f32 %v3499_v39, %v2326_v22 }
 0x183   : > { %v2300_v58 = vpop.f32.mrf.mxu0 }
 0x184   : > { %v3510_v38 = vpop.f32.mrf.mxu1  ;;  %v2327_v40 = vadd.f32 %v2300_v58, %v10203_v33  ;;  %v8213_v33 = vld [vmem:[%s10655_s3 + $0x18] sm:$0xff]  }
 0x185   : > { %v7689_v46 = vpop.f32.mrf.mxu0  ;;  %7991 = vmatmul.mubr.bf16.gmra.mxu0 %v10192_v21  ;;  %8015 = vmatpush3.bf16.msra.mxu1 %v8213_v33 }
 0x186   : > { %v7745_v18 = vpop.f32.mrf.mxu1  ;;  %v10343_v7 = vadd.f32 %v3502_v49, %v2327_v40  ;;  %7994 = vmatprep.mubr.msk.bf16.mxu0 %vm8312_vm0, %v10740_v12  ;;  %8016 = vmatprep.subr.bf16.mxu1 %v10740_v12 }
 0x187   : > { %v2305_v9 = vpop.f32.mrf.mxu0 }
 0x188   : > { %v4368_v5 = vpop.f32.mrf.mxu1  ;;  %v2328_v37 = vadd.f32 %v2305_v9, %v10228_v61 }
 0x189   : > { %v7692_v54 = vpop.f32.mrf.mxu0  ;;  %8017 = vmatpush3.bf16.msra.mxu1 %v8214_v20 }
 0x18a   : > { %v7816_v6 = vpop.f32.mrf.mxu1  ;;  %v10349_v53 = vadd.f32 %v3507_v59, %v2328_v37  ;;  %8018 = vmatprep.subr.bf16.mxu1 %v10740_v12 }
 0x18b   : > { %v2308_v15 = vpop.f32.mrf.mxu0 }
 0x18c   : > { %v4371_v30 = vpop.f32.mrf.mxu1  ;;  %v2329_v25 = vadd.f32 %v2308_v15, %v10244_v17 }
 0x18d   : > { %v7693_v21 = vpop.f32.mrf.mxu0  ;;  %7995 = vmatmul.mubr.bf16.gmra.mxu0 %v10209_v34 }
 0x18e   : > { %v7817_v44 = vpop.f32.mrf.mxu1  ;;  %v10356_v61 = vadd.f32 %v3510_v38, %v2329_v25  ;;  %7998 = vmatprep.mubr.msk.bf16.mxu0 %vm8312_vm0, %v10740_v12 }
 0x18f   : > { %v3730_v29 = vpop.f32.mrf.mxu0 }
 0x190   : > { %v4376_v52 = vpop.f32.mrf.mxu1  ;;  %v3801_v62 = vadd.f32 %v3730_v29, %v10256_v41 }
 0x191   : > { %v7764_v10 = vpop.f32.mrf.mxu0 }
 0x192   : > { %v7820_v43 = vpop.f32.mrf.mxu1  ;;  %v10362_v56 = vadd.f32 %v4368_v5, %v3801_v62 }
 0x193   : > { %v3733_v17 = vpop.f32.mrf.mxu0 }
 0x194   : > { %v4379_v26 = vpop.f32.mrf.mxu1  ;;  %v3802_v39 = vadd.f32 %v3733_v17, %v10260_v51 }
 0x195   : > { %v7765_v13 = vpop.f32.mrf.mxu0  ;;  %7999 = vmatmul.mubr.bf16.gmra.mxu0 %v10239_v16  ;;  %v8215_v16 = vld [vmem:[%s10655_s3 + $0x8] sm:$0xff]  }
 0x196   : > { %v7821_v34 = vpop.f32.mrf.mxu1  ;;  %v10368_v28 = vadd.f32 %v4371_v30, %v3802_v39  ;;  %8002 = vmatprep.mubr.msk.bf16.mxu0 %vm8312_vm0, %v10740_v12  ;;  %8019 = vmatpush3.bf16.msra.mxu1 %v8215_v16 }
 0x197   : > { %v3738_v41 = vpop.f32.mrf.mxu0  ;;  %8020 = vmatprep.subr.bf16.mxu1 %v10740_v12 }
 0x198   : > { %v4384_v36 = vpop.f32.mrf.mxu1  ;;  %v3803_v19 = vadd.f32 %v3738_v41, %v10268_v55 }
 0x199   : > { %v7768_v51 = vpop.f32.mrf.mxu0 }
 0x19a   : > { %v7824_v49 = vpop.f32.mrf.mxu1  ;;  %v10375_v42 = vadd.f32 %v4376_v52, %v3803_v19 }
 0x19b   : > { %v3741_v60 = vpop.f32.mrf.mxu0 }
 0x19c   : > { %v4387_v11 = vpop.f32.mrf.mxu1  ;;  %v3804_v31 = vadd.f32 %v3741_v60, %v10271_v45 }
 0x19d   : > { %v7769_v59 = vpop.f32.mrf.mxu0  ;;  %8003 = vmatmul.mubr.bf16.gmra.mxu0 %v6403_v3  ;;  %v8216_v3 = vld [vmem:[%s10655_s3] sm:$0xff]  }
 0x19e   : > { %v7825_v22 = vpop.f32.mrf.mxu1  ;;  %v10381_v0 = vadd.f32 %v4379_v26, %v3804_v31  ;;  %8021 = vmatpush3.bf16.msra.mxu1 %v8216_v3 }
 0x19f   : > { %v3746_v55 = vpop.f32.mrf.mxu0 }
 0x1a0   : > { %v4392_v14 = vpop.f32.mrf.mxu1  ;;  %v3805_v47 = vadd.f32 %v3746_v55, %v10277_v27 }
 0x1a1   : > { %v7772_v45 = vpop.f32.mrf.mxu0 }
 0x1a2   : > { %v7828_v58 = vpop.f32.mrf.mxu1  ;;  %v10388_v38 = vadd.f32 %v4384_v36, %v3805_v47 }
 0x1a3   : > { %v3749_v40 = vpop.f32.mrf.mxu0 }
 0x1a4   : > { %v4395_v46 = vpop.f32.mrf.mxu1  ;;  %v3806_v18 = vadd.f32 %v3749_v40, %v10280_v48 }
 0x1a5   : > { %v7773_v9 = vpop.f32.mrf.mxu0 }
 0x1a6   : > { %v7829_v5 = vpop.f32.mrf.mxu1  ;;  %v10391_v37 = vadd.f32 %v4387_v11, %v3806_v18 }
 0x1a7   : > { %v3754_v54 = vpop.f32.mrf.mxu0 }
 0x1a8   : > { %v4400_v35 = vpop.f32.mrf.mxu1  ;;  %v3807_v57 = vadd.f32 %v3754_v54, %v10286_v1 }
 0x1a9   : > { %v7776_v27 = vpop.f32.mrf.mxu0 }
 0x1aa   : > { %v7832_v6 = vpop.f32.mrf.mxu1  ;;  %v10397_v33 = vadd.f32 %v4392_v14, %v3807_v57 }
 0x1ab   : > { %v3757_v15 = vpop.f32.mrf.mxu0 }
 0x1ac   : > { %v4403_v30 = vpop.f32.mrf.mxu1  ;;  %v3808_v48 = vadd.f32 %v3757_v15, %v10289_v4 }
 0x1ad   : > { %v7777_v25 = vpop.f32.mrf.mxu0 }
 0x1ae   : > { %v7833_v21 = vpop.f32.mrf.mxu1  ;;  %v10400_v44 = vadd.f32 %v4395_v46, %v3808_v48 }
 0x1af   : > { %v3762_v29 = vpop.f32.mrf.mxu0 }
 0x1b0   : > { %v4408_v52 = vpop.f32.mrf.mxu1  ;;  %v3809_v1 = vadd.f32 %v3762_v29, %v10301_v24 }
 0x1b1   : > { %v7780_v62 = vpop.f32.mrf.mxu0 }
 0x1b2   : > { %v7836_v10 = vpop.f32.mrf.mxu1  ;;  %v10403_v43 = vadd.f32 %v4400_v35, %v3809_v1 }
 0x1b3   : > { %v3765_v17 = vpop.f32.mrf.mxu0 }
 0x1b4   : > { %v4411_v26 = vpop.f32.mrf.mxu1  ;;  %v3810_v39 = vadd.f32 %v3765_v17, %v10304_v50 }
 0x1b5   : > { %v7781_v20 = vpop.f32.mrf.mxu0 }
 0x1b6   : > { %v7837_v13 = vpop.f32.mrf.mxu1  ;;  %v10406_v34 = vadd.f32 %v4403_v30, %v3810_v39 }
 0x1b7   : > { %v3770_v4 = vpop.f32.mrf.mxu0 }
 0x1b8   : > { %v4416_v41 = vpop.f32.mrf.mxu1  ;;  %v3811_v36 = vadd.f32 %v3770_v4, %v10313_v23 }
 0x1b9   : > { %v7784_v19 = vpop.f32.mrf.mxu0 }
 0x1ba   : > { %v7840_v51 = vpop.f32.mrf.mxu1  ;;  %v10409_v49 = vadd.f32 %v4408_v52, %v3811_v36 }
 0x1bb   : > { %v3773_v24 = vpop.f32.mrf.mxu0 }
 0x1bc   : > { %v4419_v60 = vpop.f32.mrf.mxu1  ;;  %v3812_v11 = vadd.f32 %v3773_v24, %v10317_v63 }
 0x1bd   : > { %v7785_v31 = vpop.f32.mrf.mxu0 }
 0x1be   : > { %v7841_v16 = vpop.f32.mrf.mxu1  ;;  %v10412_v59 = vadd.f32 %v4411_v26, %v3812_v11 }
 0x1bf   : > { %v3778_v50 = vpop.f32.mrf.mxu0 }
 0x1c0   : > { %v4424_v22 = vpop.f32.mrf.mxu1  ;;  %v3813_v55 = vadd.f32 %v3778_v50, %v10326_v8 }
 0x1c1   : > { %v7788_v14 = vpop.f32.mrf.mxu0 }
 0x1c2   : > { %v7844_v47 = vpop.f32.mrf.mxu1  ;;  %v10415_v45 = vadd.f32 %v4416_v41, %v3813_v55 }
 0x1c3   : > { %v3781_v23 = vpop.f32.mrf.mxu0 }
 0x1c4   : > { %v4427_v58 = vpop.f32.mrf.mxu1  ;;  %v3814_v40 = vadd.f32 %v3781_v23, %v10330_v32 }
 0x1c5   : > { %v7789_v46 = vpop.f32.mrf.mxu0 }
 0x1c6   : > { %v7845_v18 = vpop.f32.mrf.mxu1  ;;  %v10418_v9 = vadd.f32 %v4419_v60, %v3814_v40 }
 0x1c7   : > { %v3786_v63 = vpop.f32.mrf.mxu0 }
 0x1c8   : > { %v4432_v5 = vpop.f32.mrf.mxu1  ;;  %v3815_v54 = vadd.f32 %v3786_v63, %v10336_v2 }
 0x1c9   : > { %v7792_v35 = vpop.f32.mrf.mxu0 }
 0x1ca   : > { %v7848_v57 = vpop.f32.mrf.mxu1  ;;  %v10421_v3 = vadd.f32 %v4424_v22, %v3815_v54 }
 0x1cb   : > { %v3789_v8 = vpop.f32.mrf.mxu0 }
 0x1cc   : > { %v4435_v27 = vpop.f32.mrf.mxu1  ;;  %v3816_v6 = vadd.f32 %v3789_v8, %v10343_v7 }
 0x1cd   : > { %v7793_v15 = vpop.f32.mrf.mxu0 }
 0x1ce   : > { %v7849_v30 = vpop.f32.mrf.mxu1  ;;  %v10424_v48 = vadd.f32 %v4427_v58, %v3816_v6 }
 0x1cf   : > { %v3794_v32 = vpop.f32.mrf.mxu0 }
 0x1d0   : > { %v5857_v25 = vpop.f32.mrf.mxu1  ;;  %v3817_v21 = vadd.f32 %v3794_v32, %v10349_v53 }
 0x1d1   : > { %v7796_v29 = vpop.f32.mrf.mxu0 }
 0x1d2   : > { %v7920_v52 = vpop.f32.mrf.mxu1  ;;  %v10427_v1 = vadd.f32 %v4432_v5, %v3817_v21 }
 0x1d3   : > { %v3797_v2 = vpop.f32.mrf.mxu0 }
 0x1d4   : > { %v5860_v62 = vpop.f32.mrf.mxu1  ;;  %v3818_v10 = vadd.f32 %v3797_v2, %v10356_v61 }
 0x1d5   : > { %v7797_v17 = vpop.f32.mrf.mxu0 }
 0x1d6   : > { %v7921_v26 = vpop.f32.mrf.mxu1  ;;  %v10430_v39 = vadd.f32 %v4435_v27, %v3818_v10 }
 0x1d7   : > { %v5570_v7 = vpop.f32.mrf.mxu0 }
 0x1d8   : > { %v5865_v20 = vpop.f32.mrf.mxu1  ;;  %v5641_v13 = vadd.f32 %v5570_v7, %v10362_v56 }
 0x1d9   : > { %v7868_v4 = vpop.f32.mrf.mxu0 }
 0x1da   : > { %v7924_v41 = vpop.f32.mrf.mxu1  ;;  %v10433_v36 = vadd.f32 %v5857_v25, %v5641_v13 }
 0x1db   : > { %v5573_v53 = vpop.f32.mrf.mxu0 }
 0x1dc   : > { %v5868_v19 = vpop.f32.mrf.mxu1  ;;  %v5642_v51 = vadd.f32 %v5573_v53, %v10368_v28 }
 0x1dd   : > { %v7869_v24 = vpop.f32.mrf.mxu0 }
 0x1de   : > { %v7925_v60 = vpop.f32.mrf.mxu1  ;;  %v10436_v11 = vadd.f32 %v5860_v62, %v5642_v51 }
 0x1df   : > { %v5578_v61 = vpop.f32.mrf.mxu0 }
 0x1e0   : > { %v5873_v31 = vpop.f32.mrf.mxu1  ;;  %v5643_v16 = vadd.f32 %v5578_v61, %v10375_v42 }
 0x1e1   : > { %v7872_v50 = vpop.f32.mrf.mxu0 }
 0x1e2   : > { %v7928_v22 = vpop.f32.mrf.mxu1  ;;  %v10439_v55 = vadd.f32 %v5865_v20, %v5643_v16 }
 0x1e3   : > { %v5581_v56 = vpop.f32.mrf.mxu0 }
 0x1e4   : > { %v5876_v14 = vpop.f32.mrf.mxu1  ;;  %v5644_v47 = vadd.f32 %v5581_v56, %v10381_v0 }
 0x1e5   : > { %v7873_v23 = vpop.f32.mrf.mxu0 }
 0x1e6   : > { %v7929_v58 = vpop.f32.mrf.mxu1  ;;  %v10442_v40 = vadd.f32 %v5868_v19, %v5644_v47 }
 0x1e7   : > { %v5586_v28 = vpop.f32.mrf.mxu0 }
 0x1e8   : > { %v5881_v46 = vpop.f32.mrf.mxu1  ;;  %v5645_v18 = vadd.f32 %v5586_v28, %v10388_v38 }
 0x1e9   : > { %v7876_v63 = vpop.f32.mrf.mxu0 }
 0x1ea   : > { %v7932_v5 = vpop.f32.mrf.mxu1  ;;  %v10445_v54 = vadd.f32 %v5873_v31, %v5645_v18 }
 0x1eb   : > { %v5589_v42 = vpop.f32.mrf.mxu0 }
 0x1ec   : > { %v5884_v35 = vpop.f32.mrf.mxu1  ;;  %v5646_v57 = vadd.f32 %v5589_v42, %v10391_v37 }
 0x1ed   : > { %v7877_v8 = vpop.f32.mrf.mxu0 }
 0x1ee   : > { %v7933_v27 = vpop.f32.mrf.mxu1  ;;  %v10448_v6 = vadd.f32 %v5876_v14, %v5646_v57 }
 0x1ef   : > { %v5594_v0 = vpop.f32.mrf.mxu0 }
 0x1f0   : > { %v5889_v15 = vpop.f32.mrf.mxu1  ;;  %v5647_v30 = vadd.f32 %v5594_v0, %v10397_v33 }
 0x1f1   : > { %v7880_v32 = vpop.f32.mrf.mxu0 }
 0x1f2   : > { %v7936_v25 = vpop.f32.mrf.mxu1  ;;  %v10451_v21 = vadd.f32 %v5881_v46, %v5647_v30 }
 0x1f3   : > { %v5597_v38 = vpop.f32.mrf.mxu0 }
 0x1f4   : > { %v5892_v29 = vpop.f32.mrf.mxu1  ;;  %v5648_v52 = vadd.f32 %v5597_v38, %v10400_v44 }
 0x1f5   : > { %v7881_v2 = vpop.f32.mrf.mxu0 }
 0x1f6   : > { %v7937_v62 = vpop.f32.mrf.mxu1  ;;  %v10454_v10 = vadd.f32 %v5884_v35, %v5648_v52 }
 0x1f7   : > { %v5602_v37 = vpop.f32.mrf.mxu0 }
 0x1f8   : > { %v5897_v17 = vpop.f32.mrf.mxu1  ;;  %v5649_v26 = vadd.f32 %v5602_v37, %v10403_v43 }
 0x1f9   : > { %v7884_v7 = vpop.f32.mrf.mxu0 }
 0x1fa   : > { %v7940_v20 = vpop.f32.mrf.mxu1  ;;  %v10457_v13 = vadd.f32 %v5889_v15, %v5649_v26 }
 0x1fb   : > { %v5605_v33 = vpop.f32.mrf.mxu0 }
 0x1fc   : > { %v5900_v4 = vpop.f32.mrf.mxu1  ;;  %v5650_v41 = vadd.f32 %v5605_v33, %v10406_v34 }
 0x1fd   : > { %v7885_v53 = vpop.f32.mrf.mxu0 }
 0x1fe   : > { %v7941_v19 = vpop.f32.mrf.mxu1  ;;  %v10460_v51 = vadd.f32 %v5892_v29, %v5650_v41 }
 0x1ff   : > { %v5610_v44 = vpop.f32.mrf.mxu0 }
 0x200   : > { %v5905_v24 = vpop.f32.mrf.mxu1  ;;  %v5651_v60 = vadd.f32 %v5610_v44, %v10409_v49 }
 0x201   : > { %v7888_v61 = vpop.f32.mrf.mxu0 }
 0x202   : > { %v7944_v31 = vpop.f32.mrf.mxu1  ;;  %v10463_v16 = vadd.f32 %v5897_v17, %v5651_v60 }
 0x203   : > { %v5613_v43 = vpop.f32.mrf.mxu0 }
 0x204   : > { %v5908_v50 = vpop.f32.mrf.mxu1  ;;  %v5652_v22 = vadd.f32 %v5613_v43, %v10412_v59 }
 0x205   : > { %v7889_v56 = vpop.f32.mrf.mxu0 }
 0x206   : > { %v7945_v14 = vpop.f32.mrf.mxu1  ;;  %v10466_v47 = vadd.f32 %v5900_v4, %v5652_v22 }
 0x207   : > { %v5618_v34 = vpop.f32.mrf.mxu0 }
 0x208   : > { %v5913_v23 = vpop.f32.mrf.mxu1  ;;  %v5653_v58 = vadd.f32 %v5618_v34, %v10415_v45 }
 0x209   : > { %v7892_v28 = vpop.f32.mrf.mxu0 }
 0x20a   : > { %v7948_v46 = vpop.f32.mrf.mxu1  ;;  %v10469_v18 = vadd.f32 %v5905_v24, %v5653_v58 }
 0x20b   : > { %v5621_v49 = vpop.f32.mrf.mxu0 }
 0x20c   : > { %v5916_v63 = vpop.f32.mrf.mxu1  ;;  %v5654_v5 = vadd.f32 %v5621_v49, %v10418_v9 }
 0x20d   : > { %v7893_v42 = vpop.f32.mrf.mxu0 }
 0x20e   : > { %v7949_v35 = vpop.f32.mrf.mxu1  ;;  %v10472_v57 = vadd.f32 %v5908_v50, %v5654_v5 }
 0x20f   : > { %v5626_v59 = vpop.f32.mrf.mxu0 }
 0x210   : > { %v5921_v8 = vpop.f32.mrf.mxu1  ;;  %v5655_v27 = vadd.f32 %v5626_v59, %v10421_v3 }
 0x211   : > { %v7896_v0 = vpop.f32.mrf.mxu0 }
 0x212   : > { %v7952_v15 = vpop.f32.mrf.mxu1  ;;  %v10475_v30 = vadd.f32 %v5913_v23, %v5655_v27 }
 0x213   : > { %v5629_v45 = vpop.f32.mrf.mxu0 }
 0x214   : > { %v5924_v32 = vpop.f32.mrf.mxu1  ;;  %v5656_v25 = vadd.f32 %v5629_v45, %v10424_v48  ;;  %v10489_v48 = vld [vmem:[%s10654_s2] ss:$0 sm:$0xff] }
 0x215   : > { %v7897_v38 = vpop.f32.mrf.mxu0 }
 0x216   : > { %v7953_v29 = vpop.f32.mrf.mxu1  ;;  %v10478_v52 = vadd.f32 %v5916_v63, %v5656_v25 }
 0x217   : > { %v5634_v9 = vpop.f32.mrf.mxu0 }
 0x218   : > { %v5657_v2 = vadd.f32 %v5634_v9, %v10427_v1 }
 0x219   : > { %v7900_v62 = vpop.f32.mrf.mxu0 }
 0x21a   : > { %v10481_v37 = vadd.f32 %v5921_v8, %v5657_v2 }
 0x21b   : > { %v5637_v17 = vpop.f32.mrf.mxu0 }
 0x21c   : > { %v5658_v3 = vadd.f32 %v5637_v17, %v10430_v39 }
 0x21d   : > { %v7901_v26 = vpop.f32.mrf.mxu0 }
 0x21e   : > { %v10484_v7 = vadd.f32 %v5924_v32, %v5658_v3 }
 0x21f   : > { %v6495_v20 = vpop.f32.mrf.mxu0 }
 0x220   : > { %v6566_v33 = vadd.f32 %v6495_v20, %v10433_v36 }
 0x221   : > { %v7972_v4 = vpop.f32.mrf.mxu0 }
 0x222   : > { %v6591_v1 = vadd.f32 %v10489_v48, %v6566_v33 }
 0x223   : > { %v6498_v41 = vpop.f32.mrf.mxu0 }
 0x224   : > { %v6567_v53 = vadd.f32 %v6498_v41, %v10436_v11  ;;  %v6627_v44 = vmul.f32 0.1, %v6591_v1  ;;  %vm6609_vm2 = vcmp.gt.f32.partialorder %v6591_v1, 0.0 }
 0x225   : > { %v7973_v19 = vpop.f32.mrf.mxu0 }
 0x226   : > { %v6592_v39 = vadd.f32 %v10489_v48, %v6567_v53  ;;  %v6645_v43 = vsel %vm6609_vm2, %v6591_v1, %v6627_v44 }
 0x227   : > { %v6503_v24 = vpop.f32.mrf.mxu0 }
 0x228   : > { %vm6610_vm3 = vcmp.gt.f32.partialorder %v6592_v39, 0.0  ;;  %v6628_v60 = vmul.f32 0.1, %v6592_v39  ;;  %v6568_v61 = vadd.f32 %v6503_v24, %v10439_v55 }
 0x229   : > { %v7976_v31 = vpop.f32.mrf.mxu0 }
 0x22a   : > { %v6646_v50 = vsel %vm6610_vm3, %v6592_v39, %v6628_v60  ;;  %v6593_v36 = vadd.f32 %v10489_v48, %v6568_v61 }
 0x22b   : > { %v6663_v22 = vpack.c.bf16 %v6646_v50, %v6645_v43  ;;  %v6506_v56 = vpop.f32.mrf.mxu0 }
 0x22c   : > { %v6569_v14 = vadd.f32 %v6506_v56, %v10442_v40  ;;  %v6629_v34 = vmul.f32 0.1, %v6593_v36  ;;  %vm6611_vm4 = vcmp.gt.f32.partialorder %v6593_v36, 0.0 }
 0x22d   : > { %v7977_v11 = vpop.f32.mrf.mxu0  ;;  %8023 = vmatmul.mubr.bf16.vlgmr.msra.gmra.mxu1 %v6663_v22 }
 0x22e   : > { %v6594_v23 = vadd.f32 %v10489_v48, %v6569_v14  ;;  %8026 = vmatprep.mubr.msk.bf16.mxu1 %vm8312_vm0, %v10740_v12  ;;  %v6647_v49 = vsel %vm6611_vm4, %v6593_v36, %v6629_v34 }
 0x22f   : > { %v6511_v58 = vpop.f32.mrf.mxu0 }
 0x230   : > { %vm6612_vm5 = vcmp.gt.f32.partialorder %v6594_v23, 0.0  ;;  %v6630_v55 = vmul.f32 0.1, %v6594_v23  ;;  %v6570_v28 = vadd.f32 %v6511_v58, %v10445_v54 }
 0x231   : > { %v7980_v46 = vpop.f32.mrf.mxu0 }
 0x232   : > { %v6648_v63 = vsel %vm6612_vm5, %v6594_v23, %v6630_v55  ;;  %v6595_v5 = vadd.f32 %v10489_v48, %v6570_v28 }
 0x233   : > { %v6514_v40 = vpop.f32.mrf.mxu0  ;;  %v6664_v42 = vpack.c.bf16 %v6648_v63, %v6647_v49 }
 0x234   : > { %v6571_v35 = vadd.f32 %v6514_v40, %v10448_v6  ;;  %v6631_v8 = vmul.f32 0.1, %v6595_v5  ;;  %vm6613_vm6 = vcmp.gt.f32.partialorder %v6595_v5, 0.0 }
 0x235   : > { %v7981_v59 = vpop.f32.mrf.mxu0  ;;  %8027 = vmatmul.mubr.bf16.gmra.mxu1 %v6664_v42 }
 0x236   : > { %v6596_v27 = vadd.f32 %v10489_v48, %v6571_v35  ;;  %8030 = vmatprep.mubr.msk.bf16.mxu1 %vm8312_vm0, %v10740_v12  ;;  %v6649_v32 = vsel %vm6613_vm6, %v6595_v5, %v6631_v8 }
 0x237   : > { %v6519_v0 = vpop.f32.mrf.mxu0 }
 0x238   : > { %vm6614_vm7 = vcmp.gt.f32.partialorder %v6596_v27, 0.0  ;;  %v6632_v54 = vmul.f32 0.1, %v6596_v27  ;;  %v6572_v15 = vadd.f32 %v6519_v0, %v10451_v21 }
 0x239   : > { %v7984_v45 = vpop.f32.mrf.mxu0 }
 0x23a   : > { %v6650_v25 = vsel %vm6614_vm7, %v6596_v27, %v6632_v54  ;;  %v6597_v38 = vadd.f32 %v10489_v48, %v6572_v15 }
 0x23b   : > { %v6522_v6 = vpop.f32.mrf.mxu0  ;;  %v6665_v29 = vpack.c.bf16 %v6650_v25, %v6649_v32 }
 0x23c   : > { %v6573_v9 = vadd.f32 %v6522_v6, %v10454_v10  ;;  %v6633_v62 = vmul.f32 0.1, %v6597_v38  ;;  %vm6615_vm8 = vcmp.gt.f32.partialorder %v6597_v38, 0.0 }
 0x23d   : > { %v7985_v2 = vpop.f32.mrf.mxu0  ;;  %8031 = vmatmul.mubr.bf16.gmra.mxu1 %v6665_v29 }
 0x23e   : > { %v6598_v17 = vadd.f32 %v10489_v48, %v6573_v9  ;;  %8034 = vmatprep.mubr.msk.bf16.mxu1 %vm8312_vm0, %v10740_v12  ;;  %v6651_v33 = vsel %vm6615_vm8, %v6597_v38, %v6633_v62 }
 0x23f   : > { %v6527_v3 = vpop.f32.mrf.mxu0 }
 0x240   : > { %vm6616_vm9 = vcmp.gt.f32.partialorder %v6598_v17, 0.0  ;;  %v6634_v21 = vmul.f32 0.1, %v6598_v17  ;;  %v6574_v26 = vadd.f32 %v6527_v3, %v10457_v13 }
 0x241   : > { %v7988_v20 = vpop.f32.mrf.mxu0 }
 0x242   : > { %v6652_v4 = vsel %vm6616_vm9, %v6598_v17, %v6634_v21  ;;  %v6599_v1 = vadd.f32 %v10489_v48, %v6574_v26 }
 0x243   : > { %v6530_v10 = vpop.f32.mrf.mxu0  ;;  %v6666_v41 = vpack.c.bf16 %v6652_v4, %v6651_v33 }
 0x244   : > { %v6575_v53 = vadd.f32 %v6530_v10, %v10460_v51  ;;  %v6635_v44 = vmul.f32 0.1, %v6599_v1  ;;  %vm6617_vm10 = vcmp.gt.f32.partialorder %v6599_v1, 0.0 }
 0x245   : > { %v7989_v19 = vpop.f32.mrf.mxu0  ;;  %8035 = vmatmul.mubr.bf16.gmra.mxu1 %v6666_v41 }
 0x246   : > { %v6600_v39 = vadd.f32 %v10489_v48, %v6575_v53  ;;  %8038 = vmatprep.mubr.msk.bf16.mxu1 %vm8312_vm0, %v10740_v12  ;;  %v6653_v31 = vsel %vm6617_vm10, %v6599_v1, %v6635_v44 }
 0x247   : > { %v6535_v24 = vpop.f32.mrf.mxu0 }
 0x248   : > { %vm6618_vm11 = vcmp.gt.f32.partialorder %v6600_v39, 0.0  ;;  %v6636_v13 = vmul.f32 0.1, %v6600_v39  ;;  %v6576_v60 = vadd.f32 %v6535_v24, %v10463_v16 }
 0x249   : > { %v7992_v61 = vpop.f32.mrf.mxu0 }
 0x24a   : > { %v6654_v43 = vsel %vm6618_vm11, %v6600_v39, %v6636_v13  ;;  %v6601_v50 = vadd.f32 %v10489_v48, %v6576_v60 }
 0x24b   : > { %v6538_v51 = vpop.f32.mrf.mxu0  ;;  %v6667_v36 = vpack.c.bf16 %v6654_v43, %v6653_v31 }
 0x24c   : > { %v6577_v22 = vadd.f32 %v6538_v51, %v10466_v47  ;;  %v6637_v14 = vmul.f32 0.1, %v6601_v50  ;;  %vm6619_vm12 = vcmp.gt.f32.partialorder %v6601_v50, 0.0 }
 0x24d   : > { %v7993_v56 = vpop.f32.mrf.mxu0  ;;  %8039 = vmatmul.mubr.bf16.gmra.mxu1 %v6667_v36 }
 0x24e   : > { %v6602_v11 = vadd.f32 %v10489_v48, %v6577_v22  ;;  %8042 = vmatprep.mubr.msk.bf16.mxu1 %vm8312_vm0, %v10740_v12  ;;  %v6655_v55 = vsel %vm6619_vm12, %v6601_v50, %v6637_v14 }
 0x24f   : > { %v6543_v34 = vpop.f32.mrf.mxu0 }
 0x250   : > { %vm6620_vm13 = vcmp.gt.f32.partialorder %v6602_v11, 0.0  ;;  %v6638_v16 = vmul.f32 0.1, %v6602_v11  ;;  %v6578_v23 = vadd.f32 %v6543_v34, %v10469_v18 }
 0x251   : > { %v7996_v58 = vpop.f32.mrf.mxu0 }
 0x252   : > { %v6656_v28 = vsel %vm6620_vm13, %v6602_v11, %v6638_v16  ;;  %v6603_v46 = vadd.f32 %v10489_v48, %v6578_v23 }
 0x253   : > { %v6546_v47 = vpop.f32.mrf.mxu0  ;;  %v6668_v49 = vpack.c.bf16 %v6656_v28, %v6655_v55 }
 0x254   : > { %v6579_v63 = vadd.f32 %v6546_v47, %v10472_v57  ;;  %v6639_v40 = vmul.f32 0.1, %v6603_v46  ;;  %vm6621_vm14 = vcmp.gt.f32.partialorder %v6603_v46, 0.0 }
 0x255   : > { %v7997_v5 = vpop.f32.mrf.mxu0  ;;  %8043 = vmatmul.mubr.bf16.gmra.mxu1 %v6668_v49 }
 0x256   : > { %v6604_v42 = vadd.f32 %v10489_v48, %v6579_v63  ;;  %8046 = vmatprep.mubr.msk.bf16.mxu1 %vm8312_vm0, %v10740_v12  ;;  %v6657_v27 = vsel %vm6621_vm14, %v6603_v46, %v6639_v40 }
 0x257   : > { %v6551_v35 = vpop.f32.mrf.mxu0 }
 0x258   : > { %vm6622_vm15 = vcmp.gt.f32.partialorder %v6604_v42, 0.0  ;;  %v6640_v18 = vmul.f32 0.1, %v6604_v42  ;;  %v6580_v59 = vadd.f32 %v6551_v35, %v10475_v30 }
 0x259   : > { %v8000_v8 = vpop.f32.mrf.mxu0 }
 0x25a   : > { %v6658_v0 = vsel %vm6622_vm15, %v6604_v42, %v6640_v18  ;;  %v6605_v54 = vadd.f32 %v10489_v48, %v6580_v59 }
 0x25b   : > { %v6554_v57 = vpop.f32.mrf.mxu0  ;;  %v6669_v15 = vpack.c.bf16 %v6658_v0, %v6657_v27 }
 0x25c   : > { %v6581_v45 = vadd.f32 %v6554_v57, %v10478_v52  ;;  %v6641_v25 = vmul.f32 0.1, %v6605_v54  ;;  %vm6623_vm1 = vcmp.gt.f32.partialorder %v6605_v54, 0.0 }
 0x25d   : > { %v8001_v32 = vpop.f32.mrf.mxu0  ;;  %8047 = vmatmul.mubr.bf16.gmra.mxu1 %v6669_v15 }
 0x25e   : > { %v6606_v38 = vadd.f32 %v10489_v48, %v6581_v45  ;;  %8050 = vmatprep.mubr.msk.bf16.mxu1 %vm8312_vm0, %v10740_v12  ;;  %v6659_v2 = vsel %vm6623_vm1, %v6605_v54, %v6641_v25 }
 0x25f   : > { %v6559_v6 = vpop.f32.mrf.mxu0 }
 0x260   : > { %vm6624_vm2 = vcmp.gt.f32.partialorder %v6606_v38, 0.0  ;;  %v6642_v30 = vmul.f32 0.1, %v6606_v38  ;;  %v6582_v29 = vadd.f32 %v6559_v6, %v10481_v37 }
 0x261   : > { %v8004_v9 = vpop.f32.mrf.mxu0 }
 0x262   : > { %v6660_v62 = vsel %vm6624_vm2, %v6606_v38, %v6642_v30  ;;  %v6607_v17 = vadd.f32 %v10489_v48, %v6582_v29 }
 0x263   : > { %v6562_v52 = vpop.f32.mrf.mxu0  ;;  %v6670_v3 = vpack.c.bf16 %v6660_v62, %v6659_v2 }
 0x264   : > { %v6583_v21 = vadd.f32 %v6562_v52, %v10484_v7  ;;  %v6643_v20 = vmul.f32 0.1, %v6607_v17  ;;  %vm6625_vm3 = vcmp.gt.f32.partialorder %v6607_v17, 0.0  ;;  %v10549_v7 = vld [vmem:[%s10656_s4] ss:$0 sm:$0xff] }
 0x265   : > { %v8005_v26 = vpop.f32.mrf.mxu0  ;;  %8051 = vmatmul.mubr.bf16.gmra.mxu1 %v6670_v3 }
 0x266   : > { %v6608_v33 = vadd.f32 %v10489_v48, %v6583_v21  ;;  %8054 = vmatprep.mubr.msk.bf16.mxu1 %vm8312_vm0, %v10740_v12  ;;  %v6661_v4 = vsel %vm6625_vm3, %v6607_v17, %v6643_v20 }
 0x268   : > { %vm6626_vm4 = vcmp.gt.f32.partialorder %v6608_v33, 0.0  ;;  %v6644_v37 = vmul.f32 0.1, %v6608_v33 }
 0x26a   : > { %v6662_v1 = vsel %vm6626_vm4, %v6608_v33, %v6644_v37 }
 0x26b   : > { %v6671_v10 = vpack.c.bf16 %v6662_v1, %v6661_v4 }
 0x26d   : > { %8055 = vmatmul.mubr.bf16.gmra.mxu1 %v6671_v10 }
 0x2ed   : > { %v6777_v41 = vpop.f32.mrf.mxu1 }
 0x2ee   : > { %v6778_v48 = vadd.f32 %v10549_v7, %v6777_v41 }
 0x2ef   : > { %v8024_v53 = vpop.f32.mrf.mxu1 }
 0x2f0   : > { %6848 = vst [vmem:[%s10552_s15] sm:$0xff] %v6778_v48 }
 0x2f1   : > { %v6780_v12 = vpop.f32.mrf.mxu1 }
 0x2f2   : > { %v6781_v19 = vadd.f32 %v10549_v7, %v6780_v12 }
 0x2f3   : > { %v8025_v44 = vpop.f32.mrf.mxu1 }
 0x2f4   : > { %6849 = vst [vmem:[%s10552_s15 + $0x8] sm:$0xff] %v6781_v19 }
 0x2f5   : > { %v6785_v39 = vpop.f32.mrf.mxu1 }
 0x2f6   : > { %v6786_v24 = vadd.f32 %v10549_v7, %v6785_v39 }
 0x2f7   : > { %v8028_v13 = vpop.f32.mrf.mxu1 }
 0x2f8   : > { %6850 = vst [vmem:[%s10552_s15 + $0x10] sm:$0xff] %v6786_v24 }
 0x2f9   : > { %v6788_v60 = vpop.f32.mrf.mxu1 }
 0x2fa   : > { %v6789_v61 = vadd.f32 %v10549_v7, %v6788_v60 }
 0x2fb   : > { %v8029_v31 = vpop.f32.mrf.mxu1 }
 0x2fc   : > { %6851 = vst [vmem:[%s10552_s15 + $0x18] sm:$0xff] %v6789_v61 }
 0x2fd   : > { %v6793_v43 = vpop.f32.mrf.mxu1 }
 0x2fe   : > { %v6794_v50 = vadd.f32 %v10549_v7, %v6793_v43 }
 0x2ff   : > { %v8032_v51 = vpop.f32.mrf.mxu1 }
 0x300   : > { %6852 = vst [vmem:[%s10552_s15 + $0x20] sm:$0xff] %v6794_v50 }
 0x301   : > { %v6796_v36 = vpop.f32.mrf.mxu1 }
 0x302   : > { %v6797_v22 = vadd.f32 %v10549_v7, %v6796_v36 }
 0x303   : > { %v8033_v56 = vpop.f32.mrf.mxu1 }
 0x304   : > { %6853 = vst [vmem:[%s10552_s15 + $0x28] sm:$0xff] %v6797_v22 }
 0x305   : > { %v6801_v14 = vpop.f32.mrf.mxu1 }
 0x306   : > { %v6802_v11 = vadd.f32 %v10549_v7, %v6801_v14 }
 0x307   : > { %v8036_v34 = vpop.f32.mrf.mxu1 }
 0x308   : > { %6854 = vst [vmem:[%s10552_s15 + $0x30] sm:$0xff] %v6802_v11 }
 0x309   : > { %v6804_v16 = vpop.f32.mrf.mxu1 }
 0x30a   : > { %v6805_v23 = vadd.f32 %v10549_v7, %v6804_v16 }
 0x30b   : > { %v8037_v58 = vpop.f32.mrf.mxu1 }
 0x30c   : > { %6855 = vst [vmem:[%s10552_s15 + $0x38] sm:$0xff] %v6805_v23 }
 0x30d   : > { %v6809_v55 = vpop.f32.mrf.mxu1 }
 0x30e   : > { %v6810_v28 = vadd.f32 %v10549_v7, %v6809_v55 }
 0x30f   : > { %v8040_v46 = vpop.f32.mrf.mxu1 }
 0x310   : > { %6856 = vst [vmem:[%s10552_s15 + $0x40] sm:$0xff] %v6810_v28 }
 0x311   : > { %v6812_v47 = vpop.f32.mrf.mxu1 }
 0x312   : > { %v6813_v49 = vadd.f32 %v10549_v7, %v6812_v47 }
 0x313   : > { %v8041_v63 = vpop.f32.mrf.mxu1 }
 0x314   : > { %6857 = vst [vmem:[%s10552_s15 + $0x48] sm:$0xff] %v6813_v49 }
 0x315   : > { %v6817_v5 = vpop.f32.mrf.mxu1 }
 0x316   : > { %v6818_v40 = vadd.f32 %v10549_v7, %v6817_v5 }
 0x317   : > { %v8044_v42 = vpop.f32.mrf.mxu1 }
 0x318   : > { %6858 = vst [vmem:[%s10552_s15 + $0x50] sm:$0xff] %v6818_v40 }
 0x319   : > { %v6820_v35 = vpop.f32.mrf.mxu1 }
 0x31a   : > { %v6821_v18 = vadd.f32 %v10549_v7, %v6820_v35 }
 0x31b   : > { %v8045_v59 = vpop.f32.mrf.mxu1 }
 0x31c   : > { %6859 = vst [vmem:[%s10552_s15 + $0x58] sm:$0xff] %v6821_v18 }
 0x31d   : > { %v6825_v8 = vpop.f32.mrf.mxu1 }
 0x31e   : > { %v6826_v27 = vadd.f32 %v10549_v7, %v6825_v8 }
 0x31f   : > { %v8048_v0 = vpop.f32.mrf.mxu1 }
 0x320   : > { %6860 = vst [vmem:[%s10552_s15 + $0x60] sm:$0xff] %v6826_v27 }
 0x321   : > { %v6828_v54 = vpop.f32.mrf.mxu1 }
 0x322   : > { %v6829_v57 = vadd.f32 %v10549_v7, %v6828_v54 }
 0x323   : > { %v8049_v15 = vpop.f32.mrf.mxu1 }
 0x324   : > { %6861 = vst [vmem:[%s10552_s15 + $0x68] sm:$0xff] %v6829_v57 }
 0x325   : > { %v6833_v45 = vpop.f32.mrf.mxu1 }
 0x326   : > { %v6834_v32 = vadd.f32 %v10549_v7, %v6833_v45 }
 0x327   : > { %v8052_v25 = vpop.f32.mrf.mxu1 }
 0x328   : > { %6862 = vst [vmem:[%s10552_s15 + $0x70] sm:$0xff] %v6834_v32 }
 0x329   : > { %v6836_v38 = vpop.f32.mrf.mxu1 }
 0x32a   : > { %v6837_v6 = vadd.f32 %v10549_v7, %v6836_v38 }
 0x32b   : > { %v8053_v30 = vpop.f32.mrf.mxu1 }
 0x32c   : > { %6863 = vst [vmem:[%s10552_s15 + $0x78] sm:$0xff] %v6837_v6 }
 0x32d   : > { %v6841_v29 = vpop.f32.mrf.mxu1 }
 0x32e   : > { %v6842_v9 = vadd.f32 %v10549_v7, %v6841_v29 }
 0x32f   : > { %v8056_v2 = vpop.f32.mrf.mxu1 }
 0x330   : > { %6864 = vst [vmem:[%s10552_s15 + $0x80] sm:$0xff] %v6842_v9 }
 0x331   : > { %v6844_v62 = vpop.f32.mrf.mxu1 }
 0x332   : > { %v6845_v17 = vadd.f32 %v10549_v7, %v6844_v62 }
 0x333   : > { %v8057_v52 = vpop.f32.mrf.mxu1 }
 0x334   : > { %6865 = vst [vmem:[%s10552_s15 + $0x88] sm:$0xff] %v6845_v17 }
 0x335   : > { %8230 = shalt.err (!%p8227_p6)
}
 0x336   : > { %s8231_s12 = scalar_lea.hbm %s10593_s30, 2304  ;;  %s8235_s17 = scalar_lea.hbm %s10657_s5, 9216 }
 0x337   : > { %p8232_p7 = scmp.ne.s32.totalorder %s10593_s30, %s8231_s12  ;;  %p8236_p11 = scmp.lt.s32.totalorder %s10593_s30, %s10657_s5 }
 0x338   : > { %p8237_p12 = scmp.lt.s32.totalorder %s8235_s17, %s8231_s12 }
 0x339   : > { %p8233_p9 = pnand %p8232_p7, %p8398_p3 }
 0x33a   : > { %p8238_p13 = por %p8237_p12, %p8236_p11 }
 0x33b   : > { %p8234_p10 = pneg %p8233_p9 }
 0x33d   : > { %p8239_p0 = pnand %p8238_p13, %p8234_p10 }
 0x33f   : > { %8242 = shalt.err (!%p8239_p0)
}
 0x340   : > { %s8315_s22 = smov 128   ;;  %s8316_s13 = smov 8  }
 0x341   : > { %8061 = dma.vmem_to_hbm [thread:$0]  (%p8398_p3), %s10595_s27, 2304, %s10593_s30, %s10601_s8, %s8315_s22, %s8315_s22, %s8316_s13  }
 0x342 PF: > { %p8067_p1 = scmp.ge.s32.totalorder %s8309_s25, 2  ;;  %s6897_s9 = sand.u32 1, %s8281_s18  }
 0x343   : > { %s6898_s10 = scalar_lea.sflag [#allocation3], %s6897_s9 }
 0x344   : > { %p8064_p2 = pnand %p8067_p1, %p8407_p8 }
 0x346   : > { %p8065_p4 = pneg %p8064_p2 }
 0x348   : > { %8276 = dma.done.wait (%p8065_p4), %s6898_s10, 2304  }
 0x349   : > { %8278 = vsyncadd (%p8065_p4), %s6898_s10, 4294964992  ;;  %s18_s25 = sadd.s32 1, %s8309_s25   ;;  %s10833_s18 = smov %s8285_s19 }
 0x34a   : > { %p15_p5 = scmp.ge.s32.totalorder %s18_s25, 6   ;;  %s10834_s19 = smov %s8289_s20 }
 0x34b   : > { %s10835_s20 = smov %s8416_s11  ;;  %s10836_s21 = smov %s8301_s23 }
 0x34c   : > { %s10837_s22 = smov %s8305_s24  ;;  %s10838_s23 = smov %s10841_s28 }
 0x34d   : > { %s10839_s24 = smov %s10845_s29  ;;  %17 = sbr.rel (!%p15_p5) target bundleno = 5 (0x5), region = 86 }
 0x352   :  { %6903 = vsyncpa [#allocation3], 1 }
 0x353   :  { %6905 = vsyncpa [#allocation3 + $0x1], 1 }

</bundles_post_ra>
